<compile_context>
chip_gen: v6e
topology: v6e:2x2x1
jax: 0.10.0
libtpu: 0.0.40
codegen_flags: <defaults>
</compile_context>

<pallas_src>
import functools
import math

import jax
import jax.numpy as jnp
from jax import lax
from jax.experimental import pallas as pl
from jax.experimental.pallas import tpu as pltpu

_BN_EPS = 1e-5


# ----------------------------------------------------------------------------
# Fused conv-as-matmul kernel.
#   grid = (M/tm, Cout/tn, k*k)   dims = ("parallel", "parallel", "arbitrary")
#   s_ref  : (1, tm, Cin)  bf16   tap t of the shifted-input stack
#   w_ref  : (1, Cin, tn)  bf16   tap t of the BN-folded weight stack
#   b_ref  : (1, tn)       f32    BN bias
#   r_ref  : (tm, tn)      bf16   optional residual
#   o_ref  : (tm, tn)             output
#   acc_ref: (tm, tn)      f32    VMEM accumulator (lives across the tap axis)
# ----------------------------------------------------------------------------
def _conv_mm_kernel(s_ref, w_ref, b_ref, *rest, relu, has_res):
    if has_res:
        r_ref, o_ref, acc_ref = rest
    else:
        o_ref, acc_ref = rest
    t = pl.program_id(2)

    @pl.when(t == 0)
    def _():
        acc_ref[...] = jnp.zeros_like(acc_ref)

    acc_ref[...] += jnp.dot(s_ref[0], w_ref[0],
                            preferred_element_type=jnp.float32)

    @pl.when(t == pl.num_programs(2) - 1)
    def _():
        y = acc_ref[...] + b_ref[...]
        if has_res:
            y = y + r_ref[...].astype(jnp.float32)
        if relu:
            y = jnp.maximum(y, 0.0)
        o_ref[...] = y.astype(o_ref.dtype)


def conv_matmul(slabs, w, bias, residual=None, relu=True,
                out_dtype=jnp.bfloat16):
    """out[M, Cout] = act( sum_t slabs[t] @ w[t] + bias [+ residual] )."""
    T, M, Cin = slabs.shape
    Tw, Cin2, Cout = w.shape
    assert T == Tw and Cin == Cin2

    tm = 256 if (M > 256 and M % 256 == 0) else M       # >=2 M blocks for stem
    tn = 128 if Cout >= 128 else Cout                    # >=2 N blocks Cout>=256
    grid = (M // tm, Cout // tn, T)

    inputs = [slabs, w, bias]
    in_specs = [
        pl.BlockSpec((1, tm, Cin), lambda i, j, t: (t, i, 0)),
        pl.BlockSpec((1, Cin, tn), lambda i, j, t: (t, 0, j)),
        pl.BlockSpec((1, tn), lambda i, j, t: (0, j)),
    ]
    has_res = residual is not None
    if has_res:
        inputs.append(residual)
        in_specs.append(pl.BlockSpec((tm, tn), lambda i, j, t: (i, j)))

    return pl.pallas_call(
        functools.partial(_conv_mm_kernel, relu=relu, has_res=has_res),
        out_shape=jax.ShapeDtypeStruct((M, Cout), out_dtype),
        grid=grid,
        in_specs=in_specs,
        out_specs=pl.BlockSpec((tm, tn), lambda i, j, t: (i, j)),
        scratch_shapes=[pltpu.VMEM((tm, tn), jnp.float32)],
        compiler_params=pltpu.CompilerParams(
            dimension_semantics=("parallel", "parallel", "arbitrary")),
    )(*inputs)


def _shifted_slabs(x, k, stride, pad):
    """Stack of k*k stride-shifted views: (k*k, N*OH*OW, C). One XLA fusion."""
    N, H, W, C = x.shape
    OH = (H + 2 * pad - k) // stride + 1
    OW = (W + 2 * pad - k) // stride + 1
    xp = jnp.pad(x, ((0, 0), (pad, pad), (pad, pad), (0, 0))) if pad else x
    M = N * OH * OW
    slabs = []
    for dy in range(k):
        for dx in range(k):
            s = lax.slice(
                xp, (0, dy, dx, 0),
                (N, dy + (OH - 1) * stride + 1, dx + (OW - 1) * stride + 1, C),
                (1, stride, stride, 1))
            slabs.append(s.reshape(M, C))          # contiguous -> free reshape
    return jnp.stack(slabs, axis=0), (N, OH, OW)


def conv_bn_act(x, p, stride, relu=True, residual=None,
                out_dtype=jnp.bfloat16):
    slabs, (N, OH, OW) = _shifted_slabs(x, p["k"], stride, p["pad"])
    cout = p["w"].shape[-1]
    res2d = None
    if residual is not None:
        res2d = residual.reshape(N * OH * OW, cout).astype(jnp.bfloat16)
    y = conv_matmul(slabs, p["w"], p["bias"], residual=res2d, relu=relu,
                    out_dtype=out_dtype)
    return y.reshape(N, OH, OW, cout)


# ----------------------------------------------------------------------------
# MaxPool2d(3, 2, 1): 4 stride-2 parity planes of the padded input (= the
# input read exactly once) + in-kernel unit shifts for the nine window taps.
# ----------------------------------------------------------------------------
def _maxpool_kernel(p00_ref, p01_ref, p10_ref, p11_ref, o_ref):
    oh, ow = o_ref.shape[1], o_ref.shape[2]
    a, b, c, d = p00_ref[...], p01_ref[...], p10_ref[...], p11_ref[...]
    m = a[:, :oh, :ow]
    m = jnp.maximum(m, a[:, :oh, 1:ow + 1])
    m = jnp.maximum(m, a[:, 1:oh + 1, :ow])
    m = jnp.maximum(m, a[:, 1:oh + 1, 1:ow + 1])
    m = jnp.maximum(m, b[:, :oh, :ow])
    m = jnp.maximum(m, b[:, 1:oh + 1, :ow])
    m = jnp.maximum(m, c[:, :oh, :ow])
    m = jnp.maximum(m, c[:, :oh, 1:ow + 1])
    m = jnp.maximum(m, d[:, :oh, :ow])
    o_ref[...] = m.astype(o_ref.dtype)


def maxpool_3x3_s2_p1(x, out_dtype=jnp.bfloat16):
    N, H, W, C = x.shape
    assert H % 2 == 0 and W % 2 == 0
    OH, OW = H // 2, W // 2
    xp = jnp.pad(x, ((0, 0), (1, 1), (1, 1), (0, 0)),
                 constant_values=-jnp.inf)        # PyTorch pads with -inf
    planes = []
    for a in range(2):
        for b in range(2):
            planes.append(lax.slice(
                xp, (0, a, b, 0),
                (N, a + 2 * OH + 1, b + 2 * OW + 1, C),
                (1, 2, 2, 1)))                    # (N, OH+1, OW+1, C)
    in_spec = pl.BlockSpec((N, OH + 1, OW + 1, C), lambda i: (0, 0, 0, 0))
    return pl.pallas_call(
        _maxpool_kernel,
        out_shape=jax.ShapeDtypeStruct((N, OH, OW, C), out_dtype),
        grid=(1,),
        in_specs=[in_spec] * 4,
        out_specs=pl.BlockSpec((N, OH, OW, C), lambda i: (0, 0, 0, 0)),
    )(*planes)


# ----------------------------------------------------------------------------
# AdaptiveAvgPool2d((1,1)) + Linear fused (FC head padded to 128 lanes)
# ----------------------------------------------------------------------------
def _avgpool_fc_kernel(x_ref, w_ref, b_ref, o_ref):
    feats = jnp.mean(x_ref[...].astype(jnp.float32), axis=1)      # (N, C)
    o_ref[...] = jnp.dot(feats, w_ref[...],
                         preferred_element_type=jnp.float32) + b_ref[...]


def avgpool_fc(x, fc_w, fc_b):
    N, H, W, C = x.shape
    ncp = fc_w.shape[1]
    xr = x.reshape(N, H * W, C)
    return pl.pallas_call(
        _avgpool_fc_kernel,
        out_shape=jax.ShapeDtypeStruct((N, ncp), jnp.float32),
        grid=(1,),
        in_specs=[pl.BlockSpec((N, H * W, C), lambda i: (0, 0, 0)),
                  pl.BlockSpec((C, ncp), lambda i: (0, 0)),
                  pl.BlockSpec((1, ncp), lambda i: (0, 0))],
        out_specs=pl.BlockSpec((N, ncp), lambda i: (0, 0)),
    )(xr, fc_w, fc_b)


# ----------------------------------------------------------------------------
# Parameter construction (deterministic, matches _initialize_weights; BN
# folded and weights tap-stacked / padded / cast at build time).
# ----------------------------------------------------------------------------
def make_conv(key, cin, cout, k, pad, cin_pad=None):
    cin_p = cin if cin_pad is None else cin_pad
    std = math.sqrt(2.0 / (cout * k * k))        # kaiming_normal_, fan_out, relu
    w = std * jax.random.normal(key, (k, k, cin, cout), dtype=jnp.float32)
    # BN inference, fresh stats: gamma=1, beta=0, mean=0, var=1.
    scale = 1.0 / math.sqrt(1.0 + _BN_EPS)
    bias = jnp.zeros((1, cout), jnp.float32)     # beta - mean*scale = 0
    w = w * scale
    if cin_p != cin:
        w = jnp.pad(w, ((0, 0), (0, 0), (0, cin_p - cin), (0, 0)))
    w = w.reshape(k * k, cin_p, cout).astype(jnp.bfloat16)
    return dict(w=w, bias=bias, k=k, pad=pad)


def make_basic_block(key, cin, cout, stride):
    k1, k2, k3 = jax.random.split(key, 3)
    blk = dict(stride=stride,
               c1=make_conv(k1, cin, cout, 3, 1),
               c2=make_conv(k2, cout, cout, 3, 1),
               shortcut=None)
    if stride != 1 or cin != cout:               # BasicBlock.expansion == 1
        blk["shortcut"] = make_conv(k3, cin, cout, 1, 0)
    return blk


def make_resnet_params(key, num_block=(1, 1, 1, 1), nc=10):
    params = dict(
        nc=nc,
        stem=make_conv(jax.random.fold_in(key, 0), 3, 64, 7, 3, cin_pad=8),
    )
    in_c = 64
    widths = (64, 128, 256, 512)
    first_strides = (1, 2, 2, 2)
    stages, ki = [], 1
    for wdt, nb, s in zip(widths, num_block, first_strides):
        blocks = []
        for st in [s] + [1] * (nb - 1):
            blocks.append(make_basic_block(jax.random.fold_in(key, ki),
                                           in_c, wdt, st))
            ki += 1
            in_c = wdt
        stages.append(blocks)
    params["stages"] = stages
    ncp = 128                                    # lane-dense FC head
    fc_w = 0.01 * jax.random.normal(jax.random.fold_in(key, 1000),
                                    (512, nc), jnp.float32)
    params["fc_w"] = jnp.pad(fc_w, ((0, 0), (0, ncp - nc)))
    params["fc_b"] = jnp.zeros((1, ncp), jnp.float32)
    return params


# ----------------------------------------------------------------------------
# Forward pass
# ----------------------------------------------------------------------------
def basic_block_forward(x, p):
    stride = p["stride"]
    if p["shortcut"] is None:
        sc = x
    else:
        sc = conv_bn_act(x, p["shortcut"], stride, relu=False)
    h = conv_bn_act(x, p["c1"], stride, relu=True)
    # second conv: BN bias + residual add + ReLU fused into the matmul epilogue
    return conv_bn_act(h, p["c2"], 1, relu=True, residual=sc)


def resnet_forward(params, x_nchw):
    x = jnp.transpose(x_nchw, (0, 2, 3, 1)).astype(jnp.bfloat16)   # NCHW->NHWC
    x = jnp.pad(x, ((0, 0), (0, 0), (0, 0), (0, 8 - x.shape[-1])))  # cin 3->8
    # stem conv emits f32 so the maxpool kernel's sublane shifts use f32 layout
    x = conv_bn_act(x, params["stem"], 2, relu=True, out_dtype=jnp.float32)
    x = maxpool_3x3_s2_p1(x, out_dtype=jnp.bfloat16)
    for stage in params["stages"]:
        for blk in stage:
            x = basic_block_forward(x, blk)
    logits = avgpool_fc(x, params["fc_w"], params["fc_b"])
    return logits[:, :params["nc"]]


if __name__ == "__main__":
    key = jax.random.PRNGKey(0)
    params = make_resnet_params(jax.random.fold_in(key, 1),
                                num_block=(1, 1, 1, 1), nc=10)
    x = jax.random.normal(jax.random.fold_in(key, 2), (2, 3, 32, 32),
                          jnp.float32)

    # Params bound via closure so k / pad / stride stay static Python ints.
    fwd = jax.jit(functools.partial(resnet_forward, params))
    out = jax.block_until_ready(fwd(x))

    assert out.shape == (2, 10), out.shape
    assert bool(jnp.all(jnp.isfinite(out)))
    print("KERNEL_OK")
</pallas_src>

<mosaic_0001>
module attributes {stable_mosaic.version = 11 : i64} {
  func.func @_conv_mm_kernel(%arg0: i32, %arg1: i32, %arg2: i32, %arg3: memref<1x256x8xbf16, #tpu.memory_space<vmem>>, %arg4: memref<1x8x64xbf16, #tpu.memory_space<vmem>>, %arg5: memref<1x64xf32, #tpu.memory_space<vmem>>, %arg6: memref<256x64xf32, #tpu.memory_space<vmem>>, %arg7: memref<256x64xf32, #tpu.memory_space<vmem>>) attributes {dimension_semantics = [#tpu.dimension_semantics<parallel>, #tpu.dimension_semantics<parallel>, #tpu.dimension_semantics<arbitrary>], iteration_bounds = array<i64: 2, 1, 49>, scalar_prefetch = 0 : i64, scratch_operands = 1 : i64, tpu.core_type = #tpu.core_type<tc>, window_params = [{transform_indices = @transform_0, window_bounds = array<i64: 1, 256, 8>}, {transform_indices = @transform_1, window_bounds = array<i64: 1, 8, 64>}, {transform_indices = @transform_2, window_bounds = array<i64: 1, 64>}, {transform_indices = @transform_3, window_bounds = array<i64: 256, 64>}]} {
    %c0_i32 = arith.constant 0 : i32
    %0 = arith.cmpi eq, %arg2, %c0_i32 : i32
    %1 = arith.extui %0 : i1 to i32
    %c0_i32_0 = arith.constant 0 : i32
    %2 = arith.cmpi ne, %1, %c0_i32_0 : i32
    scf.if %2 {
      %cst_11 = arith.constant 0.000000e+00 : f32
      %14 = vector.broadcast %cst_11 : f32 to vector<256x64xf32>
      %c0_12 = arith.constant 0 : index
      %c0_13 = arith.constant 0 : index
      %15 = vector.load %arg7[%c0_12, %c0_13] : memref<256x64xf32, #tpu.memory_space<vmem>>, vector<256x64xf32>
      tpu.vector_store %arg7[%c0_12, %c0_13], %14 {strides = array<i32>} : memref<256x64xf32, #tpu.memory_space<vmem>>, vector<256x64xf32>,
    } else {
    }
    %c0 = arith.constant 0 : index
    %c0_1 = arith.constant 0 : index
    %3 = vector.load %arg7[%c0, %c0_1] : memref<256x64xf32, #tpu.memory_space<vmem>>, vector<256x64xf32>
    %c0_2 = arith.constant 0 : index
    %c0_3 = arith.constant 0 : index
    %c0_4 = arith.constant 0 : index
    %4 = vector.load %arg3[%c0_2, %c0_3, %c0_4] : memref<1x256x8xbf16, #tpu.memory_space<vmem>>, vector<1x256x8xbf16>
    %5 = vector.shape_cast %4 : vector<1x256x8xbf16> to vector<256x8xbf16>
    %c0_5 = arith.constant 0 : index
    %c0_6 = arith.constant 0 : index
    %c0_7 = arith.constant 0 : index
    %6 = vector.load %arg4[%c0_5, %c0_6, %c0_7] : memref<1x8x64xbf16, #tpu.memory_space<vmem>>, vector<1x8x64xbf16>
    %7 = vector.shape_cast %6 : vector<1x8x64xbf16> to vector<8x64xbf16>
    %cst = arith.constant dense<0.000000e+00> : vector<256x64xf32>
    %8 = tpu.matmul %5, %7, %cst {dimension_numbers = #tpu.dot_dimension_numbers<[1], [0], [0], [1], [0, 0, 1, 1], [], []>} : vector<256x8xbf16>, vector<8x64xbf16>, vector<256x64xf32> -> vector<256x64xf32>
    %9 = arith.addf %3, %8 : vector<256x64xf32>
    %c0_8 = arith.constant 0 : index
    %c0_9 = arith.constant 0 : index
    %10 = vector.load %arg7[%c0_8, %c0_9] : memref<256x64xf32, #tpu.memory_space<vmem>>, vector<256x64xf32>
    tpu.vector_store %arg7[%c0_8, %c0_9], %9 {strides = array<i32>} : memref<256x64xf32, #tpu.memory_space<vmem>>, vector<256x64xf32>,
    %c48_i32 = arith.constant 48 : i32
    %11 = arith.cmpi eq, %arg2, %c48_i32 : i32
    %12 = arith.extui %11 : i1 to i32
    %c0_i32_10 = arith.constant 0 : i32
    %13 = arith.cmpi ne, %12, %c0_i32_10 : i32
    scf.if %13 {
      %c0_11 = arith.constant 0 : index
      %c0_12 = arith.constant 0 : index
      %14 = vector.load %arg7[%c0_11, %c0_12] : memref<256x64xf32, #tpu.memory_space<vmem>>, vector<256x64xf32>
      %c0_13 = arith.constant 0 : index
      %c0_14 = arith.constant 0 : index
      %15 = vector.load %arg5[%c0_13, %c0_14] : memref<1x64xf32, #tpu.memory_space<vmem>>, vector<1x64xf32>
      %16 = vector.broadcast %15 : vector<1x64xf32> to vector<256x64xf32>
      %17 = arith.addf %14, %16 : vector<256x64xf32>
      %cst_15 = arith.constant 0.000000e+00 : f32
      %18 = vector.broadcast %cst_15 : f32 to vector<256x64xf32>
      %19 = arith.maximumf %17, %18 : vector<256x64xf32>
      %c0_16 = arith.constant 0 : index
      %c0_17 = arith.constant 0 : index
      %20 = vector.load %arg6[%c0_16, %c0_17] : memref<256x64xf32, #tpu.memory_space<vmem>>, vector<256x64xf32>
      tpu.vector_store %arg6[%c0_16, %c0_17], %19 {strides = array<i32>} : memref<256x64xf32, #tpu.memory_space<vmem>>, vector<256x64xf32>,
    } else {
    }
    return
  }
  func.func @transform_0(%arg0: i32, %arg1: i32, %arg2: i32) -> (i32, i32, i32) {
    %c0_i32 = arith.constant 0 : i32
    %c0_i32_0 = arith.constant 0 : i32
    return %arg2, %arg0, %c0_i32 : i32, i32, i32
  }
  func.func @transform_1(%arg0: i32, %arg1: i32, %arg2: i32) -> (i32, i32, i32) {
    %c0_i32 = arith.constant 0 : i32
    %c0_i32_0 = arith.constant 0 : i32
    return %arg2, %c0_i32, %arg1 : i32, i32, i32
  }
  func.func @transform_2(%arg0: i32, %arg1: i32, %arg2: i32) -> (i32, i32) {
    %c0_i32 = arith.constant 0 : i32
    %c0_i32_0 = arith.constant 0 : i32
    return %c0_i32, %arg1 : i32, i32
  }
  func.func @transform_3(%arg0: i32, %arg1: i32, %arg2: i32) -> (i32, i32) {
    %c0_i32 = arith.constant 0 : i32
    return %arg0, %arg1 : i32, i32
  }
}

module attributes {stable_mosaic.version = 11 : i64} {
  func.func @_maxpool_kernel(%arg0: i32, %arg1: memref<2x9x9x64xf32, #tpu.memory_space<vmem>>, %arg2: memref<2x9x9x64xf32, #tpu.memory_space<vmem>>, %arg3: memref<2x9x9x64xf32, #tpu.memory_space<vmem>>, %arg4: memref<2x9x9x64xf32, #tpu.memory_space<vmem>>, %arg5: memref<2x8x8x64xbf16, #tpu.memory_space<vmem>>) attributes {dimension_semantics = [#tpu.dimension_semantics<arbitrary>], iteration_bounds = array<i64: 1>, scalar_prefetch = 0 : i64, scratch_operands = 0 : i64, tpu.core_type = #tpu.core_type<tc>, window_params = [{pipeline_mode = #tpu.pipeline_mode<synchronous>, transform_indices = @transform_0, window_bounds = array<i64: 2, 9, 9, 64>}, {pipeline_mode = #tpu.pipeline_mode<synchronous>, transform_indices = @transform_1, window_bounds = array<i64: 2, 9, 9, 64>}, {pipeline_mode = #tpu.pipeline_mode<synchronous>, transform_indices = @transform_2, window_bounds = array<i64: 2, 9, 9, 64>}, {pipeline_mode = #tpu.pipeline_mode<synchronous>, transform_indices = @transform_3, window_bounds = array<i64: 2, 9, 9, 64>}, {pipeline_mode = #tpu.pipeline_mode<synchronous>, transform_indices = @transform_4, window_bounds = array<i64: 2, 8, 8, 64>}]} {
    %c0 = arith.constant 0 : index
    %c0_0 = arith.constant 0 : index
    %c0_1 = arith.constant 0 : index
    %c0_2 = arith.constant 0 : index
    %0 = vector.load %arg1[%c0, %c0_0, %c0_1, %c0_2] : memref<2x9x9x64xf32, #tpu.memory_space<vmem>>, vector<2x9x9x64xf32>
    %c0_3 = arith.constant 0 : index
    %c0_4 = arith.constant 0 : index
    %c0_5 = arith.constant 0 : index
    %c0_6 = arith.constant 0 : index
    %1 = vector.load %arg2[%c0_3, %c0_4, %c0_5, %c0_6] : memref<2x9x9x64xf32, #tpu.memory_space<vmem>>, vector<2x9x9x64xf32>
    %c0_7 = arith.constant 0 : index
    %c0_8 = arith.constant 0 : index
    %c0_9 = arith.constant 0 : index
    %c0_10 = arith.constant 0 : index
    %2 = vector.load %arg3[%c0_7, %c0_8, %c0_9, %c0_10] : memref<2x9x9x64xf32, #tpu.memory_space<vmem>>, vector<2x9x9x64xf32>
    %c0_11 = arith.constant 0 : index
    %c0_12 = arith.constant 0 : index
    %c0_13 = arith.constant 0 : index
    %c0_14 = arith.constant 0 : index
    %3 = vector.load %arg4[%c0_11, %c0_12, %c0_13, %c0_14] : memref<2x9x9x64xf32, #tpu.memory_space<vmem>>, vector<2x9x9x64xf32>
    %4 = vector.extract_strided_slice %0 {offsets = [0, 0, 0, 0], sizes = [2, 8, 8, 64], strides = [1, 1, 1, 1]} : vector<2x9x9x64xf32> to vector<2x8x8x64xf32>
    %5 = vector.extract_strided_slice %0 {offsets = [0, 0, 1, 0], sizes = [2, 8, 8, 64], strides = [1, 1, 1, 1]} : vector<2x9x9x64xf32> to vector<2x8x8x64xf32>
    %6 = arith.maximumf %4, %5 : vector<2x8x8x64xf32>
    %7 = vector.extract_strided_slice %0 {offsets = [0, 1, 0, 0], sizes = [2, 8, 8, 64], strides = [1, 1, 1, 1]} : vector<2x9x9x64xf32> to vector<2x8x8x64xf32>
    %8 = arith.maximumf %6, %7 : vector<2x8x8x64xf32>
    %9 = vector.extract_strided_slice %0 {offsets = [0, 1, 1, 0], sizes = [2, 8, 8, 64], strides = [1, 1, 1, 1]} : vector<2x9x9x64xf32> to vector<2x8x8x64xf32>
    %10 = arith.maximumf %8, %9 : vector<2x8x8x64xf32>
    %11 = vector.extract_strided_slice %1 {offsets = [0, 0, 0, 0], sizes = [2, 8, 8, 64], strides = [1, 1, 1, 1]} : vector<2x9x9x64xf32> to vector<2x8x8x64xf32>
    %12 = arith.maximumf %10, %11 : vector<2x8x8x64xf32>
    %13 = vector.extract_strided_slice %1 {offsets = [0, 1, 0, 0], sizes = [2, 8, 8, 64], strides = [1, 1, 1, 1]} : vector<2x9x9x64xf32> to vector<2x8x8x64xf32>
    %14 = arith.maximumf %12, %13 : vector<2x8x8x64xf32>
    %15 = vector.extract_strided_slice %2 {offsets = [0, 0, 0, 0], sizes = [2, 8, 8, 64], strides = [1, 1, 1, 1]} : vector<2x9x9x64xf32> to vector<2x8x8x64xf32>
    %16 = arith.maximumf %14, %15 : vector<2x8x8x64xf32>
    %17 = vector.extract_strided_slice %2 {offsets = [0, 0, 1, 0], sizes = [2, 8, 8, 64], strides = [1, 1, 1, 1]} : vector<2x9x9x64xf32> to vector<2x8x8x64xf32>
    %18 = arith.maximumf %16, %17 : vector<2x8x8x64xf32>
    %19 = vector.extract_strided_slice %3 {offsets = [0, 0, 0, 0], sizes = [2, 8, 8, 64], strides = [1, 1, 1, 1]} : vector<2x9x9x64xf32> to vector<2x8x8x64xf32>
    %20 = arith.maximumf %18, %19 : vector<2x8x8x64xf32>
    %21 = arith.truncf %20 : vector<2x8x8x64xf32> to vector<2x8x8x64xbf16>
    %c0_15 = arith.constant 0 : index
    %c0_16 = arith.constant 0 : index
    %c0_17 = arith.constant 0 : index
    %c0_18 = arith.constant 0 : index
    %22 = vector.load %arg5[%c0_15, %c0_16, %c0_17, %c0_18] : memref<2x8x8x64xbf16, #tpu.memory_space<vmem>>, vector<2x8x8x64xbf16>
    tpu.vector_store %arg5[%c0_15, %c0_16, %c0_17, %c0_18], %21 {strides = array<i32>} : memref<2x8x8x64xbf16, #tpu.memory_space<vmem>>, vector<2x8x8x64xbf16>,
    return
  }
  func.func @transform_0(%arg0: i32) -> (i32, i32, i32, i32) {
    %c0_i32 = arith.constant 0 : i32
    %c0_i32_0 = arith.constant 0 : i32
    %c0_i32_1 = arith.constant 0 : i32
    %c0_i32_2 = arith.constant 0 : i32
    %c0_i32_3 = arith.constant 0 : i32
    return %c0_i32, %c0_i32_0, %c0_i32_1, %c0_i32_2 : i32, i32, i32, i32
  }
  func.func @transform_1(%arg0: i32) -> (i32, i32, i32, i32) {
    %c0_i32 = arith.constant 0 : i32
    %c0_i32_0 = arith.constant 0 : i32
    %c0_i32_1 = arith.constant 0 : i32
    %c0_i32_2 = arith.constant 0 : i32
    %c0_i32_3 = arith.constant 0 : i32
    return %c0_i32, %c0_i32_0, %c0_i32_1, %c0_i32_2 : i32, i32, i32, i32
  }
  func.func @transform_2(%arg0: i32) -> (i32, i32, i32, i32) {
    %c0_i32 = arith.constant 0 : i32
    %c0_i32_0 = arith.constant 0 : i32
    %c0_i32_1 = arith.constant 0 : i32
    %c0_i32_2 = arith.constant 0 : i32
    %c0_i32_3 = arith.constant 0 : i32
    return %c0_i32, %c0_i32_0, %c0_i32_1, %c0_i32_2 : i32, i32, i32, i32
  }
  func.func @transform_3(%arg0: i32) -> (i32, i32, i32, i32) {
    %c0_i32 = arith.constant 0 : i32
    %c0_i32_0 = arith.constant 0 : i32
    %c0_i32_1 = arith.constant 0 : i32
    %c0_i32_2 = arith.constant 0 : i32
    %c0_i32_3 = arith.constant 0 : i32
    return %c0_i32, %c0_i32_0, %c0_i32_1, %c0_i32_2 : i32, i32, i32, i32
  }
  func.func @transform_4(%arg0: i32) -> (i32, i32, i32, i32) {
    %c0_i32 = arith.constant 0 : i32
    %c0_i32_0 = arith.constant 0 : i32
    %c0_i32_1 = arith.constant 0 : i32
    %c0_i32_2 = arith.constant 0 : i32
    %c0_i32_3 = arith.constant 0 : i32
    return %c0_i32, %c0_i32_0, %c0_i32_1, %c0_i32_2 : i32, i32, i32, i32
  }
}

module attributes {stable_mosaic.version = 11 : i64} {
  func.func @_conv_mm_kernel(%arg0: i32, %arg1: i32, %arg2: i32, %arg3: memref<1x128x64xbf16, #tpu.memory_space<vmem>>, %arg4: memref<1x64x64xbf16, #tpu.memory_space<vmem>>, %arg5: memref<1x64xf32, #tpu.memory_space<vmem>>, %arg6: memref<128x64xbf16, #tpu.memory_space<vmem>>, %arg7: memref<128x64xf32, #tpu.memory_space<vmem>>) attributes {dimension_semantics = [#tpu.dimension_semantics<parallel>, #tpu.dimension_semantics<parallel>, #tpu.dimension_semantics<arbitrary>], iteration_bounds = array<i64: 1, 1, 9>, scalar_prefetch = 0 : i64, scratch_operands = 1 : i64, tpu.core_type = #tpu.core_type<tc>, window_params = [{transform_indices = @transform_0, window_bounds = array<i64: 1, 128, 64>}, {transform_indices = @transform_1, window_bounds = array<i64: 1, 64, 64>}, {transform_indices = @transform_2, window_bounds = array<i64: 1, 64>}, {transform_indices = @transform_3, window_bounds = array<i64: 128, 64>}]} {
    %c0_i32 = arith.constant 0 : i32
    %0 = arith.cmpi eq, %arg2, %c0_i32 : i32
    %1 = arith.extui %0 : i1 to i32
    %c0_i32_0 = arith.constant 0 : i32
    %2 = arith.cmpi ne, %1, %c0_i32_0 : i32
    scf.if %2 {
      %cst_11 = arith.constant 0.000000e+00 : f32
      %14 = vector.broadcast %cst_11 : f32 to vector<128x64xf32>
      %c0_12 = arith.constant 0 : index
      %c0_13 = arith.constant 0 : index
      %15 = vector.load %arg7[%c0_12, %c0_13] : memref<128x64xf32, #tpu.memory_space<vmem>>, vector<128x64xf32>
      tpu.vector_store %arg7[%c0_12, %c0_13], %14 {strides = array<i32>} : memref<128x64xf32, #tpu.memory_space<vmem>>, vector<128x64xf32>,
    } else {
    }
    %c0 = arith.constant 0 : index
    %c0_1 = arith.constant 0 : index
    %3 = vector.load %arg7[%c0, %c0_1] : memref<128x64xf32, #tpu.memory_space<vmem>>, vector<128x64xf32>
    %c0_2 = arith.constant 0 : index
    %c0_3 = arith.constant 0 : index
    %c0_4 = arith.constant 0 : index
    %4 = vector.load %arg3[%c0_2, %c0_3, %c0_4] : memref<1x128x64xbf16, #tpu.memory_space<vmem>>, vector<1x128x64xbf16>
    %5 = vector.shape_cast %4 : vector<1x128x64xbf16> to vector<128x64xbf16>
    %c0_5 = arith.constant 0 : index
    %c0_6 = arith.constant 0 : index
    %c0_7 = arith.constant 0 : index
    %6 = vector.load %arg4[%c0_5, %c0_6, %c0_7] : memref<1x64x64xbf16, #tpu.memory_space<vmem>>, vector<1x64x64xbf16>
    %7 = vector.shape_cast %6 : vector<1x64x64xbf16> to vector<64x64xbf16>
    %cst = arith.constant dense<0.000000e+00> : vector<128x64xf32>
    %8 = tpu.matmul %5, %7, %cst {dimension_numbers = #tpu.dot_dimension_numbers<[1], [0], [0], [1], [0, 0, 1, 1], [], []>} : vector<128x64xbf16>, vector<64x64xbf16>, vector<128x64xf32> -> vector<128x64xf32>
    %9 = arith.addf %3, %8 : vector<128x64xf32>
    %c0_8 = arith.constant 0 : index
    %c0_9 = arith.constant 0 : index
    %10 = vector.load %arg7[%c0_8, %c0_9] : memref<128x64xf32, #tpu.memory_space<vmem>>, vector<128x64xf32>
    tpu.vector_store %arg7[%c0_8, %c0_9], %9 {strides = array<i32>} : memref<128x64xf32, #tpu.memory_space<vmem>>, vector<128x64xf32>,
    %c8_i32 = arith.constant 8 : i32
    %11 = arith.cmpi eq, %arg2, %c8_i32 : i32
    %12 = arith.extui %11 : i1 to i32
    %c0_i32_10 = arith.constant 0 : i32
    %13 = arith.cmpi ne, %12, %c0_i32_10 : i32
    scf.if %13 {
      %c0_11 = arith.constant 0 : index
      %c0_12 = arith.constant 0 : index
      %14 = vector.load %arg7[%c0_11, %c0_12] : memref<128x64xf32, #tpu.memory_space<vmem>>, vector<128x64xf32>
      %c0_13 = arith.constant 0 : index
      %c0_14 = arith.constant 0 : index
      %15 = vector.load %arg5[%c0_13, %c0_14] : memref<1x64xf32, #tpu.memory_space<vmem>>, vector<1x64xf32>
      %16 = vector.broadcast %15 : vector<1x64xf32> to vector<128x64xf32>
      %17 = arith.addf %14, %16 : vector<128x64xf32>
      %cst_15 = arith.constant 0.000000e+00 : f32
      %18 = vector.broadcast %cst_15 : f32 to vector<128x64xf32>
      %19 = arith.maximumf %17, %18 : vector<128x64xf32>
      %20 = arith.truncf %19 : vector<128x64xf32> to vector<128x64xbf16>
      %c0_16 = arith.constant 0 : index
      %c0_17 = arith.constant 0 : index
      %21 = vector.load %arg6[%c0_16, %c0_17] : memref<128x64xbf16, #tpu.memory_space<vmem>>, vector<128x64xbf16>
      tpu.vector_store %arg6[%c0_16, %c0_17], %20 {strides = array<i32>} : memref<128x64xbf16, #tpu.memory_space<vmem>>, vector<128x64xbf16>,
    } else {
    }
    return
  }
  func.func @transform_0(%arg0: i32, %arg1: i32, %arg2: i32) -> (i32, i32, i32) {
    %c0_i32 = arith.constant 0 : i32
    %c0_i32_0 = arith.constant 0 : i32
    return %arg2, %arg0, %c0_i32 : i32, i32, i32
  }
  func.func @transform_1(%arg0: i32, %arg1: i32, %arg2: i32) -> (i32, i32, i32) {
    %c0_i32 = arith.constant 0 : i32
    %c0_i32_0 = arith.constant 0 : i32
    return %arg2, %c0_i32, %arg1 : i32, i32, i32
  }
  func.func @transform_2(%arg0: i32, %arg1: i32, %arg2: i32) -> (i32, i32) {
    %c0_i32 = arith.constant 0 : i32
    %c0_i32_0 = arith.constant 0 : i32
    return %c0_i32, %arg1 : i32, i32
  }
  func.func @transform_3(%arg0: i32, %arg1: i32, %arg2: i32) -> (i32, i32) {
    %c0_i32 = arith.constant 0 : i32
    return %arg0, %arg1 : i32, i32
  }
}

module attributes {stable_mosaic.version = 11 : i64} {
  func.func @_conv_mm_kernel(%arg0: i32, %arg1: i32, %arg2: i32, %arg3: memref<1x128x64xbf16, #tpu.memory_space<vmem>>, %arg4: memref<1x64x64xbf16, #tpu.memory_space<vmem>>, %arg5: memref<1x64xf32, #tpu.memory_space<vmem>>, %arg6: memref<128x64xbf16, #tpu.memory_space<vmem>>, %arg7: memref<128x64xbf16, #tpu.memory_space<vmem>>, %arg8: memref<128x64xf32, #tpu.memory_space<vmem>>) attributes {dimension_semantics = [#tpu.dimension_semantics<parallel>, #tpu.dimension_semantics<parallel>, #tpu.dimension_semantics<arbitrary>], iteration_bounds = array<i64: 1, 1, 9>, scalar_prefetch = 0 : i64, scratch_operands = 1 : i64, tpu.core_type = #tpu.core_type<tc>, window_params = [{transform_indices = @transform_0, window_bounds = array<i64: 1, 128, 64>}, {transform_indices = @transform_1, window_bounds = array<i64: 1, 64, 64>}, {transform_indices = @transform_2, window_bounds = array<i64: 1, 64>}, {transform_indices = @transform_3, window_bounds = array<i64: 128, 64>}, {transform_indices = @transform_4, window_bounds = array<i64: 128, 64>}]} {
    %c0_i32 = arith.constant 0 : i32
    %0 = arith.cmpi eq, %arg2, %c0_i32 : i32
    %1 = arith.extui %0 : i1 to i32
    %c0_i32_0 = arith.constant 0 : i32
    %2 = arith.cmpi ne, %1, %c0_i32_0 : i32
    scf.if %2 {
      %cst_11 = arith.constant 0.000000e+00 : f32
      %14 = vector.broadcast %cst_11 : f32 to vector<128x64xf32>
      %c0_12 = arith.constant 0 : index
      %c0_13 = arith.constant 0 : index
      %15 = vector.load %arg8[%c0_12, %c0_13] : memref<128x64xf32, #tpu.memory_space<vmem>>, vector<128x64xf32>
      tpu.vector_store %arg8[%c0_12, %c0_13], %14 {strides = array<i32>} : memref<128x64xf32, #tpu.memory_space<vmem>>, vector<128x64xf32>,
    } else {
    }
    %c0 = arith.constant 0 : index
    %c0_1 = arith.constant 0 : index
    %3 = vector.load %arg8[%c0, %c0_1] : memref<128x64xf32, #tpu.memory_space<vmem>>, vector<128x64xf32>
    %c0_2 = arith.constant 0 : index
    %c0_3 = arith.constant 0 : index
    %c0_4 = arith.constant 0 : index
    %4 = vector.load %arg3[%c0_2, %c0_3, %c0_4] : memref<1x128x64xbf16, #tpu.memory_space<vmem>>, vector<1x128x64xbf16>
    %5 = vector.shape_cast %4 : vector<1x128x64xbf16> to vector<128x64xbf16>
    %c0_5 = arith.constant 0 : index
    %c0_6 = arith.constant 0 : index
    %c0_7 = arith.constant 0 : index
    %6 = vector.load %arg4[%c0_5, %c0_6, %c0_7] : memref<1x64x64xbf16, #tpu.memory_space<vmem>>, vector<1x64x64xbf16>
    %7 = vector.shape_cast %6 : vector<1x64x64xbf16> to vector<64x64xbf16>
    %cst = arith.constant dense<0.000000e+00> : vector<128x64xf32>
    %8 = tpu.matmul %5, %7, %cst {dimension_numbers = #tpu.dot_dimension_numbers<[1], [0], [0], [1], [0, 0, 1, 1], [], []>} : vector<128x64xbf16>, vector<64x64xbf16>, vector<128x64xf32> -> vector<128x64xf32>
    %9 = arith.addf %3, %8 : vector<128x64xf32>
    %c0_8 = arith.constant 0 : index
    %c0_9 = arith.constant 0 : index
    %10 = vector.load %arg8[%c0_8, %c0_9] : memref<128x64xf32, #tpu.memory_space<vmem>>, vector<128x64xf32>
    tpu.vector_store %arg8[%c0_8, %c0_9], %9 {strides = array<i32>} : memref<128x64xf32, #tpu.memory_space<vmem>>, vector<128x64xf32>,
    %c8_i32 = arith.constant 8 : i32
    %11 = arith.cmpi eq, %arg2, %c8_i32 : i32
    %12 = arith.extui %11 : i1 to i32
    %c0_i32_10 = arith.constant 0 : i32
    %13 = arith.cmpi ne, %12, %c0_i32_10 : i32
    scf.if %13 {
      %c0_11 = arith.constant 0 : index
      %c0_12 = arith.constant 0 : index
      %14 = vector.load %arg8[%c0_11, %c0_12] : memref<128x64xf32, #tpu.memory_space<vmem>>, vector<128x64xf32>
      %c0_13 = arith.constant 0 : index
      %c0_14 = arith.constant 0 : index
      %15 = vector.load %arg5[%c0_13, %c0_14] : memref<1x64xf32, #tpu.memory_space<vmem>>, vector<1x64xf32>
      %16 = vector.broadcast %15 : vector<1x64xf32> to vector<128x64xf32>
      %17 = arith.addf %14, %16 : vector<128x64xf32>
      %c0_15 = arith.constant 0 : index
      %c0_16 = arith.constant 0 : index
      %18 = vector.load %arg6[%c0_15, %c0_16] : memref<128x64xbf16, #tpu.memory_space<vmem>>, vector<128x64xbf16>
      %19 = arith.extf %18 : vector<128x64xbf16> to vector<128x64xf32>
      %20 = arith.addf %17, %19 : vector<128x64xf32>
      %cst_17 = arith.constant 0.000000e+00 : f32
      %21 = vector.broadcast %cst_17 : f32 to vector<128x64xf32>
      %22 = arith.maximumf %20, %21 : vector<128x64xf32>
      %23 = arith.truncf %22 : vector<128x64xf32> to vector<128x64xbf16>
      %c0_18 = arith.constant 0 : index
      %c0_19 = arith.constant 0 : index
      %24 = vector.load %arg7[%c0_18, %c0_19] : memref<128x64xbf16, #tpu.memory_space<vmem>>, vector<128x64xbf16>
      tpu.vector_store %arg7[%c0_18, %c0_19], %23 {strides = array<i32>} : memref<128x64xbf16, #tpu.memory_space<vmem>>, vector<128x64xbf16>,
    } else {
    }
    return
  }
  func.func @transform_0(%arg0: i32, %arg1: i32, %arg2: i32) -> (i32, i32, i32) {
    %c0_i32 = arith.constant 0 : i32
    %c0_i32_0 = arith.constant 0 : i32
    return %arg2, %arg0, %c0_i32 : i32, i32, i32
  }
  func.func @transform_1(%arg0: i32, %arg1: i32, %arg2: i32) -> (i32, i32, i32) {
    %c0_i32 = arith.constant 0 : i32
    %c0_i32_0 = arith.constant 0 : i32
    return %arg2, %c0_i32, %arg1 : i32, i32, i32
  }
  func.func @transform_2(%arg0: i32, %arg1: i32, %arg2: i32) -> (i32, i32) {
    %c0_i32 = arith.constant 0 : i32
    %c0_i32_0 = arith.constant 0 : i32
    return %c0_i32, %arg1 : i32, i32
  }
  func.func @transform_3(%arg0: i32, %arg1: i32, %arg2: i32) -> (i32, i32) {
    %c0_i32 = arith.constant 0 : i32
    return %arg0, %arg1 : i32, i32
  }
  func.func @transform_4(%arg0: i32, %arg1: i32, %arg2: i32) -> (i32, i32) {
    %c0_i32 = arith.constant 0 : i32
    return %arg0, %arg1 : i32, i32
  }
}

module attributes {stable_mosaic.version = 11 : i64} {
  func.func @_conv_mm_kernel(%arg0: i32, %arg1: i32, %arg2: i32, %arg3: memref<1x32x64xbf16, #tpu.memory_space<vmem>>, %arg4: memref<1x64x128xbf16, #tpu.memory_space<vmem>>, %arg5: memref<1x128xf32, #tpu.memory_space<vmem>>, %arg6: memref<32x128xbf16, #tpu.memory_space<vmem>>, %arg7: memref<32x128xf32, #tpu.memory_space<vmem>>) attributes {dimension_semantics = [#tpu.dimension_semantics<parallel>, #tpu.dimension_semantics<parallel>, #tpu.dimension_semantics<arbitrary>], iteration_bounds = array<i64: 1, 1, 9>, scalar_prefetch = 0 : i64, scratch_operands = 1 : i64, tpu.core_type = #tpu.core_type<tc>, window_params = [{transform_indices = @transform_0, window_bounds = array<i64: 1, 32, 64>}, {transform_indices = @transform_1, window_bounds = array<i64: 1, 64, 128>}, {transform_indices = @transform_2, window_bounds = array<i64: 1, 128>}, {transform_indices = @transform_3, window_bounds = array<i64: 32, 128>}]} {
    %c0_i32 = arith.constant 0 : i32
    %0 = arith.cmpi eq, %arg2, %c0_i32 : i32
    %1 = arith.extui %0 : i1 to i32
    %c0_i32_0 = arith.constant 0 : i32
    %2 = arith.cmpi ne, %1, %c0_i32_0 : i32
    scf.if %2 {
      %cst_11 = arith.constant 0.000000e+00 : f32
      %14 = vector.broadcast %cst_11 : f32 to vector<32x128xf32>
      %c0_12 = arith.constant 0 : index
      %c0_13 = arith.constant 0 : index
      %15 = vector.load %arg7[%c0_12, %c0_13] : memref<32x128xf32, #tpu.memory_space<vmem>>, vector<32x128xf32>
      tpu.vector_store %arg7[%c0_12, %c0_13], %14 {strides = array<i32>} : memref<32x128xf32, #tpu.memory_space<vmem>>, vector<32x128xf32>,
    } else {
    }
    %c0 = arith.constant 0 : index
    %c0_1 = arith.constant 0 : index
    %3 = vector.load %arg7[%c0, %c0_1] : memref<32x128xf32, #tpu.memory_space<vmem>>, vector<32x128xf32>
    %c0_2 = arith.constant 0 : index
    %c0_3 = arith.constant 0 : index
    %c0_4 = arith.constant 0 : index
    %4 = vector.load %arg3[%c0_2, %c0_3, %c0_4] : memref<1x32x64xbf16, #tpu.memory_space<vmem>>, vector<1x32x64xbf16>
    %5 = vector.shape_cast %4 : vector<1x32x64xbf16> to vector<32x64xbf16>
    %c0_5 = arith.constant 0 : index
    %c0_6 = arith.constant 0 : index
    %c0_7 = arith.constant 0 : index
    %6 = vector.load %arg4[%c0_5, %c0_6, %c0_7] : memref<1x64x128xbf16, #tpu.memory_space<vmem>>, vector<1x64x128xbf16>
    %7 = vector.shape_cast %6 : vector<1x64x128xbf16> to vector<64x128xbf16>
    %cst = arith.constant dense<0.000000e+00> : vector<32x128xf32>
    %8 = tpu.matmul %5, %7, %cst {dimension_numbers = #tpu.dot_dimension_numbers<[1], [0], [0], [1], [0, 0, 1, 1], [], []>} : vector<32x64xbf16>, vector<64x128xbf16>, vector<32x128xf32> -> vector<32x128xf32>
    %9 = arith.addf %3, %8 : vector<32x128xf32>
    %c0_8 = arith.constant 0 : index
    %c0_9 = arith.constant 0 : index
    %10 = vector.load %arg7[%c0_8, %c0_9] : memref<32x128xf32, #tpu.memory_space<vmem>>, vector<32x128xf32>
    tpu.vector_store %arg7[%c0_8, %c0_9], %9 {strides = array<i32>} : memref<32x128xf32, #tpu.memory_space<vmem>>, vector<32x128xf32>,
    %c8_i32 = arith.constant 8 : i32
    %11 = arith.cmpi eq, %arg2, %c8_i32 : i32
    %12 = arith.extui %11 : i1 to i32
    %c0_i32_10 = arith.constant 0 : i32
    %13 = arith.cmpi ne, %12, %c0_i32_10 : i32
    scf.if %13 {
      %c0_11 = arith.constant 0 : index
      %c0_12 = arith.constant 0 : index
      %14 = vector.load %arg7[%c0_11, %c0_12] : memref<32x128xf32, #tpu.memory_space<vmem>>, vector<32x128xf32>
      %c0_13 = arith.constant 0 : index
      %c0_14 = arith.constant 0 : index
      %15 = vector.load %arg5[%c0_13, %c0_14] : memref<1x128xf32, #tpu.memory_space<vmem>>, vector<1x128xf32>
      %16 = vector.broadcast %15 : vector<1x128xf32> to vector<32x128xf32>
      %17 = arith.addf %14, %16 : vector<32x128xf32>
      %cst_15 = arith.constant 0.000000e+00 : f32
      %18 = vector.broadcast %cst_15 : f32 to vector<32x128xf32>
      %19 = arith.maximumf %17, %18 : vector<32x128xf32>
      %20 = arith.truncf %19 : vector<32x128xf32> to vector<32x128xbf16>
      %c0_16 = arith.constant 0 : index
      %c0_17 = arith.constant 0 : index
      %21 = vector.load %arg6[%c0_16, %c0_17] : memref<32x128xbf16, #tpu.memory_space<vmem>>, vector<32x128xbf16>
      tpu.vector_store %arg6[%c0_16, %c0_17], %20 {strides = array<i32>} : memref<32x128xbf16, #tpu.memory_space<vmem>>, vector<32x128xbf16>,
    } else {
    }
    return
  }
  func.func @transform_0(%arg0: i32, %arg1: i32, %arg2: i32) -> (i32, i32, i32) {
    %c0_i32 = arith.constant 0 : i32
    %c0_i32_0 = arith.constant 0 : i32
    return %arg2, %arg0, %c0_i32 : i32, i32, i32
  }
  func.func @transform_1(%arg0: i32, %arg1: i32, %arg2: i32) -> (i32, i32, i32) {
    %c0_i32 = arith.constant 0 : i32
    %c0_i32_0 = arith.constant 0 : i32
    return %arg2, %c0_i32, %arg1 : i32, i32, i32
  }
  func.func @transform_2(%arg0: i32, %arg1: i32, %arg2: i32) -> (i32, i32) {
    %c0_i32 = arith.constant 0 : i32
    %c0_i32_0 = arith.constant 0 : i32
    return %c0_i32, %arg1 : i32, i32
  }
  func.func @transform_3(%arg0: i32, %arg1: i32, %arg2: i32) -> (i32, i32) {
    %c0_i32 = arith.constant 0 : i32
    return %arg0, %arg1 : i32, i32
  }
}

module attributes {stable_mosaic.version = 11 : i64} {
  func.func @_conv_mm_kernel(%arg0: i32, %arg1: i32, %arg2: i32, %arg3: memref<1x32x128xbf16, #tpu.memory_space<vmem>>, %arg4: memref<1x128x128xbf16, #tpu.memory_space<vmem>>, %arg5: memref<1x128xf32, #tpu.memory_space<vmem>>, %arg6: memref<32x128xbf16, #tpu.memory_space<vmem>>, %arg7: memref<32x128xbf16, #tpu.memory_space<vmem>>, %arg8: memref<32x128xf32, #tpu.memory_space<vmem>>) attributes {dimension_semantics = [#tpu.dimension_semantics<parallel>, #tpu.dimension_semantics<parallel>, #tpu.dimension_semantics<arbitrary>], iteration_bounds = array<i64: 1, 1, 9>, scalar_prefetch = 0 : i64, scratch_operands = 1 : i64, tpu.core_type = #tpu.core_type<tc>, window_params = [{transform_indices = @transform_0, window_bounds = array<i64: 1, 32, 128>}, {transform_indices = @transform_1, window_bounds = array<i64: 1, 128, 128>}, {transform_indices = @transform_2, window_bounds = array<i64: 1, 128>}, {transform_indices = @transform_3, window_bounds = array<i64: 32, 128>}, {transform_indices = @transform_4, window_bounds = array<i64: 32, 128>}]} {
    %c0_i32 = arith.constant 0 : i32
    %0 = arith.cmpi eq, %arg2, %c0_i32 : i32
    %1 = arith.extui %0 : i1 to i32
    %c0_i32_0 = arith.constant 0 : i32
    %2 = arith.cmpi ne, %1, %c0_i32_0 : i32
    scf.if %2 {
      %cst_11 = arith.constant 0.000000e+00 : f32
      %14 = vector.broadcast %cst_11 : f32 to vector<32x128xf32>
      %c0_12 = arith.constant 0 : index
      %c0_13 = arith.constant 0 : index
      %15 = vector.load %arg8[%c0_12, %c0_13] : memref<32x128xf32, #tpu.memory_space<vmem>>, vector<32x128xf32>
      tpu.vector_store %arg8[%c0_12, %c0_13], %14 {strides = array<i32>} : memref<32x128xf32, #tpu.memory_space<vmem>>, vector<32x128xf32>,
    } else {
    }
    %c0 = arith.constant 0 : index
    %c0_1 = arith.constant 0 : index
    %3 = vector.load %arg8[%c0, %c0_1] : memref<32x128xf32, #tpu.memory_space<vmem>>, vector<32x128xf32>
    %c0_2 = arith.constant 0 : index
    %c0_3 = arith.constant 0 : index
    %c0_4 = arith.constant 0 : index
    %4 = vector.load %arg3[%c0_2, %c0_3, %c0_4] : memref<1x32x128xbf16, #tpu.memory_space<vmem>>, vector<1x32x128xbf16>
    %5 = vector.shape_cast %4 : vector<1x32x128xbf16> to vector<32x128xbf16>
    %c0_5 = arith.constant 0 : index
    %c0_6 = arith.constant 0 : index
    %c0_7 = arith.constant 0 : index
    %6 = vector.load %arg4[%c0_5, %c0_6, %c0_7] : memref<1x128x128xbf16, #tpu.memory_space<vmem>>, vector<1x128x128xbf16>
    %7 = vector.shape_cast %6 : vector<1x128x128xbf16> to vector<128x128xbf16>
    %cst = arith.constant dense<0.000000e+00> : vector<32x128xf32>
    %8 = tpu.matmul %5, %7, %cst {dimension_numbers = #tpu.dot_dimension_numbers<[1], [0], [0], [1], [0, 0, 1, 1], [], []>} : vector<32x128xbf16>, vector<128x128xbf16>, vector<32x128xf32> -> vector<32x128xf32>
    %9 = arith.addf %3, %8 : vector<32x128xf32>
    %c0_8 = arith.constant 0 : index
    %c0_9 = arith.constant 0 : index
    %10 = vector.load %arg8[%c0_8, %c0_9] : memref<32x128xf32, #tpu.memory_space<vmem>>, vector<32x128xf32>
    tpu.vector_store %arg8[%c0_8, %c0_9], %9 {strides = array<i32>} : memref<32x128xf32, #tpu.memory_space<vmem>>, vector<32x128xf32>,
    %c8_i32 = arith.constant 8 : i32
    %11 = arith.cmpi eq, %arg2, %c8_i32 : i32
    %12 = arith.extui %11 : i1 to i32
    %c0_i32_10 = arith.constant 0 : i32
    %13 = arith.cmpi ne, %12, %c0_i32_10 : i32
    scf.if %13 {
      %c0_11 = arith.constant 0 : index
      %c0_12 = arith.constant 0 : index
      %14 = vector.load %arg8[%c0_11, %c0_12] : memref<32x128xf32, #tpu.memory_space<vmem>>, vector<32x128xf32>
      %c0_13 = arith.constant 0 : index
      %c0_14 = arith.constant 0 : index
      %15 = vector.load %arg5[%c0_13, %c0_14] : memref<1x128xf32, #tpu.memory_space<vmem>>, vector<1x128xf32>
      %16 = vector.broadcast %15 : vector<1x128xf32> to vector<32x128xf32>
      %17 = arith.addf %14, %16 : vector<32x128xf32>
      %c0_15 = arith.constant 0 : index
      %c0_16 = arith.constant 0 : index
      %18 = vector.load %arg6[%c0_15, %c0_16] : memref<32x128xbf16, #tpu.memory_space<vmem>>, vector<32x128xbf16>
      %19 = arith.extf %18 : vector<32x128xbf16> to vector<32x128xf32>
      %20 = arith.addf %17, %19 : vector<32x128xf32>
      %cst_17 = arith.constant 0.000000e+00 : f32
      %21 = vector.broadcast %cst_17 : f32 to vector<32x128xf32>
      %22 = arith.maximumf %20, %21 : vector<32x128xf32>
      %23 = arith.truncf %22 : vector<32x128xf32> to vector<32x128xbf16>
      %c0_18 = arith.constant 0 : index
      %c0_19 = arith.constant 0 : index
      %24 = vector.load %arg7[%c0_18, %c0_19] : memref<32x128xbf16, #tpu.memory_space<vmem>>, vector<32x128xbf16>
      tpu.vector_store %arg7[%c0_18, %c0_19], %23 {strides = array<i32>} : memref<32x128xbf16, #tpu.memory_space<vmem>>, vector<32x128xbf16>,
    } else {
    }
    return
  }
  func.func @transform_0(%arg0: i32, %arg1: i32, %arg2: i32) -> (i32, i32, i32) {
    %c0_i32 = arith.constant 0 : i32
    %c0_i32_0 = arith.constant 0 : i32
    return %arg2, %arg0, %c0_i32 : i32, i32, i32
  }
  func.func @transform_1(%arg0: i32, %arg1: i32, %arg2: i32) -> (i32, i32, i32) {
    %c0_i32 = arith.constant 0 : i32
    %c0_i32_0 = arith.constant 0 : i32
    return %arg2, %c0_i32, %arg1 : i32, i32, i32
  }
  func.func @transform_2(%arg0: i32, %arg1: i32, %arg2: i32) -> (i32, i32) {
    %c0_i32 = arith.constant 0 : i32
    %c0_i32_0 = arith.constant 0 : i32
    return %c0_i32, %arg1 : i32, i32
  }
  func.func @transform_3(%arg0: i32, %arg1: i32, %arg2: i32) -> (i32, i32) {
    %c0_i32 = arith.constant 0 : i32
    return %arg0, %arg1 : i32, i32
  }
  func.func @transform_4(%arg0: i32, %arg1: i32, %arg2: i32) -> (i32, i32) {
    %c0_i32 = arith.constant 0 : i32
    return %arg0, %arg1 : i32, i32
  }
}

module attributes {stable_mosaic.version = 11 : i64} {
  func.func @_conv_mm_kernel(%arg0: i32, %arg1: i32, %arg2: i32, %arg3: memref<1x32x64xbf16, #tpu.memory_space<vmem>>, %arg4: memref<1x64x128xbf16, #tpu.memory_space<vmem>>, %arg5: memref<1x128xf32, #tpu.memory_space<vmem>>, %arg6: memref<32x128xbf16, #tpu.memory_space<vmem>>, %arg7: memref<32x128xf32, #tpu.memory_space<vmem>>) attributes {dimension_semantics = [#tpu.dimension_semantics<parallel>, #tpu.dimension_semantics<parallel>, #tpu.dimension_semantics<arbitrary>], iteration_bounds = array<i64: 1, 1, 1>, scalar_prefetch = 0 : i64, scratch_operands = 1 : i64, tpu.core_type = #tpu.core_type<tc>, window_params = [{transform_indices = @transform_0, window_bounds = array<i64: 1, 32, 64>}, {transform_indices = @transform_1, window_bounds = array<i64: 1, 64, 128>}, {transform_indices = @transform_2, window_bounds = array<i64: 1, 128>}, {transform_indices = @transform_3, window_bounds = array<i64: 32, 128>}]} {
    %c0_i32 = arith.constant 0 : i32
    %0 = arith.cmpi eq, %arg2, %c0_i32 : i32
    %1 = arith.extui %0 : i1 to i32
    %c0_i32_0 = arith.constant 0 : i32
    %2 = arith.cmpi ne, %1, %c0_i32_0 : i32
    scf.if %2 {
      %cst_12 = arith.constant 0.000000e+00 : f32
      %14 = vector.broadcast %cst_12 : f32 to vector<32x128xf32>
      %c0_13 = arith.constant 0 : index
      %c0_14 = arith.constant 0 : index
      %15 = vector.load %arg7[%c0_13, %c0_14] : memref<32x128xf32, #tpu.memory_space<vmem>>, vector<32x128xf32>
      tpu.vector_store %arg7[%c0_13, %c0_14], %14 {strides = array<i32>} : memref<32x128xf32, #tpu.memory_space<vmem>>, vector<32x128xf32>,
    } else {
    }
    %c0 = arith.constant 0 : index
    %c0_1 = arith.constant 0 : index
    %3 = vector.load %arg7[%c0, %c0_1] : memref<32x128xf32, #tpu.memory_space<vmem>>, vector<32x128xf32>
    %c0_2 = arith.constant 0 : index
    %c0_3 = arith.constant 0 : index
    %c0_4 = arith.constant 0 : index
    %4 = vector.load %arg3[%c0_2, %c0_3, %c0_4] : memref<1x32x64xbf16, #tpu.memory_space<vmem>>, vector<1x32x64xbf16>
    %5 = vector.shape_cast %4 : vector<1x32x64xbf16> to vector<32x64xbf16>
    %c0_5 = arith.constant 0 : index
    %c0_6 = arith.constant 0 : index
    %c0_7 = arith.constant 0 : index
    %6 = vector.load %arg4[%c0_5, %c0_6, %c0_7] : memref<1x64x128xbf16, #tpu.memory_space<vmem>>, vector<1x64x128xbf16>
    %7 = vector.shape_cast %6 : vector<1x64x128xbf16> to vector<64x128xbf16>
    %cst = arith.constant dense<0.000000e+00> : vector<32x128xf32>
    %8 = tpu.matmul %5, %7, %cst {dimension_numbers = #tpu.dot_dimension_numbers<[1], [0], [0], [1], [0, 0, 1, 1], [], []>} : vector<32x64xbf16>, vector<64x128xbf16>, vector<32x128xf32> -> vector<32x128xf32>
    %9 = arith.addf %3, %8 : vector<32x128xf32>
    %c0_8 = arith.constant 0 : index
    %c0_9 = arith.constant 0 : index
    %10 = vector.load %arg7[%c0_8, %c0_9] : memref<32x128xf32, #tpu.memory_space<vmem>>, vector<32x128xf32>
    tpu.vector_store %arg7[%c0_8, %c0_9], %9 {strides = array<i32>} : memref<32x128xf32, #tpu.memory_space<vmem>>, vector<32x128xf32>,
    %c0_i32_10 = arith.constant 0 : i32
    %11 = arith.cmpi eq, %arg2, %c0_i32_10 : i32
    %12 = arith.extui %11 : i1 to i32
    %c0_i32_11 = arith.constant 0 : i32
    %13 = arith.cmpi ne, %12, %c0_i32_11 : i32
    scf.if %13 {
      %c0_12 = arith.constant 0 : index
      %c0_13 = arith.constant 0 : index
      %14 = vector.load %arg7[%c0_12, %c0_13] : memref<32x128xf32, #tpu.memory_space<vmem>>, vector<32x128xf32>
      %c0_14 = arith.constant 0 : index
      %c0_15 = arith.constant 0 : index
      %15 = vector.load %arg5[%c0_14, %c0_15] : memref<1x128xf32, #tpu.memory_space<vmem>>, vector<1x128xf32>
      %16 = vector.broadcast %15 : vector<1x128xf32> to vector<32x128xf32>
      %17 = arith.addf %14, %16 : vector<32x128xf32>
      %18 = arith.truncf %17 : vector<32x128xf32> to vector<32x128xbf16>
      %c0_16 = arith.constant 0 : index
      %c0_17 = arith.constant 0 : index
      %19 = vector.load %arg6[%c0_16, %c0_17] : memref<32x128xbf16, #tpu.memory_space<vmem>>, vector<32x128xbf16>
      tpu.vector_store %arg6[%c0_16, %c0_17], %18 {strides = array<i32>} : memref<32x128xbf16, #tpu.memory_space<vmem>>, vector<32x128xbf16>,
    } else {
    }
    return
  }
  func.func @transform_0(%arg0: i32, %arg1: i32, %arg2: i32) -> (i32, i32, i32) {
    %c0_i32 = arith.constant 0 : i32
    %c0_i32_0 = arith.constant 0 : i32
    return %arg2, %arg0, %c0_i32 : i32, i32, i32
  }
  func.func @transform_1(%arg0: i32, %arg1: i32, %arg2: i32) -> (i32, i32, i32) {
    %c0_i32 = arith.constant 0 : i32
    %c0_i32_0 = arith.constant 0 : i32
    return %arg2, %c0_i32, %arg1 : i32, i32, i32
  }
  func.func @transform_2(%arg0: i32, %arg1: i32, %arg2: i32) -> (i32, i32) {
    %c0_i32 = arith.constant 0 : i32
    %c0_i32_0 = arith.constant 0 : i32
    return %c0_i32, %arg1 : i32, i32
  }
  func.func @transform_3(%arg0: i32, %arg1: i32, %arg2: i32) -> (i32, i32) {
    %c0_i32 = arith.constant 0 : i32
    return %arg0, %arg1 : i32, i32
  }
}

module attributes {stable_mosaic.version = 11 : i64} {
  func.func @_conv_mm_kernel(%arg0: i32, %arg1: i32, %arg2: i32, %arg3: memref<1x8x128xbf16, #tpu.memory_space<vmem>>, %arg4: memref<1x128x128xbf16, #tpu.memory_space<vmem>>, %arg5: memref<1x128xf32, #tpu.memory_space<vmem>>, %arg6: memref<8x128xbf16, #tpu.memory_space<vmem>>, %arg7: memref<8x128xf32, #tpu.memory_space<vmem>>) attributes {dimension_semantics = [#tpu.dimension_semantics<parallel>, #tpu.dimension_semantics<parallel>, #tpu.dimension_semantics<arbitrary>], iteration_bounds = array<i64: 1, 2, 9>, scalar_prefetch = 0 : i64, scratch_operands = 1 : i64, tpu.core_type = #tpu.core_type<tc>, window_params = [{transform_indices = @transform_0, window_bounds = array<i64: 1, 8, 128>}, {transform_indices = @transform_1, window_bounds = array<i64: 1, 128, 128>}, {transform_indices = @transform_2, window_bounds = array<i64: 1, 128>}, {transform_indices = @transform_3, window_bounds = array<i64: 8, 128>}]} {
    %c0_i32 = arith.constant 0 : i32
    %0 = arith.cmpi eq, %arg2, %c0_i32 : i32
    %1 = arith.extui %0 : i1 to i32
    %c0_i32_0 = arith.constant 0 : i32
    %2 = arith.cmpi ne, %1, %c0_i32_0 : i32
    scf.if %2 {
      %cst_11 = arith.constant 0.000000e+00 : f32
      %14 = vector.broadcast %cst_11 : f32 to vector<8x128xf32>
      %c0_12 = arith.constant 0 : index
      %c0_13 = arith.constant 0 : index
      %15 = vector.load %arg7[%c0_12, %c0_13] : memref<8x128xf32, #tpu.memory_space<vmem>>, vector<8x128xf32>
      tpu.vector_store %arg7[%c0_12, %c0_13], %14 {strides = array<i32>} : memref<8x128xf32, #tpu.memory_space<vmem>>, vector<8x128xf32>,
    } else {
    }
    %c0 = arith.constant 0 : index
    %c0_1 = arith.constant 0 : index
    %3 = vector.load %arg7[%c0, %c0_1] : memref<8x128xf32, #tpu.memory_space<vmem>>, vector<8x128xf32>
    %c0_2 = arith.constant 0 : index
    %c0_3 = arith.constant 0 : index
    %c0_4 = arith.constant 0 : index
    %4 = vector.load %arg3[%c0_2, %c0_3, %c0_4] : memref<1x8x128xbf16, #tpu.memory_space<vmem>>, vector<1x8x128xbf16>
    %5 = vector.shape_cast %4 : vector<1x8x128xbf16> to vector<8x128xbf16>
    %c0_5 = arith.constant 0 : index
    %c0_6 = arith.constant 0 : index
    %c0_7 = arith.constant 0 : index
    %6 = vector.load %arg4[%c0_5, %c0_6, %c0_7] : memref<1x128x128xbf16, #tpu.memory_space<vmem>>, vector<1x128x128xbf16>
    %7 = vector.shape_cast %6 : vector<1x128x128xbf16> to vector<128x128xbf16>
    %cst = arith.constant dense<0.000000e+00> : vector<8x128xf32>
    %8 = tpu.matmul %5, %7, %cst {dimension_numbers = #tpu.dot_dimension_numbers<[1], [0], [0], [1], [0, 0, 1, 1], [], []>} : vector<8x128xbf16>, vector<128x128xbf16>, vector<8x128xf32> -> vector<8x128xf32>
    %9 = arith.addf %3, %8 : vector<8x128xf32>
    %c0_8 = arith.constant 0 : index
    %c0_9 = arith.constant 0 : index
    %10 = vector.load %arg7[%c0_8, %c0_9] : memref<8x128xf32, #tpu.memory_space<vmem>>, vector<8x128xf32>
    tpu.vector_store %arg7[%c0_8, %c0_9], %9 {strides = array<i32>} : memref<8x128xf32, #tpu.memory_space<vmem>>, vector<8x128xf32>,
    %c8_i32 = arith.constant 8 : i32
    %11 = arith.cmpi eq, %arg2, %c8_i32 : i32
    %12 = arith.extui %11 : i1 to i32
    %c0_i32_10 = arith.constant 0 : i32
    %13 = arith.cmpi ne, %12, %c0_i32_10 : i32
    scf.if %13 {
      %c0_11 = arith.constant 0 : index
      %c0_12 = arith.constant 0 : index
      %14 = vector.load %arg7[%c0_11, %c0_12] : memref<8x128xf32, #tpu.memory_space<vmem>>, vector<8x128xf32>
      %c0_13 = arith.constant 0 : index
      %c0_14 = arith.constant 0 : index
      %15 = vector.load %arg5[%c0_13, %c0_14] : memref<1x128xf32, #tpu.memory_space<vmem>>, vector<1x128xf32>
      %16 = vector.broadcast %15 : vector<1x128xf32> to vector<8x128xf32>
      %17 = arith.addf %14, %16 : vector<8x128xf32>
      %cst_15 = arith.constant 0.000000e+00 : f32
      %18 = vector.broadcast %cst_15 : f32 to vector<8x128xf32>
      %19 = arith.maximumf %17, %18 : vector<8x128xf32>
      %20 = arith.truncf %19 : vector<8x128xf32> to vector<8x128xbf16>
      %c0_16 = arith.constant 0 : index
      %c0_17 = arith.constant 0 : index
      %21 = vector.load %arg6[%c0_16, %c0_17] : memref<8x128xbf16, #tpu.memory_space<vmem>>, vector<8x128xbf16>
      tpu.vector_store %arg6[%c0_16, %c0_17], %20 {strides = array<i32>} : memref<8x128xbf16, #tpu.memory_space<vmem>>, vector<8x128xbf16>,
    } else {
    }
    return
  }
  func.func @transform_0(%arg0: i32, %arg1: i32, %arg2: i32) -> (i32, i32, i32) {
    %c0_i32 = arith.constant 0 : i32
    %c0_i32_0 = arith.constant 0 : i32
    return %arg2, %arg0, %c0_i32 : i32, i32, i32
  }
  func.func @transform_1(%arg0: i32, %arg1: i32, %arg2: i32) -> (i32, i32, i32) {
    %c0_i32 = arith.constant 0 : i32
    %c0_i32_0 = arith.constant 0 : i32
    return %arg2, %c0_i32, %arg1 : i32, i32, i32
  }
  func.func @transform_2(%arg0: i32, %arg1: i32, %arg2: i32) -> (i32, i32) {
    %c0_i32 = arith.constant 0 : i32
    %c0_i32_0 = arith.constant 0 : i32
    return %c0_i32, %arg1 : i32, i32
  }
  func.func @transform_3(%arg0: i32, %arg1: i32, %arg2: i32) -> (i32, i32) {
    %c0_i32 = arith.constant 0 : i32
    return %arg0, %arg1 : i32, i32
  }
}

module attributes {stable_mosaic.version = 11 : i64} {
  func.func @_conv_mm_kernel(%arg0: i32, %arg1: i32, %arg2: i32, %arg3: memref<1x8x256xbf16, #tpu.memory_space<vmem>>, %arg4: memref<1x256x128xbf16, #tpu.memory_space<vmem>>, %arg5: memref<1x128xf32, #tpu.memory_space<vmem>>, %arg6: memref<8x128xbf16, #tpu.memory_space<vmem>>, %arg7: memref<8x128xbf16, #tpu.memory_space<vmem>>, %arg8: memref<8x128xf32, #tpu.memory_space<vmem>>) attributes {dimension_semantics = [#tpu.dimension_semantics<parallel>, #tpu.dimension_semantics<parallel>, #tpu.dimension_semantics<arbitrary>], iteration_bounds = array<i64: 1, 2, 9>, scalar_prefetch = 0 : i64, scratch_operands = 1 : i64, tpu.core_type = #tpu.core_type<tc>, window_params = [{transform_indices = @transform_0, window_bounds = array<i64: 1, 8, 256>}, {transform_indices = @transform_1, window_bounds = array<i64: 1, 256, 128>}, {transform_indices = @transform_2, window_bounds = array<i64: 1, 128>}, {transform_indices = @transform_3, window_bounds = array<i64: 8, 128>}, {transform_indices = @transform_4, window_bounds = array<i64: 8, 128>}]} {
    %c0_i32 = arith.constant 0 : i32
    %0 = arith.cmpi eq, %arg2, %c0_i32 : i32
    %1 = arith.extui %0 : i1 to i32
    %c0_i32_0 = arith.constant 0 : i32
    %2 = arith.cmpi ne, %1, %c0_i32_0 : i32
    scf.if %2 {
      %cst_11 = arith.constant 0.000000e+00 : f32
      %14 = vector.broadcast %cst_11 : f32 to vector<8x128xf32>
      %c0_12 = arith.constant 0 : index
      %c0_13 = arith.constant 0 : index
      %15 = vector.load %arg8[%c0_12, %c0_13] : memref<8x128xf32, #tpu.memory_space<vmem>>, vector<8x128xf32>
      tpu.vector_store %arg8[%c0_12, %c0_13], %14 {strides = array<i32>} : memref<8x128xf32, #tpu.memory_space<vmem>>, vector<8x128xf32>,
    } else {
    }
    %c0 = arith.constant 0 : index
    %c0_1 = arith.constant 0 : index
    %3 = vector.load %arg8[%c0, %c0_1] : memref<8x128xf32, #tpu.memory_space<vmem>>, vector<8x128xf32>
    %c0_2 = arith.constant 0 : index
    %c0_3 = arith.constant 0 : index
    %c0_4 = arith.constant 0 : index
    %4 = vector.load %arg3[%c0_2, %c0_3, %c0_4] : memref<1x8x256xbf16, #tpu.memory_space<vmem>>, vector<1x8x256xbf16>
    %5 = vector.shape_cast %4 : vector<1x8x256xbf16> to vector<8x256xbf16>
    %c0_5 = arith.constant 0 : index
    %c0_6 = arith.constant 0 : index
    %c0_7 = arith.constant 0 : index
    %6 = vector.load %arg4[%c0_5, %c0_6, %c0_7] : memref<1x256x128xbf16, #tpu.memory_space<vmem>>, vector<1x256x128xbf16>
    %7 = vector.shape_cast %6 : vector<1x256x128xbf16> to vector<256x128xbf16>
    %cst = arith.constant dense<0.000000e+00> : vector<8x128xf32>
    %8 = tpu.matmul %5, %7, %cst {dimension_numbers = #tpu.dot_dimension_numbers<[1], [0], [0], [1], [0, 0, 1, 1], [], []>} : vector<8x256xbf16>, vector<256x128xbf16>, vector<8x128xf32> -> vector<8x128xf32>
    %9 = arith.addf %3, %8 : vector<8x128xf32>
    %c0_8 = arith.constant 0 : index
    %c0_9 = arith.constant 0 : index
    %10 = vector.load %arg8[%c0_8, %c0_9] : memref<8x128xf32, #tpu.memory_space<vmem>>, vector<8x128xf32>
    tpu.vector_store %arg8[%c0_8, %c0_9], %9 {strides = array<i32>} : memref<8x128xf32, #tpu.memory_space<vmem>>, vector<8x128xf32>,
    %c8_i32 = arith.constant 8 : i32
    %11 = arith.cmpi eq, %arg2, %c8_i32 : i32
    %12 = arith.extui %11 : i1 to i32
    %c0_i32_10 = arith.constant 0 : i32
    %13 = arith.cmpi ne, %12, %c0_i32_10 : i32
    scf.if %13 {
      %c0_11 = arith.constant 0 : index
      %c0_12 = arith.constant 0 : index
      %14 = vector.load %arg8[%c0_11, %c0_12] : memref<8x128xf32, #tpu.memory_space<vmem>>, vector<8x128xf32>
      %c0_13 = arith.constant 0 : index
      %c0_14 = arith.constant 0 : index
      %15 = vector.load %arg5[%c0_13, %c0_14] : memref<1x128xf32, #tpu.memory_space<vmem>>, vector<1x128xf32>
      %16 = vector.broadcast %15 : vector<1x128xf32> to vector<8x128xf32>
      %17 = arith.addf %14, %16 : vector<8x128xf32>
      %c0_15 = arith.constant 0 : index
      %c0_16 = arith.constant 0 : index
      %18 = vector.load %arg6[%c0_15, %c0_16] : memref<8x128xbf16, #tpu.memory_space<vmem>>, vector<8x128xbf16>
      %19 = arith.extf %18 : vector<8x128xbf16> to vector<8x128xf32>
      %20 = arith.addf %17, %19 : vector<8x128xf32>
      %cst_17 = arith.constant 0.000000e+00 : f32
      %21 = vector.broadcast %cst_17 : f32 to vector<8x128xf32>
      %22 = arith.maximumf %20, %21 : vector<8x128xf32>
      %23 = arith.truncf %22 : vector<8x128xf32> to vector<8x128xbf16>
      %c0_18 = arith.constant 0 : index
      %c0_19 = arith.constant 0 : index
      %24 = vector.load %arg7[%c0_18, %c0_19] : memref<8x128xbf16, #tpu.memory_space<vmem>>, vector<8x128xbf16>
      tpu.vector_store %arg7[%c0_18, %c0_19], %23 {strides = array<i32>} : memref<8x128xbf16, #tpu.memory_space<vmem>>, vector<8x128xbf16>,
    } else {
    }
    return
  }
  func.func @transform_0(%arg0: i32, %arg1: i32, %arg2: i32) -> (i32, i32, i32) {
    %c0_i32 = arith.constant 0 : i32
    %c0_i32_0 = arith.constant 0 : i32
    return %arg2, %arg0, %c0_i32 : i32, i32, i32
  }
  func.func @transform_1(%arg0: i32, %arg1: i32, %arg2: i32) -> (i32, i32, i32) {
    %c0_i32 = arith.constant 0 : i32
    %c0_i32_0 = arith.constant 0 : i32
    return %arg2, %c0_i32, %arg1 : i32, i32, i32
  }
  func.func @transform_2(%arg0: i32, %arg1: i32, %arg2: i32) -> (i32, i32) {
    %c0_i32 = arith.constant 0 : i32
    %c0_i32_0 = arith.constant 0 : i32
    return %c0_i32, %arg1 : i32, i32
  }
  func.func @transform_3(%arg0: i32, %arg1: i32, %arg2: i32) -> (i32, i32) {
    %c0_i32 = arith.constant 0 : i32
    return %arg0, %arg1 : i32, i32
  }
  func.func @transform_4(%arg0: i32, %arg1: i32, %arg2: i32) -> (i32, i32) {
    %c0_i32 = arith.constant 0 : i32
    return %arg0, %arg1 : i32, i32
  }
}

module attributes {stable_mosaic.version = 11 : i64} {
  func.func @_conv_mm_kernel(%arg0: i32, %arg1: i32, %arg2: i32, %arg3: memref<1x8x128xbf16, #tpu.memory_space<vmem>>, %arg4: memref<1x128x128xbf16, #tpu.memory_space<vmem>>, %arg5: memref<1x128xf32, #tpu.memory_space<vmem>>, %arg6: memref<8x128xbf16, #tpu.memory_space<vmem>>, %arg7: memref<8x128xf32, #tpu.memory_space<vmem>>) attributes {dimension_semantics = [#tpu.dimension_semantics<parallel>, #tpu.dimension_semantics<parallel>, #tpu.dimension_semantics<arbitrary>], iteration_bounds = array<i64: 1, 2, 1>, scalar_prefetch = 0 : i64, scratch_operands = 1 : i64, tpu.core_type = #tpu.core_type<tc>, window_params = [{transform_indices = @transform_0, window_bounds = array<i64: 1, 8, 128>}, {transform_indices = @transform_1, window_bounds = array<i64: 1, 128, 128>}, {transform_indices = @transform_2, window_bounds = array<i64: 1, 128>}, {transform_indices = @transform_3, window_bounds = array<i64: 8, 128>}]} {
    %c0_i32 = arith.constant 0 : i32
    %0 = arith.cmpi eq, %arg2, %c0_i32 : i32
    %1 = arith.extui %0 : i1 to i32
    %c0_i32_0 = arith.constant 0 : i32
    %2 = arith.cmpi ne, %1, %c0_i32_0 : i32
    scf.if %2 {
      %cst_12 = arith.constant 0.000000e+00 : f32
      %14 = vector.broadcast %cst_12 : f32 to vector<8x128xf32>
      %c0_13 = arith.constant 0 : index
      %c0_14 = arith.constant 0 : index
      %15 = vector.load %arg7[%c0_13, %c0_14] : memref<8x128xf32, #tpu.memory_space<vmem>>, vector<8x128xf32>
      tpu.vector_store %arg7[%c0_13, %c0_14], %14 {strides = array<i32>} : memref<8x128xf32, #tpu.memory_space<vmem>>, vector<8x128xf32>,
    } else {
    }
    %c0 = arith.constant 0 : index
    %c0_1 = arith.constant 0 : index
    %3 = vector.load %arg7[%c0, %c0_1] : memref<8x128xf32, #tpu.memory_space<vmem>>, vector<8x128xf32>
    %c0_2 = arith.constant 0 : index
    %c0_3 = arith.constant 0 : index
    %c0_4 = arith.constant 0 : index
    %4 = vector.load %arg3[%c0_2, %c0_3, %c0_4] : memref<1x8x128xbf16, #tpu.memory_space<vmem>>, vector<1x8x128xbf16>
    %5 = vector.shape_cast %4 : vector<1x8x128xbf16> to vector<8x128xbf16>
    %c0_5 = arith.constant 0 : index
    %c0_6 = arith.constant 0 : index
    %c0_7 = arith.constant 0 : index
    %6 = vector.load %arg4[%c0_5, %c0_6, %c0_7] : memref<1x128x128xbf16, #tpu.memory_space<vmem>>, vector<1x128x128xbf16>
    %7 = vector.shape_cast %6 : vector<1x128x128xbf16> to vector<128x128xbf16>
    %cst = arith.constant dense<0.000000e+00> : vector<8x128xf32>
    %8 = tpu.matmul %5, %7, %cst {dimension_numbers = #tpu.dot_dimension_numbers<[1], [0], [0], [1], [0, 0, 1, 1], [], []>} : vector<8x128xbf16>, vector<128x128xbf16>, vector<8x128xf32> -> vector<8x128xf32>
    %9 = arith.addf %3, %8 : vector<8x128xf32>
    %c0_8 = arith.constant 0 : index
    %c0_9 = arith.constant 0 : index
    %10 = vector.load %arg7[%c0_8, %c0_9] : memref<8x128xf32, #tpu.memory_space<vmem>>, vector<8x128xf32>
    tpu.vector_store %arg7[%c0_8, %c0_9], %9 {strides = array<i32>} : memref<8x128xf32, #tpu.memory_space<vmem>>, vector<8x128xf32>,
    %c0_i32_10 = arith.constant 0 : i32
    %11 = arith.cmpi eq, %arg2, %c0_i32_10 : i32
    %12 = arith.extui %11 : i1 to i32
    %c0_i32_11 = arith.constant 0 : i32
    %13 = arith.cmpi ne, %12, %c0_i32_11 : i32
    scf.if %13 {
      %c0_12 = arith.constant 0 : index
      %c0_13 = arith.constant 0 : index
      %14 = vector.load %arg7[%c0_12, %c0_13] : memref<8x128xf32, #tpu.memory_space<vmem>>, vector<8x128xf32>
      %c0_14 = arith.constant 0 : index
      %c0_15 = arith.constant 0 : index
      %15 = vector.load %arg5[%c0_14, %c0_15] : memref<1x128xf32, #tpu.memory_space<vmem>>, vector<1x128xf32>
      %16 = vector.broadcast %15 : vector<1x128xf32> to vector<8x128xf32>
      %17 = arith.addf %14, %16 : vector<8x128xf32>
      %18 = arith.truncf %17 : vector<8x128xf32> to vector<8x128xbf16>
      %c0_16 = arith.constant 0 : index
      %c0_17 = arith.constant 0 : index
      %19 = vector.load %arg6[%c0_16, %c0_17] : memref<8x128xbf16, #tpu.memory_space<vmem>>, vector<8x128xbf16>
      tpu.vector_store %arg6[%c0_16, %c0_17], %18 {strides = array<i32>} : memref<8x128xbf16, #tpu.memory_space<vmem>>, vector<8x128xbf16>,
    } else {
    }
    return
  }
  func.func @transform_0(%arg0: i32, %arg1: i32, %arg2: i32) -> (i32, i32, i32) {
    %c0_i32 = arith.constant 0 : i32
    %c0_i32_0 = arith.constant 0 : i32
    return %arg2, %arg0, %c0_i32 : i32, i32, i32
  }
  func.func @transform_1(%arg0: i32, %arg1: i32, %arg2: i32) -> (i32, i32, i32) {
    %c0_i32 = arith.constant 0 : i32
    %c0_i32_0 = arith.constant 0 : i32
    return %arg2, %c0_i32, %arg1 : i32, i32, i32
  }
  func.func @transform_2(%arg0: i32, %arg1: i32, %arg2: i32) -> (i32, i32) {
    %c0_i32 = arith.constant 0 : i32
    %c0_i32_0 = arith.constant 0 : i32
    return %c0_i32, %arg1 : i32, i32
  }
  func.func @transform_3(%arg0: i32, %arg1: i32, %arg2: i32) -> (i32, i32) {
    %c0_i32 = arith.constant 0 : i32
    return %arg0, %arg1 : i32, i32
  }
}

module attributes {stable_mosaic.version = 11 : i64} {
  func.func @_conv_mm_kernel(%arg0: i32, %arg1: i32, %arg2: i32, %arg3: memref<1x2x256xbf16, #tpu.memory_space<vmem>>, %arg4: memref<1x256x128xbf16, #tpu.memory_space<vmem>>, %arg5: memref<1x128xf32, #tpu.memory_space<vmem>>, %arg6: memref<2x128xbf16, #tpu.memory_space<vmem>>, %arg7: memref<2x128xf32, #tpu.memory_space<vmem>>) attributes {dimension_semantics = [#tpu.dimension_semantics<parallel>, #tpu.dimension_semantics<parallel>, #tpu.dimension_semantics<arbitrary>], iteration_bounds = array<i64: 1, 4, 9>, scalar_prefetch = 0 : i64, scratch_operands = 1 : i64, tpu.core_type = #tpu.core_type<tc>, window_params = [{transform_indices = @transform_0, window_bounds = array<i64: 1, 2, 256>}, {transform_indices = @transform_1, window_bounds = array<i64: 1, 256, 128>}, {transform_indices = @transform_2, window_bounds = array<i64: 1, 128>}, {transform_indices = @transform_3, window_bounds = array<i64: 2, 128>}]} {
    %c0_i32 = arith.constant 0 : i32
    %0 = arith.cmpi eq, %arg2, %c0_i32 : i32
    %1 = arith.extui %0 : i1 to i32
    %c0_i32_0 = arith.constant 0 : i32
    %2 = arith.cmpi ne, %1, %c0_i32_0 : i32
    scf.if %2 {
      %cst_11 = arith.constant 0.000000e+00 : f32
      %14 = vector.broadcast %cst_11 : f32 to vector<2x128xf32>
      %c0_12 = arith.constant 0 : index
      %c0_13 = arith.constant 0 : index
      %15 = vector.load %arg7[%c0_12, %c0_13] : memref<2x128xf32, #tpu.memory_space<vmem>>, vector<2x128xf32>
      tpu.vector_store %arg7[%c0_12, %c0_13], %14 {strides = array<i32>} : memref<2x128xf32, #tpu.memory_space<vmem>>, vector<2x128xf32>,
    } else {
    }
    %c0 = arith.constant 0 : index
    %c0_1 = arith.constant 0 : index
    %3 = vector.load %arg7[%c0, %c0_1] : memref<2x128xf32, #tpu.memory_space<vmem>>, vector<2x128xf32>
    %c0_2 = arith.constant 0 : index
    %c0_3 = arith.constant 0 : index
    %c0_4 = arith.constant 0 : index
    %4 = vector.load %arg3[%c0_2, %c0_3, %c0_4] : memref<1x2x256xbf16, #tpu.memory_space<vmem>>, vector<1x2x256xbf16>
    %5 = vector.shape_cast %4 : vector<1x2x256xbf16> to vector<2x256xbf16>
    %c0_5 = arith.constant 0 : index
    %c0_6 = arith.constant 0 : index
    %c0_7 = arith.constant 0 : index
    %6 = vector.load %arg4[%c0_5, %c0_6, %c0_7] : memref<1x256x128xbf16, #tpu.memory_space<vmem>>, vector<1x256x128xbf16>
    %7 = vector.shape_cast %6 : vector<1x256x128xbf16> to vector<256x128xbf16>
    %cst = arith.constant dense<0.000000e+00> : vector<2x128xf32>
    %8 = tpu.matmul %5, %7, %cst {dimension_numbers = #tpu.dot_dimension_numbers<[1], [0], [0], [1], [0, 0, 1, 1], [], []>} : vector<2x256xbf16>, vector<256x128xbf16>, vector<2x128xf32> -> vector<2x128xf32>
    %9 = arith.addf %3, %8 : vector<2x128xf32>
    %c0_8 = arith.constant 0 : index
    %c0_9 = arith.constant 0 : index
    %10 = vector.load %arg7[%c0_8, %c0_9] : memref<2x128xf32, #tpu.memory_space<vmem>>, vector<2x128xf32>
    tpu.vector_store %arg7[%c0_8, %c0_9], %9 {strides = array<i32>} : memref<2x128xf32, #tpu.memory_space<vmem>>, vector<2x128xf32>,
    %c8_i32 = arith.constant 8 : i32
    %11 = arith.cmpi eq, %arg2, %c8_i32 : i32
    %12 = arith.extui %11 : i1 to i32
    %c0_i32_10 = arith.constant 0 : i32
    %13 = arith.cmpi ne, %12, %c0_i32_10 : i32
    scf.if %13 {
      %c0_11 = arith.constant 0 : index
      %c0_12 = arith.constant 0 : index
      %14 = vector.load %arg7[%c0_11, %c0_12] : memref<2x128xf32, #tpu.memory_space<vmem>>, vector<2x128xf32>
      %c0_13 = arith.constant 0 : index
      %c0_14 = arith.constant 0 : index
      %15 = vector.load %arg5[%c0_13, %c0_14] : memref<1x128xf32, #tpu.memory_space<vmem>>, vector<1x128xf32>
      %16 = vector.broadcast %15 : vector<1x128xf32> to vector<2x128xf32>
      %17 = arith.addf %14, %16 : vector<2x128xf32>
      %cst_15 = arith.constant 0.000000e+00 : f32
      %18 = vector.broadcast %cst_15 : f32 to vector<2x128xf32>
      %19 = arith.maximumf %17, %18 : vector<2x128xf32>
      %20 = arith.truncf %19 : vector<2x128xf32> to vector<2x128xbf16>
      %c0_16 = arith.constant 0 : index
      %c0_17 = arith.constant 0 : index
      %21 = vector.load %arg6[%c0_16, %c0_17] : memref<2x128xbf16, #tpu.memory_space<vmem>>, vector<2x128xbf16>
      tpu.vector_store %arg6[%c0_16, %c0_17], %20 {strides = array<i32>} : memref<2x128xbf16, #tpu.memory_space<vmem>>, vector<2x128xbf16>,
    } else {
    }
    return
  }
  func.func @transform_0(%arg0: i32, %arg1: i32, %arg2: i32) -> (i32, i32, i32) {
    %c0_i32 = arith.constant 0 : i32
    %c0_i32_0 = arith.constant 0 : i32
    return %arg2, %arg0, %c0_i32 : i32, i32, i32
  }
  func.func @transform_1(%arg0: i32, %arg1: i32, %arg2: i32) -> (i32, i32, i32) {
    %c0_i32 = arith.constant 0 : i32
    %c0_i32_0 = arith.constant 0 : i32
    return %arg2, %c0_i32, %arg1 : i32, i32, i32
  }
  func.func @transform_2(%arg0: i32, %arg1: i32, %arg2: i32) -> (i32, i32) {
    %c0_i32 = arith.constant 0 : i32
    %c0_i32_0 = arith.constant 0 : i32
    return %c0_i32, %arg1 : i32, i32
  }
  func.func @transform_3(%arg0: i32, %arg1: i32, %arg2: i32) -> (i32, i32) {
    %c0_i32 = arith.constant 0 : i32
    return %arg0, %arg1 : i32, i32
  }
}

module attributes {stable_mosaic.version = 11 : i64} {
  func.func @_conv_mm_kernel(%arg0: i32, %arg1: i32, %arg2: i32, %arg3: memref<1x2x256xbf16, #tpu.memory_space<vmem>>, %arg4: memref<1x256x128xbf16, #tpu.memory_space<vmem>>, %arg5: memref<1x128xf32, #tpu.memory_space<vmem>>, %arg6: memref<2x128xbf16, #tpu.memory_space<vmem>>, %arg7: memref<2x128xf32, #tpu.memory_space<vmem>>) attributes {dimension_semantics = [#tpu.dimension_semantics<parallel>, #tpu.dimension_semantics<parallel>, #tpu.dimension_semantics<arbitrary>], iteration_bounds = array<i64: 1, 4, 1>, scalar_prefetch = 0 : i64, scratch_operands = 1 : i64, tpu.core_type = #tpu.core_type<tc>, window_params = [{transform_indices = @transform_0, window_bounds = array<i64: 1, 2, 256>}, {transform_indices = @transform_1, window_bounds = array<i64: 1, 256, 128>}, {transform_indices = @transform_2, window_bounds = array<i64: 1, 128>}, {transform_indices = @transform_3, window_bounds = array<i64: 2, 128>}]} {
    %c0_i32 = arith.constant 0 : i32
    %0 = arith.cmpi eq, %arg2, %c0_i32 : i32
    %1 = arith.extui %0 : i1 to i32
    %c0_i32_0 = arith.constant 0 : i32
    %2 = arith.cmpi ne, %1, %c0_i32_0 : i32
    scf.if %2 {
      %cst_12 = arith.constant 0.000000e+00 : f32
      %14 = vector.broadcast %cst_12 : f32 to vector<2x128xf32>
      %c0_13 = arith.constant 0 : index
      %c0_14 = arith.constant 0 : index
      %15 = vector.load %arg7[%c0_13, %c0_14] : memref<2x128xf32, #tpu.memory_space<vmem>>, vector<2x128xf32>
      tpu.vector_store %arg7[%c0_13, %c0_14], %14 {strides = array<i32>} : memref<2x128xf32, #tpu.memory_space<vmem>>, vector<2x128xf32>,
    } else {
    }
    %c0 = arith.constant 0 : index
    %c0_1 = arith.constant 0 : index
    %3 = vector.load %arg7[%c0, %c0_1] : memref<2x128xf32, #tpu.memory_space<vmem>>, vector<2x128xf32>
    %c0_2 = arith.constant 0 : index
    %c0_3 = arith.constant 0 : index
    %c0_4 = arith.constant 0 : index
    %4 = vector.load %arg3[%c0_2, %c0_3, %c0_4] : memref<1x2x256xbf16, #tpu.memory_space<vmem>>, vector<1x2x256xbf16>
    %5 = vector.shape_cast %4 : vector<1x2x256xbf16> to vector<2x256xbf16>
    %c0_5 = arith.constant 0 : index
    %c0_6 = arith.constant 0 : index
    %c0_7 = arith.constant 0 : index
    %6 = vector.load %arg4[%c0_5, %c0_6, %c0_7] : memref<1x256x128xbf16, #tpu.memory_space<vmem>>, vector<1x256x128xbf16>
    %7 = vector.shape_cast %6 : vector<1x256x128xbf16> to vector<256x128xbf16>
    %cst = arith.constant dense<0.000000e+00> : vector<2x128xf32>
    %8 = tpu.matmul %5, %7, %cst {dimension_numbers = #tpu.dot_dimension_numbers<[1], [0], [0], [1], [0, 0, 1, 1], [], []>} : vector<2x256xbf16>, vector<256x128xbf16>, vector<2x128xf32> -> vector<2x128xf32>
    %9 = arith.addf %3, %8 : vector<2x128xf32>
    %c0_8 = arith.constant 0 : index
    %c0_9 = arith.constant 0 : index
    %10 = vector.load %arg7[%c0_8, %c0_9] : memref<2x128xf32, #tpu.memory_space<vmem>>, vector<2x128xf32>
    tpu.vector_store %arg7[%c0_8, %c0_9], %9 {strides = array<i32>} : memref<2x128xf32, #tpu.memory_space<vmem>>, vector<2x128xf32>,
    %c0_i32_10 = arith.constant 0 : i32
    %11 = arith.cmpi eq, %arg2, %c0_i32_10 : i32
    %12 = arith.extui %11 : i1 to i32
    %c0_i32_11 = arith.constant 0 : i32
    %13 = arith.cmpi ne, %12, %c0_i32_11 : i32
    scf.if %13 {
      %c0_12 = arith.constant 0 : index
      %c0_13 = arith.constant 0 : index
      %14 = vector.load %arg7[%c0_12, %c0_13] : memref<2x128xf32, #tpu.memory_space<vmem>>, vector<2x128xf32>
      %c0_14 = arith.constant 0 : index
      %c0_15 = arith.constant 0 : index
      %15 = vector.load %arg5[%c0_14, %c0_15] : memref<1x128xf32, #tpu.memory_space<vmem>>, vector<1x128xf32>
      %16 = vector.broadcast %15 : vector<1x128xf32> to vector<2x128xf32>
      %17 = arith.addf %14, %16 : vector<2x128xf32>
      %18 = arith.truncf %17 : vector<2x128xf32> to vector<2x128xbf16>
      %c0_16 = arith.constant 0 : index
      %c0_17 = arith.constant 0 : index
      %19 = vector.load %arg6[%c0_16, %c0_17] : memref<2x128xbf16, #tpu.memory_space<vmem>>, vector<2x128xbf16>
      tpu.vector_store %arg6[%c0_16, %c0_17], %18 {strides = array<i32>} : memref<2x128xbf16, #tpu.memory_space<vmem>>, vector<2x128xbf16>,
    } else {
    }
    return
  }
  func.func @transform_0(%arg0: i32, %arg1: i32, %arg2: i32) -> (i32, i32, i32) {
    %c0_i32 = arith.constant 0 : i32
    %c0_i32_0 = arith.constant 0 : i32
    return %arg2, %arg0, %c0_i32 : i32, i32, i32
  }
  func.func @transform_1(%arg0: i32, %arg1: i32, %arg2: i32) -> (i32, i32, i32) {
    %c0_i32 = arith.constant 0 : i32
    %c0_i32_0 = arith.constant 0 : i32
    return %arg2, %c0_i32, %arg1 : i32, i32, i32
  }
  func.func @transform_2(%arg0: i32, %arg1: i32, %arg2: i32) -> (i32, i32) {
    %c0_i32 = arith.constant 0 : i32
    %c0_i32_0 = arith.constant 0 : i32
    return %c0_i32, %arg1 : i32, i32
  }
  func.func @transform_3(%arg0: i32, %arg1: i32, %arg2: i32) -> (i32, i32) {
    %c0_i32 = arith.constant 0 : i32
    return %arg0, %arg1 : i32, i32
  }
}

module attributes {stable_mosaic.version = 11 : i64} {
  func.func @_conv_mm_kernel(%arg0: i32, %arg1: i32, %arg2: i32, %arg3: memref<1x2x512xbf16, #tpu.memory_space<vmem>>, %arg4: memref<1x512x128xbf16, #tpu.memory_space<vmem>>, %arg5: memref<1x128xf32, #tpu.memory_space<vmem>>, %arg6: memref<2x128xbf16, #tpu.memory_space<vmem>>, %arg7: memref<2x128xbf16, #tpu.memory_space<vmem>>, %arg8: memref<2x128xf32, #tpu.memory_space<vmem>>) attributes {dimension_semantics = [#tpu.dimension_semantics<parallel>, #tpu.dimension_semantics<parallel>, #tpu.dimension_semantics<arbitrary>], iteration_bounds = array<i64: 1, 4, 9>, scalar_prefetch = 0 : i64, scratch_operands = 1 : i64, tpu.core_type = #tpu.core_type<tc>, window_params = [{transform_indices = @transform_0, window_bounds = array<i64: 1, 2, 512>}, {transform_indices = @transform_1, window_bounds = array<i64: 1, 512, 128>}, {transform_indices = @transform_2, window_bounds = array<i64: 1, 128>}, {transform_indices = @transform_3, window_bounds = array<i64: 2, 128>}, {transform_indices = @transform_4, window_bounds = array<i64: 2, 128>}]} {
    %c0_i32 = arith.constant 0 : i32
    %0 = arith.cmpi eq, %arg2, %c0_i32 : i32
    %1 = arith.extui %0 : i1 to i32
    %c0_i32_0 = arith.constant 0 : i32
    %2 = arith.cmpi ne, %1, %c0_i32_0 : i32
    scf.if %2 {
      %cst_11 = arith.constant 0.000000e+00 : f32
      %14 = vector.broadcast %cst_11 : f32 to vector<2x128xf32>
      %c0_12 = arith.constant 0 : index
      %c0_13 = arith.constant 0 : index
      %15 = vector.load %arg8[%c0_12, %c0_13] : memref<2x128xf32, #tpu.memory_space<vmem>>, vector<2x128xf32>
      tpu.vector_store %arg8[%c0_12, %c0_13], %14 {strides = array<i32>} : memref<2x128xf32, #tpu.memory_space<vmem>>, vector<2x128xf32>,
    } else {
    }
    %c0 = arith.constant 0 : index
    %c0_1 = arith.constant 0 : index
    %3 = vector.load %arg8[%c0, %c0_1] : memref<2x128xf32, #tpu.memory_space<vmem>>, vector<2x128xf32>
    %c0_2 = arith.constant 0 : index
    %c0_3 = arith.constant 0 : index
    %c0_4 = arith.constant 0 : index
    %4 = vector.load %arg3[%c0_2, %c0_3, %c0_4] : memref<1x2x512xbf16, #tpu.memory_space<vmem>>, vector<1x2x512xbf16>
    %5 = vector.shape_cast %4 : vector<1x2x512xbf16> to vector<2x512xbf16>
    %c0_5 = arith.constant 0 : index
    %c0_6 = arith.constant 0 : index
    %c0_7 = arith.constant 0 : index
    %6 = vector.load %arg4[%c0_5, %c0_6, %c0_7] : memref<1x512x128xbf16, #tpu.memory_space<vmem>>, vector<1x512x128xbf16>
    %7 = vector.shape_cast %6 : vector<1x512x128xbf16> to vector<512x128xbf16>
    %cst = arith.constant dense<0.000000e+00> : vector<2x128xf32>
    %8 = tpu.matmul %5, %7, %cst {dimension_numbers = #tpu.dot_dimension_numbers<[1], [0], [0], [1], [0, 0, 1, 1], [], []>} : vector<2x512xbf16>, vector<512x128xbf16>, vector<2x128xf32> -> vector<2x128xf32>
    %9 = arith.addf %3, %8 : vector<2x128xf32>
    %c0_8 = arith.constant 0 : index
    %c0_9 = arith.constant 0 : index
    %10 = vector.load %arg8[%c0_8, %c0_9] : memref<2x128xf32, #tpu.memory_space<vmem>>, vector<2x128xf32>
    tpu.vector_store %arg8[%c0_8, %c0_9], %9 {strides = array<i32>} : memref<2x128xf32, #tpu.memory_space<vmem>>, vector<2x128xf32>,
    %c8_i32 = arith.constant 8 : i32
    %11 = arith.cmpi eq, %arg2, %c8_i32 : i32
    %12 = arith.extui %11 : i1 to i32
    %c0_i32_10 = arith.constant 0 : i32
    %13 = arith.cmpi ne, %12, %c0_i32_10 : i32
    scf.if %13 {
      %c0_11 = arith.constant 0 : index
      %c0_12 = arith.constant 0 : index
      %14 = vector.load %arg8[%c0_11, %c0_12] : memref<2x128xf32, #tpu.memory_space<vmem>>, vector<2x128xf32>
      %c0_13 = arith.constant 0 : index
      %c0_14 = arith.constant 0 : index
      %15 = vector.load %arg5[%c0_13, %c0_14] : memref<1x128xf32, #tpu.memory_space<vmem>>, vector<1x128xf32>
      %16 = vector.broadcast %15 : vector<1x128xf32> to vector<2x128xf32>
      %17 = arith.addf %14, %16 : vector<2x128xf32>
      %c0_15 = arith.constant 0 : index
      %c0_16 = arith.constant 0 : index
      %18 = vector.load %arg6[%c0_15, %c0_16] : memref<2x128xbf16, #tpu.memory_space<vmem>>, vector<2x128xbf16>
      %19 = arith.extf %18 : vector<2x128xbf16> to vector<2x128xf32>
      %20 = arith.addf %17, %19 : vector<2x128xf32>
      %cst_17 = arith.constant 0.000000e+00 : f32
      %21 = vector.broadcast %cst_17 : f32 to vector<2x128xf32>
      %22 = arith.maximumf %20, %21 : vector<2x128xf32>
      %23 = arith.truncf %22 : vector<2x128xf32> to vector<2x128xbf16>
      %c0_18 = arith.constant 0 : index
      %c0_19 = arith.constant 0 : index
      %24 = vector.load %arg7[%c0_18, %c0_19] : memref<2x128xbf16, #tpu.memory_space<vmem>>, vector<2x128xbf16>
      tpu.vector_store %arg7[%c0_18, %c0_19], %23 {strides = array<i32>} : memref<2x128xbf16, #tpu.memory_space<vmem>>, vector<2x128xbf16>,
    } else {
    }
    return
  }
  func.func @transform_0(%arg0: i32, %arg1: i32, %arg2: i32) -> (i32, i32, i32) {
    %c0_i32 = arith.constant 0 : i32
    %c0_i32_0 = arith.constant 0 : i32
    return %arg2, %arg0, %c0_i32 : i32, i32, i32
  }
  func.func @transform_1(%arg0: i32, %arg1: i32, %arg2: i32) -> (i32, i32, i32) {
    %c0_i32 = arith.constant 0 : i32
    %c0_i32_0 = arith.constant 0 : i32
    return %arg2, %c0_i32, %arg1 : i32, i32, i32
  }
  func.func @transform_2(%arg0: i32, %arg1: i32, %arg2: i32) -> (i32, i32) {
    %c0_i32 = arith.constant 0 : i32
    %c0_i32_0 = arith.constant 0 : i32
    return %c0_i32, %arg1 : i32, i32
  }
  func.func @transform_3(%arg0: i32, %arg1: i32, %arg2: i32) -> (i32, i32) {
    %c0_i32 = arith.constant 0 : i32
    return %arg0, %arg1 : i32, i32
  }
  func.func @transform_4(%arg0: i32, %arg1: i32, %arg2: i32) -> (i32, i32) {
    %c0_i32 = arith.constant 0 : i32
    return %arg0, %arg1 : i32, i32
  }
}

module attributes {stable_mosaic.version = 11 : i64} {
  func.func @_avgpool_fc_kernel(%arg0: i32, %arg1: memref<2x1x512xbf16, #tpu.memory_space<vmem>>, %arg2: memref<512x128xf32, #tpu.memory_space<vmem>>, %arg3: memref<1x128xf32, #tpu.memory_space<vmem>>, %arg4: memref<2x128xf32, #tpu.memory_space<vmem>>) attributes {dimension_semantics = [#tpu.dimension_semantics<arbitrary>], iteration_bounds = array<i64: 1>, scalar_prefetch = 0 : i64, scratch_operands = 0 : i64, tpu.core_type = #tpu.core_type<tc>, window_params = [{pipeline_mode = #tpu.pipeline_mode<synchronous>, transform_indices = @transform_0, window_bounds = array<i64: 2, 1, 512>}, {pipeline_mode = #tpu.pipeline_mode<synchronous>, transform_indices = @transform_1, window_bounds = array<i64: 512, 128>}, {pipeline_mode = #tpu.pipeline_mode<synchronous>, transform_indices = @transform_2, window_bounds = array<i64: 1, 128>}, {pipeline_mode = #tpu.pipeline_mode<synchronous>, transform_indices = @transform_3, window_bounds = array<i64: 2, 128>}]} {
    %c0 = arith.constant 0 : index
    %c0_0 = arith.constant 0 : index
    %c0_1 = arith.constant 0 : index
    %0 = vector.load %arg1[%c0, %c0_0, %c0_1] : memref<2x1x512xbf16, #tpu.memory_space<vmem>>, vector<2x1x512xbf16>
    %1 = arith.extf %0 : vector<2x1x512xbf16> to vector<2x1x512xf32>
    %cst = arith.constant dense<0.000000e+00> : vector<2x512xf32>
    %2 = vector.multi_reduction <add>, %1, %cst [1] : vector<2x1x512xf32> to vector<2x512xf32>
    %cst_2 = arith.constant 1.000000e+00 : f32
    %3 = vector.broadcast %cst_2 : f32 to vector<2x512xf32>
    %4 = arith.divf %2, %3 : vector<2x512xf32>
    %c0_3 = arith.constant 0 : index
    %c0_4 = arith.constant 0 : index
    %5 = vector.load %arg2[%c0_3, %c0_4] : memref<512x128xf32, #tpu.memory_space<vmem>>, vector<512x128xf32>
    %cst_5 = arith.constant dense<0.000000e+00> : vector<2x128xf32>
    %6 = tpu.matmul %4, %5, %cst_5 {dimension_numbers = #tpu.dot_dimension_numbers<[1], [0], [0], [1], [0, 0, 1, 1], [], []>} : vector<2x512xf32>, vector<512x128xf32>, vector<2x128xf32> -> vector<2x128xf32>
    %c0_6 = arith.constant 0 : index
    %c0_7 = arith.constant 0 : index
    %7 = vector.load %arg3[%c0_6, %c0_7] : memref<1x128xf32, #tpu.memory_space<vmem>>, vector<1x128xf32>
    %8 = vector.broadcast %7 : vector<1x128xf32> to vector<2x128xf32>
    %9 = arith.addf %6, %8 : vector<2x128xf32>
    %c0_8 = arith.constant 0 : index
    %c0_9 = arith.constant 0 : index
    %10 = vector.load %arg4[%c0_8, %c0_9] : memref<2x128xf32, #tpu.memory_space<vmem>>, vector<2x128xf32>
    tpu.vector_store %arg4[%c0_8, %c0_9], %9 {strides = array<i32>} : memref<2x128xf32, #tpu.memory_space<vmem>>, vector<2x128xf32>,
    return
  }
  func.func @transform_0(%arg0: i32) -> (i32, i32, i32) {
    %c0_i32 = arith.constant 0 : i32
    %c0_i32_0 = arith.constant 0 : i32
    %c0_i32_1 = arith.constant 0 : i32
    %c0_i32_2 = arith.constant 0 : i32
    return %c0_i32, %c0_i32_0, %c0_i32_1 : i32, i32, i32
  }
  func.func @transform_1(%arg0: i32) -> (i32, i32) {
    %c0_i32 = arith.constant 0 : i32
    %c0_i32_0 = arith.constant 0 : i32
    %c0_i32_1 = arith.constant 0 : i32
    return %c0_i32, %c0_i32_0 : i32, i32
  }
  func.func @transform_2(%arg0: i32) -> (i32, i32) {
    %c0_i32 = arith.constant 0 : i32
    %c0_i32_0 = arith.constant 0 : i32
    %c0_i32_1 = arith.constant 0 : i32
    return %c0_i32, %c0_i32_0 : i32, i32
  }
  func.func @transform_3(%arg0: i32) -> (i32, i32) {
    %c0_i32 = arith.constant 0 : i32
    %c0_i32_0 = arith.constant 0 : i32
    %c0_i32_1 = arith.constant 0 : i32
    return %c0_i32, %c0_i32_0 : i32, i32
  }
}

</mosaic_0001>

<bundles_post_ra>
// kernel: resnet_forward.15
= control target key start
LH: loop header
LB: loop body
LE: loop exit
PB: predicated region body
PF: predicated region fallthrough
CT: control target
= control target key end

     0   :  { %s1194_s12 = smov 0   ;;  %s1196_s13 = smov 0   ;;  %s1458_s0 = inlined_call_operand.vmem [shape: bf16[49,512,8], index: 0, kind: input, shape index: {}]   ;;  %s1459_s1 = inlined_call_operand.vmem [shape: bf16[49,8,64], index: 1, kind: input, shape index: {}]   ;;  %s1460_s2 = inlined_call_operand.vmem [shape: f32[1,64], index: 2, kind: input, shape index: {}]   ;;  %s1461_s3 = inlined_call_operand.vmem [shape: f32[512,64], index: 3, kind: output, shape index: {}]  }
   0x1   :  { %s1198_s14 = smov 0   ;;  %s1200_s15 = smov 0  }
   0x2   :  { %s1202_s16 = smov 0  }
   0x3 LB: > { %s25_s17 = sadd.s32 1, %s1163_s14  ;;  %s32_s18 = sadd.s32 1, %s1167_s15  ;;  %s1171_s16 = sphi %s1202_s16, %s13_s16   ;;  %s1167_s15 = sphi %s1200_s15, %s1465_s15   ;;  %s1163_s14 = sphi %s1198_s14, %s1464_s14   ;;  %s1159_s13 = sphi %s1196_s13, %s1463_s13   ;;  %s1155_s12 = sphi %s1194_s12, %s1462_s12  }
   0x4   : > { %p26_p0 = scmp.ge.s32.totalorder %s25_s17, 49  ;;  %p977_p1 = scmp.ge.s32.totalorder %s1171_s16, 1 }
   0x5   : > { %p187_p2 = scmp.lt.s32.totalorder %s1171_s16, 99 }
   0x6   : > { %s1467_s17 = smov (%p26_p0, %s25_s17), 0  ;;  %s1469_s18 = smov (!%p26_p0, %s32_s18), %s1167_s15 }
   0x7   : > { %p188_p3 = pnand %p977_p1, %p187_p2  ;;  %p34_p4 = scmp.ge.s32.totalorder %s1469_s18, 2 }
   0x8   : > { %s978_s19 = sshll.u32 (!%p188_p3), %s1159_s13, 5  ;;  %p229_p5 = scmp.lt.s32.totalorder (!%p188_p3), %s1155_s12, 48 }
   0x9   : > { %s1471_s18 = smov (%p34_p4, %s1469_s18), 0  ;;  %191 = sbr.rel (%p188_p3) target bundleno = 290 (0x122), region = 32 }
   0xa   : > { %p231_p6 = scmp.lt.s32.totalorder (!%p188_p3), %s978_s19, 63  ;;  %p984_p7 = scmp.ne.s32.totalorder (!%p188_p3), %s1155_s12, 0 }
   0xe   : > { %s230_s20 = scalar_select %p229_p5, %s1155_s12, 48 }
   0xf   : > { %s1473_s19 = smov (!%p231_p6, %s978_s19), 63  ;;  %261 = sbr.rel (%p984_p7) target bundleno = 37 (0x25), region = 36 }
  0x10   : > { %s979_s21 = sshll.u32 %s230_s20, 6  ;;  %s981_s22 = sshll.u32 %s230_s20, 2 }
  0x11   : > { %s234_s23 = sadd.s32 %s979_s21, %s1473_s19  ;;  %s1231_s26 = scalar_lea.vmem %s1459_s1, %s981_s22 }
  0x12   : > { %s980_s27 = sshll.u32 %s234_s23, 2  ;;  %s983_s28 = sshll.u32 %s1473_s19, 3 }
  0x13   : > { %s1236_s4 = scalar_lea.vmem %s1458_s0, %s980_s27  ;;  %s1241_s7 = scalar_lea.vmem %s1461_s3, %s983_s28 }
  0x14   : > { %vm262_vm0 = vcmask 523264   ;;  %v1173_v0 = vmov 0.0  }
  0x15   : > { %263 = vst.msk [vmem:[#allocation2] sm:$0xff] %vm262_vm0, %v1173_v0  ;;  %264 = vst.msk [vmem:[#allocation2 + $0x8] sm:$0xff] %vm262_vm0, %v1173_v0 }
  0x16   : > { %265 = vst.msk [vmem:[#allocation2 + $0x10] sm:$0xff] %vm262_vm0, %v1173_v0  ;;  %266 = vst.msk [vmem:[#allocation2 + $0x18] sm:$0xff] %vm262_vm0, %v1173_v0 }
  0x17   : > { %267 = vst.msk [vmem:[#allocation2 + $0x20] sm:$0xff] %vm262_vm0, %v1173_v0  ;;  %268 = vst.msk [vmem:[#allocation2 + $0x28] sm:$0xff] %vm262_vm0, %v1173_v0 }
  0x18   : > { %269 = vst.msk [vmem:[#allocation2 + $0x30] sm:$0xff] %vm262_vm0, %v1173_v0  ;;  %270 = vst.msk [vmem:[#allocation2 + $0x38] sm:$0xff] %vm262_vm0, %v1173_v0 }
  0x19   : > { %271 = vst.msk [vmem:[#allocation2 + $0x40] sm:$0xff] %vm262_vm0, %v1173_v0  ;;  %272 = vst.msk [vmem:[#allocation2 + $0x48] sm:$0xff] %vm262_vm0, %v1173_v0 }
  0x1a   : > { %273 = vst.msk [vmem:[#allocation2 + $0x50] sm:$0xff] %vm262_vm0, %v1173_v0  ;;  %274 = vst.msk [vmem:[#allocation2 + $0x58] sm:$0xff] %vm262_vm0, %v1173_v0 }
  0x1b   : > { %275 = vst.msk [vmem:[#allocation2 + $0x60] sm:$0xff] %vm262_vm0, %v1173_v0  ;;  %276 = vst.msk [vmem:[#allocation2 + $0x68] sm:$0xff] %vm262_vm0, %v1173_v0 }
  0x1c   : > { %277 = vst.msk [vmem:[#allocation2 + $0x70] sm:$0xff] %vm262_vm0, %v1173_v0  ;;  %278 = vst.msk [vmem:[#allocation2 + $0x78] sm:$0xff] %vm262_vm0, %v1173_v0 }
  0x1d   : > { %279 = vst.msk [vmem:[#allocation2 + $0x80] sm:$0xff] %vm262_vm0, %v1173_v0  ;;  %280 = vst.msk [vmem:[#allocation2 + $0x88] sm:$0xff] %vm262_vm0, %v1173_v0 }
  0x1e   : > { %281 = vst.msk [vmem:[#allocation2 + $0x90] sm:$0xff] %vm262_vm0, %v1173_v0  ;;  %282 = vst.msk [vmem:[#allocation2 + $0x98] sm:$0xff] %vm262_vm0, %v1173_v0 }
  0x1f   : > { %283 = vst.msk [vmem:[#allocation2 + $0xa0] sm:$0xff] %vm262_vm0, %v1173_v0  ;;  %284 = vst.msk [vmem:[#allocation2 + $0xa8] sm:$0xff] %vm262_vm0, %v1173_v0 }
  0x20   : > { %285 = vst.msk [vmem:[#allocation2 + $0xb0] sm:$0xff] %vm262_vm0, %v1173_v0  ;;  %286 = vst.msk [vmem:[#allocation2 + $0xb8] sm:$0xff] %vm262_vm0, %v1173_v0 }
  0x21   : > { %287 = vst.msk [vmem:[#allocation2 + $0xc0] sm:$0xff] %vm262_vm0, %v1173_v0  ;;  %288 = vst.msk [vmem:[#allocation2 + $0xc8] sm:$0xff] %vm262_vm0, %v1173_v0 }
  0x22   : > { %289 = vst.msk [vmem:[#allocation2 + $0xd0] sm:$0xff] %vm262_vm0, %v1173_v0  ;;  %290 = vst.msk [vmem:[#allocation2 + $0xd8] sm:$0xff] %vm262_vm0, %v1173_v0 }
  0x23   : > { %291 = vst.msk [vmem:[#allocation2 + $0xe0] sm:$0xff] %vm262_vm0, %v1173_v0  ;;  %292 = vst.msk [vmem:[#allocation2 + $0xe8] sm:$0xff] %vm262_vm0, %v1173_v0 }
  0x24   : > { %293 = vst.msk [vmem:[#allocation2 + $0xf0] sm:$0xff] %vm262_vm0, %v1173_v0  ;;  %294 = vst.msk [vmem:[#allocation2 + $0xf8] sm:$0xff] %vm262_vm0, %v1173_v0 }
  0x25 PF: > { %v359_v1 = vld [vmem:[%s1231_s26] sm:$0xf]  ;;  %vm489_vm1 = vcmask 1043456   ;;  %vm440_vm2 = vcmask 64512   ;;  %v1119_v5 = vld [vmem:[%s1236_s4 + $0x8] sm:$0xff]   ;;  %v1121_v7 = vld [vmem:[%s1236_s4 + $0x10] sm:$0xff]  }
  0x26   : > { %v1117_v2 = vld [vmem:[%s1236_s4] sm:$0xff]   ;;  %1074 = vmatprep.subr.msk.bf16.mxu0 %vm489_vm1, %v359_v1  ;;  %1075 = vmatprep.subr.msk.bf16.mxu1 %vm489_vm1, %v359_v1  ;;  %v491_v3 = vsel %vm489_vm1, %v359_v1, 0  ;;  %v1120_v6 = vld [vmem:[%s1236_s4 + $0x48] sm:$0xff]   ;;  %v1122_v8 = vld [vmem:[%s1236_s4 + $0x50] sm:$0xff]   ;;  %vm686_vm3 = vcmask 523264   ;;  %p1017_p8 = scmp.ne.s32.totalorder %s1155_s12, 48 }
  0x27   : > { %1039 = vmatpush3.bf16.msra.mxu0 %v491_v3  ;;  %1073 = vmatpush3.bf16.msra.mxu1 %v491_v3  ;;  %v1118_v4 = vld [vmem:[%s1236_s4 + $0x40] sm:$0xff]   ;;  %v1123_v9 = vld [vmem:[%s1236_s4 + $0x18] sm:$0xff]   ;;  %v1127_v13 = vld [vmem:[%s1236_s4 + $0x28] sm:$0xff]  }
  0x28   : > { %1040 = vmatprep.mubr.msk.bf16.mxu0 %vm440_vm2, %v1117_v2  ;;  %1056 = vmatprep.mubr.msk.bf16.mxu1 %vm440_vm2, %v1118_v4  ;;  %v1124_v10 = vld [vmem:[%s1236_s4 + $0x58] sm:$0xff]   ;;  %v1125_v11 = vld [vmem:[%s1236_s4 + $0x20] sm:$0xff]   ;;  %v1128_v14 = vld [vmem:[%s1236_s4 + $0x68] sm:$0xff]  }
  0x29   : > { %v1126_v12 = vld [vmem:[%s1236_s4 + $0x60] sm:$0xff]   ;;  %v1129_v15 = vld [vmem:[%s1236_s4 + $0x30] sm:$0xff]   ;;  %v1131_v17 = vld [vmem:[%s1236_s4 + $0x38] sm:$0xff]  }
  0x2a   : > { %1041 = vmatmul.mubr.msk.bf16.vlgmr.msra.gmra.mxu0 %vm440_vm2, %v1119_v5  ;;  %1057 = vmatmul.mubr.msk.bf16.vlgmr.msra.gmra.mxu1 %vm440_vm2, %v1120_v6  ;;  %v1130_v16 = vld [vmem:[%s1236_s4 + $0x70] sm:$0xff]   ;;  %v1132_v18 = vld [vmem:[%s1236_s4 + $0x78] sm:$0xff]   ;;  %v295_v22 = vld [vmem:[#allocation2] sm:$0xff] }
  0x2b   : > { %1044 = vmatprep.mubr.msk.bf16.mxu0 %vm440_vm2, %v1121_v7  ;;  %1060 = vmatprep.mubr.msk.bf16.mxu1 %vm440_vm2, %v1122_v8  ;;  %v297_v19 = vld [vmem:[#allocation2 + $0x10] sm:$0xff]  ;;  %v311_v25 = vld [vmem:[#allocation2 + $0x80] sm:$0xff]  ;;  %v298_v28 = vld [vmem:[#allocation2 + $0x18] sm:$0xff] }
  0x2c   : > { %v313_v20 = vld [vmem:[#allocation2 + $0x90] sm:$0xff]  ;;  %v314_v31 = vld [vmem:[#allocation2 + $0x98] sm:$0xff]  ;;  %v296_v34 = vld [vmem:[#allocation2 + $0x8] sm:$0xff] }
  0x2d   : > { %v312_v37 = vld [vmem:[#allocation2 + $0x88] sm:$0xff]  ;;  %v301_v40 = vld [vmem:[#allocation2 + $0x30] sm:$0xff]  ;;  %v299_v46 = vld [vmem:[#allocation2 + $0x20] sm:$0xff] }
  0x2e   : > { %v317_v43 = vld [vmem:[#allocation2 + $0xb0] sm:$0xff]  ;;  %v315_v49 = vld [vmem:[#allocation2 + $0xa0] sm:$0xff]  ;;  %v302_v52 = vld [vmem:[#allocation2 + $0x38] sm:$0xff] }
  0x2f   : > { %v318_v55 = vld [vmem:[#allocation2 + $0xb8] sm:$0xff]  ;;  %v300_v58 = vld [vmem:[#allocation2 + $0x28] sm:$0xff]  ;;  %v305_v0 = vld [vmem:[#allocation2 + $0x50] sm:$0xff] }
  0x30   : > { %v316_v61 = vld [vmem:[#allocation2 + $0xa8] sm:$0xff]  ;;  %v321_v3 = vld [vmem:[#allocation2 + $0xd0] sm:$0xff]  ;;  %v303_v6 = vld [vmem:[#allocation2 + $0x40] sm:$0xff] }
  0x32   : > { %1045 = vmatmul.mubr.msk.bf16.gmra.mxu0 %vm440_vm2, %v1123_v9  ;;  %1061 = vmatmul.mubr.msk.bf16.gmra.mxu1 %vm440_vm2, %v1124_v10  ;;  %v319_v9 = vld [vmem:[#allocation2 + $0xc0] sm:$0xff] }
  0x33   : > { %1048 = vmatprep.mubr.msk.bf16.mxu0 %vm440_vm2, %v1125_v11  ;;  %1064 = vmatprep.mubr.msk.bf16.mxu1 %vm440_vm2, %v1126_v12  ;;  %v306_v12 = vld [vmem:[#allocation2 + $0x58] sm:$0xff] }
  0x3a   : > { %1049 = vmatmul.mubr.msk.bf16.gmra.mxu0 %vm440_vm2, %v1127_v13  ;;  %1065 = vmatmul.mubr.msk.bf16.gmra.mxu1 %vm440_vm2, %v1128_v14 }
  0x3b   : > { %1052 = vmatprep.mubr.msk.bf16.mxu0 %vm440_vm2, %v1129_v15  ;;  %1068 = vmatprep.mubr.msk.bf16.mxu1 %vm440_vm2, %v1130_v16  ;;  %v322_v15 = vld [vmem:[#allocation2 + $0xd8] sm:$0xff] }
  0x42   : > { %1053 = vmatmul.mubr.msk.bf16.gmra.mxu0 %vm440_vm2, %v1131_v17  ;;  %1069 = vmatmul.mubr.msk.bf16.gmra.mxu1 %vm440_vm2, %v1132_v18  ;;  %v304_v18 = vld [vmem:[#allocation2 + $0x48] sm:$0xff] }
  0xea   : > { %v1042_v21 = vpop.f32.mrf.mxu0  ;;  %v1058_v24 = vpop.f32.mrf.mxu1 }
  0xeb   : > { %v656_v23 = vadd.f32 %v1042_v21, %v297_v19  ;;  %v672_v26 = vadd.f32 %v1058_v24, %v313_v20  ;;  %v320_v21 = vld [vmem:[#allocation2 + $0xc8] sm:$0xff]  ;;  %v309_v24 = vld [vmem:[#allocation2 + $0x70] sm:$0xff] }
  0xec   : > { %v527_v27 = vpop.f32.mrf.mxu0  ;;  %v591_v30 = vpop.f32.mrf.mxu1 }
  0xed   : > { %689 = vst.msk [vmem:[#allocation2 + $0x10] sm:$0xff] %vm686_vm3, %v656_v23  ;;  %v654_v29 = vadd.f32 %v527_v27, %v295_v22  ;;  %705 = vst.msk [vmem:[#allocation2 + $0x90] sm:$0xff] %vm686_vm3, %v672_v26  ;;  %v670_v32 = vadd.f32 %v591_v30, %v311_v25  ;;  %v325_v27 = vld [vmem:[#allocation2 + $0xf0] sm:$0xff]  ;;  %v307_v30 = vld [vmem:[#allocation2 + $0x60] sm:$0xff] }
  0xee   : > { %v1043_v33 = vpop.f32.mrf.mxu0  ;;  %v1059_v36 = vpop.f32.mrf.mxu1 }
  0xef   : > { %687 = vst.msk [vmem:[#allocation2] sm:$0xff] %vm686_vm3, %v654_v29  ;;  %v657_v35 = vadd.f32 %v1043_v33, %v298_v28  ;;  %703 = vst.msk [vmem:[#allocation2 + $0x80] sm:$0xff] %vm686_vm3, %v670_v32  ;;  %v673_v38 = vadd.f32 %v1059_v36, %v314_v31  ;;  %v323_v33 = vld [vmem:[#allocation2 + $0xe0] sm:$0xff]  ;;  %v310_v36 = vld [vmem:[#allocation2 + $0x78] sm:$0xff] }
  0xf0   : > { %v530_v39 = vpop.f32.mrf.mxu0  ;;  %v594_v42 = vpop.f32.mrf.mxu1 }
  0xf1   : > { %690 = vst.msk [vmem:[#allocation2 + $0x18] sm:$0xff] %vm686_vm3, %v657_v35  ;;  %v655_v41 = vadd.f32 %v530_v39, %v296_v34  ;;  %706 = vst.msk [vmem:[#allocation2 + $0x98] sm:$0xff] %vm686_vm3, %v673_v38  ;;  %v671_v44 = vadd.f32 %v594_v42, %v312_v37  ;;  %v326_v39 = vld [vmem:[#allocation2 + $0xf8] sm:$0xff]  ;;  %v308_v42 = vld [vmem:[#allocation2 + $0x68] sm:$0xff] }
  0xf2   : > { %v1046_v45 = vpop.f32.mrf.mxu0  ;;  %v1062_v48 = vpop.f32.mrf.mxu1 }
  0xf3   : > { %688 = vst.msk [vmem:[#allocation2 + $0x8] sm:$0xff] %vm686_vm3, %v655_v41  ;;  %v660_v47 = vadd.f32 %v1046_v45, %v301_v40  ;;  %704 = vst.msk [vmem:[#allocation2 + $0x88] sm:$0xff] %vm686_vm3, %v671_v44  ;;  %v676_v50 = vadd.f32 %v1062_v48, %v317_v43  ;;  %v324_v45 = vld [vmem:[#allocation2 + $0xe8] sm:$0xff] }
  0xf4   : > { %v543_v51 = vpop.f32.mrf.mxu0  ;;  %v607_v54 = vpop.f32.mrf.mxu1 }
  0xf5   : > { %693 = vst.msk [vmem:[#allocation2 + $0x30] sm:$0xff] %vm686_vm3, %v660_v47  ;;  %v658_v53 = vadd.f32 %v543_v51, %v299_v46  ;;  %709 = vst.msk [vmem:[#allocation2 + $0xb0] sm:$0xff] %vm686_vm3, %v676_v50  ;;  %v674_v56 = vadd.f32 %v607_v54, %v315_v49 }
  0xf6   : > { %v1047_v57 = vpop.f32.mrf.mxu0  ;;  %v1063_v60 = vpop.f32.mrf.mxu1 }
  0xf7   : > { %691 = vst.msk [vmem:[#allocation2 + $0x20] sm:$0xff] %vm686_vm3, %v658_v53  ;;  %v661_v59 = vadd.f32 %v1047_v57, %v302_v52  ;;  %707 = vst.msk [vmem:[#allocation2 + $0xa0] sm:$0xff] %vm686_vm3, %v674_v56  ;;  %v677_v62 = vadd.f32 %v1063_v60, %v318_v55 }
  0xf8   : > { %v546_v63 = vpop.f32.mrf.mxu0  ;;  %v610_v2 = vpop.f32.mrf.mxu1 }
  0xf9   : > { %694 = vst.msk [vmem:[#allocation2 + $0x38] sm:$0xff] %vm686_vm3, %v661_v59  ;;  %v659_v1 = vadd.f32 %v546_v63, %v300_v58  ;;  %710 = vst.msk [vmem:[#allocation2 + $0xb8] sm:$0xff] %vm686_vm3, %v677_v62  ;;  %v675_v4 = vadd.f32 %v610_v2, %v316_v61 }
  0xfa   : > { %v1050_v5 = vpop.f32.mrf.mxu0  ;;  %v1066_v8 = vpop.f32.mrf.mxu1 }
  0xfb   : > { %692 = vst.msk [vmem:[#allocation2 + $0x28] sm:$0xff] %vm686_vm3, %v659_v1  ;;  %v664_v7 = vadd.f32 %v1050_v5, %v305_v0  ;;  %708 = vst.msk [vmem:[#allocation2 + $0xa8] sm:$0xff] %vm686_vm3, %v675_v4  ;;  %v680_v10 = vadd.f32 %v1066_v8, %v321_v3 }
  0xfc   : > { %v559_v11 = vpop.f32.mrf.mxu0  ;;  %v623_v14 = vpop.f32.mrf.mxu1 }
  0xfd   : > { %697 = vst.msk [vmem:[#allocation2 + $0x50] sm:$0xff] %vm686_vm3, %v664_v7  ;;  %v662_v13 = vadd.f32 %v559_v11, %v303_v6  ;;  %713 = vst.msk [vmem:[#allocation2 + $0xd0] sm:$0xff] %vm686_vm3, %v680_v10  ;;  %v678_v16 = vadd.f32 %v623_v14, %v319_v9 }
  0xfe   : > { %v1051_v17 = vpop.f32.mrf.mxu0  ;;  %v1067_v20 = vpop.f32.mrf.mxu1 }
  0xff   : > { %695 = vst.msk [vmem:[#allocation2 + $0x40] sm:$0xff] %vm686_vm3, %v662_v13  ;;  %v665_v19 = vadd.f32 %v1051_v17, %v306_v12  ;;  %711 = vst.msk [vmem:[#allocation2 + $0xc0] sm:$0xff] %vm686_vm3, %v678_v16  ;;  %v681_v22 = vadd.f32 %v1067_v20, %v322_v15 }
 0x100   : > { %v562_v23 = vpop.f32.mrf.mxu0  ;;  %v626_v26 = vpop.f32.mrf.mxu1 }
 0x101   : > { %698 = vst.msk [vmem:[#allocation2 + $0x58] sm:$0xff] %vm686_vm3, %v665_v19  ;;  %v663_v25 = vadd.f32 %v562_v23, %v304_v18  ;;  %714 = vst.msk [vmem:[#allocation2 + $0xd8] sm:$0xff] %vm686_vm3, %v681_v22  ;;  %v679_v28 = vadd.f32 %v626_v26, %v320_v21 }
 0x102   : > { %v1054_v29 = vpop.f32.mrf.mxu0  ;;  %v1070_v32 = vpop.f32.mrf.mxu1 }
 0x103   : > { %696 = vst.msk [vmem:[#allocation2 + $0x48] sm:$0xff] %vm686_vm3, %v663_v25  ;;  %v668_v31 = vadd.f32 %v1054_v29, %v309_v24  ;;  %712 = vst.msk [vmem:[#allocation2 + $0xc8] sm:$0xff] %vm686_vm3, %v679_v28  ;;  %v684_v34 = vadd.f32 %v1070_v32, %v325_v27 }
 0x104   : > { %v575_v35 = vpop.f32.mrf.mxu0  ;;  %v639_v38 = vpop.f32.mrf.mxu1 }
 0x105   : > { %701 = vst.msk [vmem:[#allocation2 + $0x70] sm:$0xff] %vm686_vm3, %v668_v31  ;;  %v666_v37 = vadd.f32 %v575_v35, %v307_v30  ;;  %717 = vst.msk [vmem:[#allocation2 + $0xf0] sm:$0xff] %vm686_vm3, %v684_v34  ;;  %v682_v40 = vadd.f32 %v639_v38, %v323_v33 }
 0x106   : > { %v1055_v41 = vpop.f32.mrf.mxu0  ;;  %v1071_v44 = vpop.f32.mrf.mxu1 }
 0x107   : > { %699 = vst.msk [vmem:[#allocation2 + $0x60] sm:$0xff] %vm686_vm3, %v666_v37  ;;  %v669_v43 = vadd.f32 %v1055_v41, %v310_v36  ;;  %715 = vst.msk [vmem:[#allocation2 + $0xe0] sm:$0xff] %vm686_vm3, %v682_v40  ;;  %v685_v46 = vadd.f32 %v1071_v44, %v326_v39  ;;  %722 = sbr.rel (%p1017_p8) target bundleno = 290 (0x122), region = 40 }
 0x108   : > { %v578_v47 = vpop.f32.mrf.mxu0  ;;  %v642_v49 = vpop.f32.mrf.mxu1 }
 0x109   : > { %702 = vst.msk [vmem:[#allocation2 + $0x78] sm:$0xff] %vm686_vm3, %v669_v43  ;;  %v667_v48 = vadd.f32 %v578_v47, %v308_v42  ;;  %718 = vst.msk [vmem:[#allocation2 + $0xf8] sm:$0xff] %vm686_vm3, %v685_v46  ;;  %v683_v50 = vadd.f32 %v642_v49, %v324_v45 }
 0x10b   : > { %700 = vst.msk [vmem:[#allocation2 + $0x68] sm:$0xff] %vm686_vm3, %v667_v48  ;;  %716 = vst.msk [vmem:[#allocation2 + $0xe8] sm:$0xff] %vm686_vm3, %v683_v50 }
 0x10c   : > { %v723_v51 = vld [vmem:[#allocation2] sm:$0xff]  ;;  %v724_v53 = vld [vmem:[#allocation2 + $0x8] sm:$0xff]  ;;  %v725_v56 = vld [vmem:[#allocation2 + $0x10] sm:$0xff] }
 0x10d   : > { %v1345_v52 = vld [vmem:[%s1460_s2] ss:$0 sm:$0xff]  ;;  %v726_v57 = vld [vmem:[#allocation2 + $0x18] sm:$0xff]  ;;  %v728_v62 = vld [vmem:[#allocation2 + $0x28] sm:$0xff] }
 0x10e   : > { %v762_v54 = vadd.f32 %v1345_v52, %v723_v51  ;;  %v763_v55 = vadd.f32 %v1345_v52, %v724_v53  ;;  %v727_v58 = vld [vmem:[#allocation2 + $0x20] sm:$0xff]  ;;  %v764_v59 = vadd.f32 %v1345_v52, %v725_v56  ;;  %v765_v60 = vadd.f32 %v1345_v52, %v726_v57  ;;  %v729_v63 = vld [vmem:[#allocation2 + $0x30] sm:$0xff]  ;;  %v730_v0 = vld [vmem:[#allocation2 + $0x38] sm:$0xff] }
 0x10f   : > { %v766_v61 = vadd.f32 %v1345_v52, %v727_v58  ;;  %v767_v3 = vadd.f32 %v1345_v52, %v728_v62  ;;  %v768_v4 = vadd.f32 %v1345_v52, %v729_v63  ;;  %v731_v5 = vld [vmem:[#allocation2 + $0x40] sm:$0xff]  ;;  %v732_v6 = vld [vmem:[#allocation2 + $0x48] sm:$0xff]  ;;  %v733_v7 = vld [vmem:[#allocation2 + $0x50] sm:$0xff]  ;;  %v769_v11 = vadd.f32 %v1345_v52, %v730_v0 }
 0x110   : > { %v794_v1 = vmax.f32 %v762_v54, 0.0  ;;  %v795_v2 = vmax.f32 %v763_v55, 0.0  ;;  %v796_v8 = vmax.f32 %v764_v59, 0.0  ;;  %v797_v9 = vmax.f32 %v765_v60, 0.0  ;;  %v734_v12 = vld [vmem:[#allocation2 + $0x58] sm:$0xff]  ;;  %v735_v13 = vld [vmem:[#allocation2 + $0x60] sm:$0xff] }
 0x111   : > { %v798_v10 = vmax.f32 %v766_v61, 0.0  ;;  %v799_v15 = vmax.f32 %v767_v3, 0.0  ;;  %v800_v16 = vmax.f32 %v768_v4, 0.0  ;;  %v770_v17 = vadd.f32 %v1345_v52, %v731_v5  ;;  %v737_v19 = vld [vmem:[#allocation2 + $0x70] sm:$0xff]  ;;  %v738_v20 = vld [vmem:[#allocation2 + $0x78] sm:$0xff]  ;;  %v739_v25 = vld [vmem:[#allocation2 + $0x80] sm:$0xff] }
 0x112   : > { %v736_v14 = vld [vmem:[#allocation2 + $0x68] sm:$0xff]  ;;  %826 = vst.msk [vmem:[%s1241_s7] sm:$0xff] %vm686_vm3, %v794_v1  ;;  %827 = vst.msk [vmem:[%s1241_s7 + $0x8] sm:$0xff] %vm686_vm3, %v795_v2  ;;  %v771_v18 = vadd.f32 %v1345_v52, %v732_v6  ;;  %v801_v21 = vmax.f32 %v769_v11, 0.0  ;;  %v772_v22 = vadd.f32 %v1345_v52, %v733_v7  ;;  %v773_v23 = vadd.f32 %v1345_v52, %v734_v12  ;;  %v741_v31 = vld [vmem:[#allocation2 + $0x90] sm:$0xff] }
 0x113   : > { %828 = vst.msk [vmem:[%s1241_s7 + $0x10] sm:$0xff] %vm686_vm3, %v796_v8  ;;  %829 = vst.msk [vmem:[%s1241_s7 + $0x18] sm:$0xff] %vm686_vm3, %v797_v9  ;;  %v774_v24 = vadd.f32 %v1345_v52, %v735_v13  ;;  %v740_v26 = vld [vmem:[#allocation2 + $0x88] sm:$0xff]  ;;  %v802_v27 = vmax.f32 %v770_v17, 0.0  ;;  %v775_v29 = vadd.f32 %v1345_v52, %v736_v14  ;;  %v776_v30 = vadd.f32 %v1345_v52, %v737_v19  ;;  %v742_v32 = vld [vmem:[#allocation2 + $0x98] sm:$0xff] }
 0x114   : > { %830 = vst.msk [vmem:[%s1241_s7 + $0x20] sm:$0xff] %vm686_vm3, %v798_v10  ;;  %831 = vst.msk [vmem:[%s1241_s7 + $0x28] sm:$0xff] %vm686_vm3, %v799_v15  ;;  %v803_v28 = vmax.f32 %v771_v18, 0.0  ;;  %v743_v33 = vld [vmem:[#allocation2 + $0xa0] sm:$0xff]  ;;  %v804_v34 = vmax.f32 %v772_v22, 0.0  ;;  %v805_v35 = vmax.f32 %v773_v23, 0.0  ;;  %v777_v37 = vadd.f32 %v1345_v52, %v738_v20 }
 0x115   : > { %832 = vst.msk [vmem:[%s1241_s7 + $0x30] sm:$0xff] %vm686_vm3, %v800_v16  ;;  %833 = vst.msk [vmem:[%s1241_s7 + $0x38] sm:$0xff] %vm686_vm3, %v801_v21  ;;  %v806_v36 = vmax.f32 %v774_v24, 0.0  ;;  %v744_v38 = vld [vmem:[#allocation2 + $0xa8] sm:$0xff]  ;;  %v745_v39 = vld [vmem:[#allocation2 + $0xb0] sm:$0xff]  ;;  %v807_v40 = vmax.f32 %v775_v29, 0.0  ;;  %v778_v42 = vadd.f32 %v1345_v52, %v739_v25  ;;  %v779_v43 = vadd.f32 %v1345_v52, %v740_v26 }
 0x116   : > { %834 = vst.msk [vmem:[%s1241_s7 + $0x40] sm:$0xff] %vm686_vm3, %v802_v27  ;;  %835 = vst.msk [vmem:[%s1241_s7 + $0x48] sm:$0xff] %vm686_vm3, %v803_v28  ;;  %v808_v41 = vmax.f32 %v776_v30, 0.0  ;;  %v746_v44 = vld [vmem:[#allocation2 + $0xb8] sm:$0xff]  ;;  %v809_v45 = vmax.f32 %v777_v37, 0.0  ;;  %v780_v46 = vadd.f32 %v1345_v52, %v741_v31  ;;  %v781_v47 = vadd.f32 %v1345_v52, %v742_v32  ;;  %v747_v49 = vld [vmem:[#allocation2 + $0xc0] sm:$0xff] }
 0x117   : > { %836 = vst.msk [vmem:[%s1241_s7 + $0x50] sm:$0xff] %vm686_vm3, %v804_v34  ;;  %837 = vst.msk [vmem:[%s1241_s7 + $0x58] sm:$0xff] %vm686_vm3, %v805_v35  ;;  %v782_v48 = vadd.f32 %v1345_v52, %v743_v33  ;;  %v748_v50 = vld [vmem:[#allocation2 + $0xc8] sm:$0xff]  ;;  %v810_v51 = vmax.f32 %v778_v42, 0.0  ;;  %v811_v53 = vmax.f32 %v779_v43, 0.0  ;;  %v783_v54 = vadd.f32 %v1345_v52, %v744_v38  ;;  %v749_v56 = vld [vmem:[#allocation2 + $0xd0] sm:$0xff] }
 0x118   : > { %838 = vst.msk [vmem:[%s1241_s7 + $0x60] sm:$0xff] %vm686_vm3, %v806_v36  ;;  %839 = vst.msk [vmem:[%s1241_s7 + $0x68] sm:$0xff] %vm686_vm3, %v807_v40  ;;  %v784_v55 = vadd.f32 %v1345_v52, %v745_v39  ;;  %v750_v57 = vld [vmem:[#allocation2 + $0xd8] sm:$0xff]  ;;  %v751_v58 = vld [vmem:[#allocation2 + $0xe0] sm:$0xff]  ;;  %v812_v59 = vmax.f32 %v780_v46, 0.0  ;;  %v813_v60 = vmax.f32 %v781_v47, 0.0  ;;  %v785_v62 = vadd.f32 %v1345_v52, %v746_v44 }
 0x119   : > { %840 = vst.msk [vmem:[%s1241_s7 + $0x70] sm:$0xff] %vm686_vm3, %v808_v41  ;;  %841 = vst.msk [vmem:[%s1241_s7 + $0x78] sm:$0xff] %vm686_vm3, %v809_v45  ;;  %v814_v61 = vmax.f32 %v782_v48, 0.0  ;;  %v752_v63 = vld [vmem:[#allocation2 + $0xe8] sm:$0xff]  ;;  %v753_v0 = vld [vmem:[#allocation2 + $0xf0] sm:$0xff]  ;;  %v815_v1 = vmax.f32 %v783_v54, 0.0  ;;  %v786_v3 = vadd.f32 %v1345_v52, %v747_v49  ;;  %v787_v4 = vadd.f32 %v1345_v52, %v748_v50 }
 0x11a   : > { %842 = vst.msk [vmem:[%s1241_s7 + $0x80] sm:$0xff] %vm686_vm3, %v810_v51  ;;  %843 = vst.msk [vmem:[%s1241_s7 + $0x88] sm:$0xff] %vm686_vm3, %v811_v53  ;;  %v816_v2 = vmax.f32 %v784_v55, 0.0  ;;  %v754_v5 = vld [vmem:[#allocation2 + $0xf8] sm:$0xff]  ;;  %v817_v6 = vmax.f32 %v785_v62, 0.0  ;;  %v788_v7 = vadd.f32 %v1345_v52, %v749_v56  ;;  %v789_v8 = vadd.f32 %v1345_v52, %v750_v57 }
 0x11b   : > { %844 = vst.msk [vmem:[%s1241_s7 + $0x90] sm:$0xff] %vm686_vm3, %v812_v59  ;;  %845 = vst.msk [vmem:[%s1241_s7 + $0x98] sm:$0xff] %vm686_vm3, %v813_v60  ;;  %v790_v9 = vadd.f32 %v1345_v52, %v751_v58  ;;  %v818_v10 = vmax.f32 %v786_v3, 0.0  ;;  %v819_v11 = vmax.f32 %v787_v4, 0.0  ;;  %v791_v12 = vadd.f32 %v1345_v52, %v752_v63 }
 0x11c   : > { %846 = vst.msk [vmem:[%s1241_s7 + $0xa0] sm:$0xff] %vm686_vm3, %v814_v61  ;;  %847 = vst.msk [vmem:[%s1241_s7 + $0xa8] sm:$0xff] %vm686_vm3, %v815_v1  ;;  %v792_v13 = vadd.f32 %v1345_v52, %v753_v0  ;;  %v820_v14 = vmax.f32 %v788_v7, 0.0  ;;  %v821_v15 = vmax.f32 %v789_v8, 0.0  ;;  %v793_v17 = vadd.f32 %v1345_v52, %v754_v5 }
 0x11d   : > { %848 = vst.msk [vmem:[%s1241_s7 + $0xb0] sm:$0xff] %vm686_vm3, %v816_v2  ;;  %849 = vst.msk [vmem:[%s1241_s7 + $0xb8] sm:$0xff] %vm686_vm3, %v817_v6  ;;  %v822_v16 = vmax.f32 %v790_v9, 0.0  ;;  %v823_v18 = vmax.f32 %v791_v12, 0.0 }
 0x11e   : > { %850 = vst.msk [vmem:[%s1241_s7 + $0xc0] sm:$0xff] %vm686_vm3, %v818_v10  ;;  %851 = vst.msk [vmem:[%s1241_s7 + $0xc8] sm:$0xff] %vm686_vm3, %v819_v11  ;;  %v824_v19 = vmax.f32 %v792_v13, 0.0  ;;  %v825_v20 = vmax.f32 %v793_v17, 0.0 }
 0x11f   : > { %852 = vst.msk [vmem:[%s1241_s7 + $0xd0] sm:$0xff] %vm686_vm3, %v820_v14  ;;  %853 = vst.msk [vmem:[%s1241_s7 + $0xd8] sm:$0xff] %vm686_vm3, %v821_v15 }
 0x120   : > { %854 = vst.msk [vmem:[%s1241_s7 + $0xe0] sm:$0xff] %vm686_vm3, %v822_v16  ;;  %855 = vst.msk [vmem:[%s1241_s7 + $0xe8] sm:$0xff] %vm686_vm3, %v823_v18 }
 0x121   : > { %856 = vst.msk [vmem:[%s1241_s7 + $0xf0] sm:$0xff] %vm686_vm3, %v824_v19  ;;  %857 = vst.msk [vmem:[%s1241_s7 + $0xf8] sm:$0xff] %vm686_vm3, %v825_v20 }
 0x122 PF: > { %s13_s16 = sadd.s32 1, %s1171_s16   ;;  %s1462_s12 = smov %s1163_s14 }
 0x123   : > { %p10_p9 = scmp.ge.s32.totalorder %s13_s16, 100   ;;  %s1463_s13 = smov %s1167_s15 }
 0x124   : > { %s1464_s14 = smov %s1467_s17  ;;  %s1465_s15 = smov %s1471_s18 }
 0x125   :  { %12 = sbr.rel (!%p10_p9) target bundleno = 3 (0x3), region = 76 }

// kernel: resnet_forward.16
= control target key start
LH: loop header
LB: loop body
LE: loop exit
PB: predicated region body
PF: predicated region fallthrough
CT: control target
= control target key end

     0   :  { %vm151_vm0 = vcmask 1046528   ;;  %vm468_vm1 = vcmask 519168   ;;  %s955_s0 = inlined_call_operand.vmem [shape: f32[2,9,9,64], index: 0, kind: input, shape index: {}]   ;;  %s956_s2 = inlined_call_operand.vmem [shape: f32[2,9,9,64], index: 2, kind: input, shape index: {}]   ;;  %s957_s1 = inlined_call_operand.vmem [shape: f32[2,9,9,64], index: 1, kind: input, shape index: {}]   ;;  %s958_s3 = inlined_call_operand.vmem [shape: f32[2,9,9,64], index: 3, kind: input, shape index: {}]   ;;  %s959_s4 = inlined_call_operand.vmem [shape: bf16[2,8,8,64], index: 4, kind: output, shape index: {}]  }
   0x1   :  { %v17_v0 = vld [vmem:[%s955_s0] sm:$0xff]  ;;  %v18_v1 = vld [vmem:[%s955_s0 + $0x8] sm:$0x1]  ;;  %v19_v2 = vld [vmem:[%s955_s0 + $0x10] sm:$0xff] }
   0x2   :  { %v20_v3 = vld [vmem:[%s955_s0 + $0x18] sm:$0x1]  ;;  %v152_v4 = vrot.slane %v17_v0, 1  ;;  %v153_v5 = vrot.slane %v18_v1, 1  ;;  %v529_v6 = vld [vmem:[%s956_s2] sm:$0xff]  ;;  %v155_v8 = vrot.slane %v19_v2, 1 }
   0x3   :  { %v72_v7 = vld [vmem:[%s956_s2 + $0x8] sm:$0x1]  ;;  %v156_v9 = vrot.slane %v20_v3, 1  ;;  %v356_v11 = vrot.slane %v529_v6, 1  ;;  %v21_v13 = vld [vmem:[%s955_s0 + $0x20] sm:$0xff]  ;;  %v546_v17 = vld [vmem:[%s956_s2 + $0x10] sm:$0xff] }
   0x4   :  { %v154_v10 = vsel %vm151_vm0, %v152_v4, %v153_v5  ;;  %v357_v12 = vrot.slane %v72_v7, 1  ;;  %v22_v14 = vld [vmem:[%s955_s0 + $0x28] sm:$0x1]  ;;  %v74_v18 = vld [vmem:[%s956_s2 + $0x18] sm:$0x1]  ;;  %v158_v19 = vrot.slane %v21_v13, 1 }
   0x5   :  { %v157_v15 = vsel %vm151_vm0, %v155_v8, %v156_v9  ;;  %v216_v16 = vmax.f32 %v17_v0, %v154_v10  ;;  %v159_v20 = vrot.slane %v22_v14, 1  ;;  %v359_v22 = vrot.slane %v546_v17, 1  ;;  %v23_v24 = vld [vmem:[%s955_s0 + $0x30] sm:$0xff]  ;;  %v24_v25 = vld [vmem:[%s955_s0 + $0x38] sm:$0x1]  ;;  %v562_v28 = vld [vmem:[%s956_s2 + $0x20] sm:$0xff] }
   0x6   :  { %v217_v21 = vmax.f32 %v19_v2, %v157_v15  ;;  %v360_v23 = vrot.slane %v74_v18, 1  ;;  %v76_v29 = vld [vmem:[%s956_s2 + $0x28] sm:$0x1]  ;;  %v161_v30 = vrot.slane %v23_v24, 1  ;;  %v162_v31 = vrot.slane %v24_v25, 1  ;;  %v53_v32 = vld [vmem:[%s957_s1] sm:$0xff] }
   0x7   :  { %v232_v26 = vmax.f32 %v216_v16, %v19_v2  ;;  %v160_v27 = vsel %vm151_vm0, %v158_v19, %v159_v20  ;;  %v571_v33 = vsel %vm151_vm0, %v356_v11, %v357_v12  ;;  %v362_v36 = vrot.slane %v562_v28, 1  ;;  %v25_v37 = vld [vmem:[%s955_s0 + $0x40] sm:$0xff]  ;;  %v26_v38 = vld [vmem:[%s955_s0 + $0x48] sm:$0x1]  ;;  %v54_v39 = vld [vmem:[%s957_s1 + $0x10] sm:$0xff] }
   0x8   :  { %v218_v34 = vmax.f32 %v21_v13, %v160_v27  ;;  %v233_v35 = vmax.f32 %v217_v21, %v21_v13  ;;  %v163_v41 = vsel %vm151_vm0, %v161_v30, %v162_v31  ;;  %v363_v42 = vrot.slane %v76_v29, 1  ;;  %v77_v43 = vld [vmem:[%s956_s2 + $0x30] sm:$0xff]  ;;  %v78_v48 = vld [vmem:[%s956_s2 + $0x38] sm:$0x1]  ;;  %v55_v52 = vld [vmem:[%s957_s1 + $0x20] sm:$0xff] }
   0x9   :  { %v260_v40 = vmax.f32 %v232_v26, %v157_v15  ;;  %v164_v44 = vrot.slane %v25_v37, 1  ;;  %v219_v46 = vmax.f32 %v23_v24, %v163_v41  ;;  %v165_v49 = vrot.slane %v26_v38, 1  ;;  %v27_v50 = vld [vmem:[%s955_s0 + $0x50] sm:$0xff]  ;;  %v28_v56 = vld [vmem:[%s955_s0 + $0x58] sm:$0x1]  ;;  %v79_v61 = vld [vmem:[%s956_s2 + $0x40] sm:$0xff] }
   0xa   :  { %v261_v45 = vmax.f32 %v233_v35, %v160_v27  ;;  %v234_v47 = vmax.f32 %v218_v34, %v23_v24  ;;  %v361_v53 = vsel %vm151_vm0, %v359_v22, %v360_v23  ;;  %v598_v54 = vsel %vm151_vm0, %v362_v36, %v363_v42  ;;  %v80_v62 = vld [vmem:[%s956_s2 + $0x48] sm:$0x1]  ;;  %v56_v0 = vld [vmem:[%s957_s1 + $0x30] sm:$0xff]  ;;  %v29_v13 = vld [vmem:[%s955_s0 + $0x60] sm:$0xff] }
   0xb   :  { %v276_v51 = vmax.f32 %v260_v40, %v53_v32  ;;  %v365_v55 = vrot.slane %v77_v43, 1  ;;  %v166_v59 = vsel %vm151_vm0, %v164_v44, %v165_v49  ;;  %v235_v60 = vmax.f32 %v219_v46, %v25_v37  ;;  %v103_v14 = vld [vmem:[%s958_s3] sm:$0xff]  ;;  %v30_v20 = vld [vmem:[%s955_s0 + $0x68] sm:$0x1]  ;;  %v104_v22 = vld [vmem:[%s958_s3 + $0x10] sm:$0xff] }
   0xc   :  { %v277_v57 = vmax.f32 %v261_v45, %v54_v39  ;;  %v262_v58 = vmax.f32 %v234_v47, %v163_v41  ;;  %v220_v1 = vmax.f32 %v25_v37, %v166_v59  ;;  %v366_v2 = vrot.slane %v78_v48, 1  ;;  %v57_v18 = vld [vmem:[%s957_s1 + $0x40] sm:$0xff]  ;;  %v637_v29 = vld [vmem:[%s956_s2 + $0x50] sm:$0xff]  ;;  %v82_v40 = vld [vmem:[%s956_s2 + $0x58] sm:$0x1] }
   0xd   :  { %v292_v63 = vmax.f32 %v276_v51, %v54_v39  ;;  %v167_v3 = vrot.slane %v27_v50, 1  ;;  %v263_v7 = vmax.f32 %v235_v60, %v166_v59  ;;  %v168_v8 = vrot.slane %v28_v56, 1  ;;  %v105_v32 = vld [vmem:[%s958_s3 + $0x20] sm:$0xff]  ;;  %v31_v41 = vld [vmem:[%s955_s0 + $0x70] sm:$0xff]  ;;  %v32_v47 = vld [vmem:[%s955_s0 + $0x78] sm:$0x1] }
   0xe   :  { %v293_v4 = vmax.f32 %v277_v57, %v55_v52  ;;  %v278_v5 = vmax.f32 %v262_v58, %v55_v52  ;;  %v236_v10 = vmax.f32 %v220_v1, %v27_v50  ;;  %v368_v11 = vrot.slane %v79_v61, 1  ;;  %v106_v44 = vld [vmem:[%s958_s3 + $0x30] sm:$0xff]  ;;  %v664_v52 = vld [vmem:[%s956_s2 + $0x60] sm:$0xff]  ;;  %v34_v59 = vld [vmem:[%s955_s0 + $0x88] sm:$0x1] }
   0xf   :  { %v308_v9 = vmax.f32 %v292_v63, %v529_v6  ;;  %v369_v12 = vrot.slane %v80_v62, 1  ;;  %v279_v19 = vmax.f32 %v263_v7, %v56_v0  ;;  %v169_v6 = vsel %vm151_vm0, %v167_v3, %v168_v8  ;;  %v33_v58 = vld [vmem:[%s955_s0 + $0x80] sm:$0xff] }
  0x10   :  { %v309_v15 = vmax.f32 %v293_v4, %v546_v17  ;;  %v294_v16 = vmax.f32 %v278_v5, %v56_v0  ;;  %v367_v17 = vsel %vm151_vm0, %v365_v55, %v366_v2  ;;  %v221_v23 = vmax.f32 %v27_v50, %v169_v6  ;;  %v690_v5 = vld [vmem:[%s956_s2 + $0x70] sm:$0xff]  ;;  %v59_v8 = vld [vmem:[%s957_s1 + $0x60] sm:$0xff] }
  0x11   :  { %v420_v21 = vmax.f32 %v308_v9, %v571_v33  ;;  %v264_v24 = vmax.f32 %v236_v10, %v169_v6  ;;  %v295_v27 = vmax.f32 %v279_v19, %v57_v18  ;;  %v170_v30 = vrot.slane %v29_v13, 1  ;;  %v86_v10 = vld [vmem:[%s956_s2 + $0x78] sm:$0x1]  ;;  %v37_v6 = vld [vmem:[%s955_s0 + $0xa0] sm:$0xff] }
  0x12   :  { %v421_v25 = vmax.f32 %v309_v15, %v361_v53  ;;  %v310_v26 = vmax.f32 %v294_v16, %v562_v28  ;;  %v171_v34 = vrot.slane %v30_v20, 1  ;;  %v237_v35 = vmax.f32 %v221_v23, %v29_v13  ;;  %v58_v28 = vld [vmem:[%s957_s1 + $0x50] sm:$0xff]  ;;  %v84_v53 = vld [vmem:[%s956_s2 + $0x68] sm:$0x1]  ;;  %v36_v19 = vld [vmem:[%s955_s0 + $0x98] sm:$0x1] }
  0x13   :  { %v436_v31 = vmax.f32 %v420_v21, %v103_v14  ;;  %v280_v33 = vmax.f32 %v264_v24, %v57_v18  ;;  %v311_v38 = vmax.f32 %v295_v27, %v77_v43  ;;  %v370_v39 = vsel %vm151_vm0, %v368_v11, %v369_v12  ;;  %v35_v18 = vld [vmem:[%s955_s0 + $0x90] sm:$0xff]  ;;  %v38_v23 = vld [vmem:[%s955_s0 + $0xa8] sm:$0x1] }
  0x14   :  { %v437_v36 = vmax.f32 %v421_v25, %v104_v22  ;;  %v422_v37 = vmax.f32 %v310_v26, %v598_v54  ;;  %v172_v45 = vsel %vm151_vm0, %v170_v30, %v171_v34  ;;  %v371_v46 = vrot.slane %v637_v29, 1  ;;  %v727_v30 = vld [vmem:[%s956_s2 + $0x90] sm:$0xff] }
  0x15   :  { %v452_v42 = vpack.c.bf16 %v436_v31, %v436_v31  ;;  %v296_v43 = vmax.f32 %v280_v33, %v58_v28  ;;  %v423_v50 = vmax.f32 %v311_v38, %v367_v17  ;;  %v222_v51 = vmax.f32 %v29_v13, %v172_v45  ;;  %v88_v31 = vld [vmem:[%s956_s2 + $0x98] sm:$0x1]  ;;  %v108_v33 = vld [vmem:[%s958_s3 + $0x50] sm:$0xff] }
  0x16   :  { %v453_v48 = vpack.c.bf16 %v437_v36, %v437_v36  ;;  %v438_v49 = vmax.f32 %v422_v37, %v105_v32  ;;  %v265_v55 = vmax.f32 %v237_v35, %v172_v45  ;;  %v372_v56 = vrot.slane %v82_v40, 1  ;;  %v39_v32 = vld [vmem:[%s955_s0 + $0xb0] sm:$0xff] }
  0x17   :  { %469 = vst.msk [vmem:[%s959_s4] sm:$0xf] %vm468_vm1, %v452_v42  ;;  %v312_v54 = vmax.f32 %v296_v43, %v79_v61  ;;  %v173_v57 = vrot.slane %v31_v41, 1  ;;  %v439_v62 = vmax.f32 %v423_v50, %v106_v44  ;;  %v107_v61 = vld [vmem:[%s958_s3 + $0x40] sm:$0xff]  ;;  %v174_v63 = vrot.slane %v32_v47, 1 }
  0x18   :  { %470 = vst.msk [vmem:[%s959_s4 + $0x4] sm:$0xf] %vm468_vm1, %v453_v48  ;;  %v454_v60 = vpack.c.bf16 %v438_v49, %v438_v49  ;;  %v238_v0 = vmax.f32 %v222_v51, %v31_v41  ;;  %v281_v2 = vmax.f32 %v265_v55, %v58_v28  ;;  %v374_v3 = vrot.slane %v664_v52, 1  ;;  %v61_v42 = vld [vmem:[%s957_s1 + $0x80] sm:$0xff] }
  0x19   :  { %v424_v1 = vmax.f32 %v312_v54, %v370_v39  ;;  %v375_v4 = vrot.slane %v84_v53, 1  ;;  %v455_v7 = vpack.c.bf16 %v439_v62, %v439_v62  ;;  %v175_v9 = vsel %vm151_vm0, %v173_v57, %v174_v63  ;;  %v89_v51 = vld [vmem:[%s956_s2 + $0xa0] sm:$0xff]  ;;  %v42_v63 = vld [vmem:[%s955_s0 + $0xc8] sm:$0x1] }
  0x1a   :  { %471 = vst.msk [vmem:[%s959_s4 + $0x8] sm:$0xf] %vm468_vm1, %v454_v60  ;;  %v252_v11 = vrot.slane %v33_v58, 1  ;;  %v253_v12 = vrot.slane %v34_v59, 1  ;;  %v297_v14 = vmax.f32 %v281_v2, %v59_v8  ;;  %v223_v15 = vmax.f32 %v31_v41, %v175_v9  ;;  %v40_v41 = vld [vmem:[%s955_s0 + $0xb8] sm:$0x1] }
  0x1b   :  { %v440_v13 = vmax.f32 %v424_v1, %v107_v61  ;;  %v266_v16 = vmax.f32 %v238_v0, %v175_v9  ;;  %472 = vst.msk [vmem:[%s959_s4 + $0xc] sm:$0xf] %vm468_vm1, %v455_v7  ;;  %v373_v20 = vsel %vm151_vm0, %v371_v46, %v372_v56  ;;  %v376_v21 = vsel %vm151_vm0, %v374_v3, %v375_v4  ;;  %v109_v53 = vld [vmem:[%s958_s3 + $0x60] sm:$0xff]  ;;  %v90_v61 = vld [vmem:[%s956_s2 + $0xa8] sm:$0x1]  ;;  %v91_v4 = vld [vmem:[%s956_s2 + $0xb0] sm:$0xff] }
  0x1c   :  { %v254_v22 = vsel %vm151_vm0, %v252_v11, %v253_v12  ;;  %v377_v17 = vrot.slane %v690_v5, 1  ;;  %v313_v25 = vmax.f32 %v297_v14, %v637_v29  ;;  %v239_v27 = vmax.f32 %v223_v15, %v33_v58  ;;  %v60_v29 = vld [vmem:[%s957_s1 + $0x70] sm:$0xff]  ;;  %v92_v12 = vld [vmem:[%s956_s2 + $0xb8] sm:$0x1] }
  0x1d   :  { %v456_v24 = vpack.c.bf16 %v440_v13, %v440_v13  ;;  %v282_v26 = vmax.f32 %v266_v16, %v59_v8  ;;  %v378_v34 = vrot.slane %v86_v10, 1  ;;  %v176_v35 = vrot.slane %v35_v18, 1  ;;  %v62_v9 = vld [vmem:[%s957_s1 + $0x90] sm:$0xff]  ;;  %v63_v10 = vld [vmem:[%s957_s1 + $0xa0] sm:$0xff] }
  0x1e   :  { %v177_v36 = vrot.slane %v36_v19, 1  ;;  %v179_v37 = vrot.slane %v37_v6, 1  ;;  %v425_v38 = vmax.f32 %v313_v25, %v373_v20  ;;  %v267_v39 = vmax.f32 %v239_v27, %v254_v22  ;;  %v110_v14 = vld [vmem:[%s958_s3 + $0x70] sm:$0xff] }
  0x1f   :  { %473 = vst.msk [vmem:[%s959_s4 + $0x10] sm:$0xf] %vm468_vm1, %v456_v24  ;;  %v298_v28 = vmax.f32 %v282_v26, %v60_v29  ;;  %v180_v40 = vrot.slane %v38_v23, 1  ;;  %v380_v43 = vrot.slane %v727_v30, 1  ;;  %v381_v45 = vrot.slane %v88_v31, 1  ;;  %v43_v19 = vld [vmem:[%s955_s0 + $0xd0] sm:$0xff] }
  0x20   :  { %v178_v44 = vsel %vm151_vm0, %v176_v35, %v177_v36  ;;  %v182_v46 = vrot.slane %v39_v32, 1  ;;  %v441_v47 = vmax.f32 %v425_v38, %v108_v33  ;;  %v283_v49 = vmax.f32 %v267_v39, %v60_v29  ;;  %v64_v24 = vld [vmem:[%s957_s1 + $0xb0] sm:$0xff]  ;;  %v93_v29 = vld [vmem:[%s956_s2 + $0xc0] sm:$0xff] }
  0x21   :  { %v314_v48 = vmax.f32 %v298_v28, %v664_v52  ;;  %v181_v50 = vsel %vm151_vm0, %v179_v37, %v180_v40  ;;  %v379_v54 = vsel %vm151_vm0, %v377_v17, %v378_v34  ;;  %v224_v55 = vmax.f32 %v35_v18, %v178_v44  ;;  %v41_v52 = vld [vmem:[%s955_s0 + $0xc0] sm:$0xff]  ;;  %v44_v17 = vld [vmem:[%s955_s0 + $0xd8] sm:$0x1] }
  0x22   :  { %v225_v56 = vmax.f32 %v37_v6, %v181_v50  ;;  %v183_v57 = vrot.slane %v40_v41, 1  ;;  %v457_v58 = vpack.c.bf16 %v441_v47, %v441_v47  ;;  %v299_v60 = vmax.f32 %v283_v49, %v61_v42  ;;  %v45_v28 = vld [vmem:[%s955_s0 + $0xe0] sm:$0xff]  ;;  %v94_v42 = vld [vmem:[%s956_s2 + $0xc8] sm:$0x1] }
  0x23   :  { %v426_v59 = vmax.f32 %v314_v48, %v376_v21  ;;  %v766_v62 = vsel %vm151_vm0, %v380_v43, %v381_v45  ;;  %v240_v0 = vmax.f32 %v224_v55, %v37_v6  ;;  %v383_v3 = vrot.slane %v89_v51, 1  ;;  %v46_v43 = vld [vmem:[%s955_s0 + $0xe8] sm:$0x1]  ;;  %v65_v47 = vld [vmem:[%s957_s1 + $0xc0] sm:$0xff] }
  0x24   :  { %v184_v1 = vsel %vm151_vm0, %v182_v46, %v183_v57  ;;  %v241_v2 = vmax.f32 %v225_v56, %v39_v32  ;;  %474 = vst.msk [vmem:[%s959_s4 + $0x14] sm:$0xf] %vm468_vm1, %v457_v58  ;;  %v315_v8 = vmax.f32 %v299_v60, %v690_v5  ;;  %v185_v13 = vrot.slane %v41_v52, 1  ;;  %v96_v56 = vld [vmem:[%s956_s2 + $0xd8] sm:$0x1] }
  0x25   :  { %v442_v7 = vmax.f32 %v426_v59, %v109_v53  ;;  %v226_v11 = vmax.f32 %v39_v32, %v184_v1  ;;  %v268_v15 = vmax.f32 %v240_v0, %v181_v50  ;;  %v384_v16 = vrot.slane %v90_v61, 1  ;;  %v95_v50 = vld [vmem:[%s956_s2 + $0xd0] sm:$0xff] }
  0x26   :  { %v269_v5 = vmax.f32 %v241_v2, %v184_v1  ;;  %v186_v18 = vrot.slane %v42_v63, 1  ;;  %v427_v20 = vmax.f32 %v315_v8, %v379_v54  ;;  %v386_v22 = vrot.slane %v91_v4, 1  ;;  %v47_v2 = vld [vmem:[%s955_s0 + $0xf0] sm:$0xff] }
  0x27   :  { %v458_v6 = vpack.c.bf16 %v442_v7, %v442_v7  ;;  %v242_v21 = vmax.f32 %v226_v11, %v41_v52  ;;  %v284_v23 = vmax.f32 %v268_v15, %v62_v9  ;;  %v387_v27 = vrot.slane %v92_v12, 1  ;;  %v113_v8 = vld [vmem:[%s958_s3 + $0xb0] sm:$0xff]  ;;  %v97_v15 = vld [vmem:[%s956_s2 + $0xe0] sm:$0xff] }
  0x28   :  { %v285_v25 = vmax.f32 %v269_v5, %v63_v10  ;;  %v187_v26 = vsel %vm151_vm0, %v185_v13, %v186_v18  ;;  %v443_v31 = vmax.f32 %v427_v20, %v110_v14  ;;  %v188_v34 = vrot.slane %v43_v19, 1  ;;  %v49_v5 = vld [vmem:[%s955_s0 + $0x100] sm:$0xff] }
  0x29   :  { %475 = vst.msk [vmem:[%s959_s4 + $0x18] sm:$0xf] %vm468_vm1, %v458_v6  ;;  %v227_v32 = vmax.f32 %v41_v52, %v187_v26  ;;  %v270_v33 = vmax.f32 %v242_v21, %v187_v26  ;;  %v300_v35 = vmax.f32 %v284_v23, %v63_v10  ;;  %v385_v37 = vsel %vm151_vm0, %v383_v3, %v384_v16  ;;  %v48_v10 = vld [vmem:[%s955_s0 + $0xf8] sm:$0x1]  ;;  %v67_v26 = vld [vmem:[%s957_s1 + $0xe0] sm:$0xff] }
  0x2a   :  { %v301_v36 = vmax.f32 %v285_v25, %v64_v24  ;;  %v189_v38 = vrot.slane %v44_v17, 1  ;;  %v459_v39 = vpack.c.bf16 %v443_v31, %v443_v31  ;;  %v388_v41 = vsel %vm151_vm0, %v386_v22, %v387_v27  ;;  %v98_v17 = vld [vmem:[%s956_s2 + $0xe8] sm:$0x1]  ;;  %v114_v25 = vld [vmem:[%s958_s3 + $0xc0] sm:$0xff] }
  0x2b   :  { %v286_v40 = vmax.f32 %v270_v33, %v64_v24  ;;  %v243_v44 = vmax.f32 %v227_v32, %v43_v19  ;;  %v316_v45 = vmax.f32 %v300_v35, %v727_v30  ;;  %v389_v49 = vrot.slane %v93_v29, 1  ;;  %v111_v30 = vld [vmem:[%s958_s3 + $0x90] sm:$0xff]  ;;  %v50_v24 = vld [vmem:[%s955_s0 + $0x108] sm:$0x1] }
  0x2c   :  { %v317_v46 = vmax.f32 %v301_v36, %v89_v51  ;;  %v190_v48 = vsel %vm151_vm0, %v188_v34, %v189_v38  ;;  %476 = vst.msk [vmem:[%s959_s4 + $0x1c] sm:$0xf] %vm468_vm1, %v459_v39  ;;  %v112_v51 = vld [vmem:[%s958_s3 + $0xa0] sm:$0xff]  ;;  %v191_v57 = vrot.slane %v45_v28, 1  ;;  %v390_v59 = vrot.slane %v94_v42, 1 }
  0x2d   :  { %v302_v53 = vmax.f32 %v286_v40, %v65_v47  ;;  %v228_v54 = vmax.f32 %v43_v19, %v190_v48  ;;  %v271_v55 = vmax.f32 %v243_v44, %v190_v48  ;;  %v428_v52 = vmax.f32 %v316_v45, %v766_v62  ;;  %v66_v62 = vld [vmem:[%s957_s1 + $0xd0] sm:$0xff]  ;;  %v52_v44 = vld [vmem:[%s955_s0 + $0x118] sm:$0x1] }
  0x2e   :  { %v429_v58 = vmax.f32 %v317_v46, %v385_v37  ;;  %v192_v60 = vrot.slane %v46_v43, 1  ;;  %v392_v1 = vrot.slane %v95_v50, 1  ;;  %v391_v19 = vsel %vm151_vm0, %v389_v49, %v390_v59  ;;  %v51_v37 = vld [vmem:[%s955_s0 + $0x110] sm:$0xff] }
  0x2f   :  { %v318_v61 = vmax.f32 %v302_v53, %v91_v4  ;;  %v287_v63 = vmax.f32 %v271_v55, %v65_v47  ;;  %v244_v0 = vmax.f32 %v228_v54, %v45_v28  ;;  %v444_v3 = vmax.f32 %v428_v52, %v111_v30  ;;  %v115_v43 = vld [vmem:[%s958_s3 + $0xd0] sm:$0xff]  ;;  %v100_v47 = vld [vmem:[%s956_s2 + $0xf8] sm:$0x1] }
  0x30   :  { %v445_v7 = vmax.f32 %v429_v58, %v112_v51  ;;  %v193_v9 = vsel %vm151_vm0, %v191_v57, %v192_v60  ;;  %v393_v4 = vrot.slane %v96_v56, 1  ;;  %v194_v6 = vrot.slane %v47_v2, 1  ;;  %v99_v46 = vld [vmem:[%s956_s2 + $0xf0] sm:$0xff] }
  0x31   :  { %v430_v11 = vmax.f32 %v318_v61, %v388_v41  ;;  %v303_v12 = vmax.f32 %v287_v63, %v66_v62  ;;  %v229_v13 = vmax.f32 %v45_v28, %v193_v9  ;;  %v272_v14 = vmax.f32 %v244_v0, %v193_v9  ;;  %v68_v53 = vld [vmem:[%s957_s1 + $0xf0] sm:$0xff]  ;;  %v101_v61 = vld [vmem:[%s956_s2 + $0x100] sm:$0xff]  ;;  %v102_v63 = vld [vmem:[%s956_s2 + $0x108] sm:$0x1] }
  0x32   :  { %v460_v16 = vpack.c.bf16 %v444_v3, %v444_v3  ;;  %v461_v18 = vpack.c.bf16 %v445_v7, %v445_v7  ;;  %v195_v23 = vrot.slane %v48_v10, 1  ;;  %v394_v27 = vsel %vm151_vm0, %v392_v1, %v393_v4 }
  0x33   :  { %v446_v20 = vmax.f32 %v430_v11, %v113_v8  ;;  %v319_v21 = vmax.f32 %v303_v12, %v93_v29  ;;  %v288_v22 = vmax.f32 %v272_v14, %v66_v62  ;;  %v245_v31 = vmax.f32 %v229_v13, %v47_v2  ;;  %v116_v62 = vld [vmem:[%s958_s3 + $0xe0] sm:$0xff]  ;;  %v70_v11 = vld [vmem:[%s957_s1 + $0x110] sm:$0xff] }
  0x34   :  { %477 = vst.msk [vmem:[%s959_s4 + $0x20] sm:$0xf] %vm468_vm1, %v460_v16  ;;  %478 = vst.msk [vmem:[%s959_s4 + $0x24] sm:$0xf] %vm468_vm1, %v461_v18  ;;  %v395_v32 = vrot.slane %v97_v15, 1  ;;  %v197_v33 = vrot.slane %v49_v5, 1  ;;  %v196_v36 = vsel %vm151_vm0, %v194_v6, %v195_v23 }
  0x35   :  { %v462_v29 = vpack.c.bf16 %v446_v20, %v446_v20  ;;  %v431_v34 = vmax.f32 %v319_v21, %v391_v19  ;;  %v304_v35 = vmax.f32 %v288_v22, %v67_v26  ;;  %v230_v38 = vmax.f32 %v47_v2, %v196_v36  ;;  %v69_v2 = vld [vmem:[%s957_s1 + $0x100] sm:$0xff]  ;;  %v117_v18 = vld [vmem:[%s958_s3 + $0xf0] sm:$0xff] }
  0x36   :  { %v273_v28 = vmax.f32 %v245_v31, %v196_v36  ;;  %v396_v39 = vrot.slane %v98_v17, 1  ;;  %v198_v40 = vrot.slane %v50_v24, 1  ;;  %v256_v52 = vrot.slane %v52_v44, 1  ;;  %v118_v23 = vld [vmem:[%s958_s3 + $0x100] sm:$0xff] }
  0x37   :  { %479 = vst.msk [vmem:[%s959_s4 + $0x28] sm:$0xf] %vm468_vm1, %v462_v29  ;;  %v447_v41 = vmax.f32 %v431_v34, %v114_v25  ;;  %v320_v42 = vmax.f32 %v304_v35, %v95_v50  ;;  %v246_v49 = vmax.f32 %v230_v38, %v49_v5  ;;  %v255_v50 = vrot.slane %v51_v37, 1 }
  0x38   :  { %v289_v45 = vmax.f32 %v273_v28, %v67_v26  ;;  %v199_v48 = vsel %vm151_vm0, %v197_v33, %v198_v40  ;;  %v397_v56 = vsel %vm151_vm0, %v395_v32, %v396_v39  ;;  %v398_v59 = vrot.slane %v99_v46, 1 }
  0x39   :  { %v463_v30 = vpack.c.bf16 %v447_v41, %v447_v41  ;;  %v432_v51 = vmax.f32 %v320_v42, %v394_v27  ;;  %v231_v54 = vmax.f32 %v49_v5, %v199_v48  ;;  %v274_v57 = vmax.f32 %v246_v49, %v199_v48 }
  0x3a   :  { %v305_v55 = vmax.f32 %v289_v45, %v68_v53  ;;  %v399_v60 = vrot.slane %v100_v47, 1  ;;  %v257_v7 = vsel %vm151_vm0, %v255_v50, %v256_v52  ;;  %v401_v12 = vrot.slane %v101_v61, 1 }
  0x3b   :  { %480 = vst.msk [vmem:[%s959_s4 + $0x2c] sm:$0xf] %vm468_vm1, %v463_v30  ;;  %v448_v58 = vmax.f32 %v432_v51, %v115_v43  ;;  %v247_v0 = vmax.f32 %v231_v54, %v51_v37  ;;  %v290_v3 = vmax.f32 %v274_v57, %v68_v53  ;;  %v402_v13 = vrot.slane %v102_v63, 1 }
  0x3c   :  { %v321_v1 = vmax.f32 %v305_v55, %v97_v15  ;;  %v400_v14 = vsel %vm151_vm0, %v398_v59, %v399_v60 }
  0x3d   :  { %v464_v8 = vpack.c.bf16 %v448_v58, %v448_v58  ;;  %v275_v9 = vmax.f32 %v247_v0, %v257_v7  ;;  %v306_v10 = vmax.f32 %v290_v3, %v69_v2  ;;  %v403_v21 = vsel %vm151_vm0, %v401_v12, %v402_v13 }
  0x3e   :  { %v433_v4 = vmax.f32 %v321_v1, %v397_v56 }
  0x3f   :  { %481 = vst.msk [vmem:[%s959_s4 + $0x30] sm:$0xf] %vm468_vm1, %v464_v8  ;;  %v291_v15 = vmax.f32 %v275_v9, %v69_v2  ;;  %v322_v16 = vmax.f32 %v306_v10, %v99_v46 }
  0x40   :  { %v449_v5 = vmax.f32 %v433_v4, %v116_v62 }
  0x41   :  { %v307_v19 = vmax.f32 %v291_v15, %v70_v11  ;;  %v434_v20 = vmax.f32 %v322_v16, %v400_v14 }
  0x42   :  { %v465_v6 = vpack.c.bf16 %v449_v5, %v449_v5 }
  0x43   :  { %v323_v22 = vmax.f32 %v307_v19, %v101_v61  ;;  %v450_v17 = vmax.f32 %v434_v20, %v117_v18 }
  0x44   :  { %482 = vst.msk [vmem:[%s959_s4 + $0x34] sm:$0xf] %vm468_vm1, %v465_v6 }
  0x45   :  { %v435_v24 = vmax.f32 %v323_v22, %v403_v21  ;;  %v466_v25 = vpack.c.bf16 %v450_v17, %v450_v17 }
  0x47   :  { %v451_v26 = vmax.f32 %v435_v24, %v118_v23  ;;  %483 = vst.msk [vmem:[%s959_s4 + $0x38] sm:$0xf] %vm468_vm1, %v466_v25 }
  0x49   :  { %v467_v27 = vpack.c.bf16 %v451_v26, %v451_v26 }
  0x4b   :  { %484 = vst.msk [vmem:[%s959_s4 + $0x3c] sm:$0xf] %vm468_vm1, %v467_v27 }

// kernel: resnet_forward.17
= control target key start
LH: loop header
LB: loop body
LE: loop exit
PB: predicated region body
PF: predicated region fallthrough
CT: control target
= control target key end

     0   :  { %s987_s12 = smov 0   ;;  %s989_s13 = smov 0   ;;  %s1149_s0 = inlined_call_operand.vmem [shape: bf16[9,128,64], index: 0, kind: input, shape index: {}]   ;;  %s1150_s1 = inlined_call_operand.vmem [shape: bf16[9,64,64], index: 1, kind: input, shape index: {}]   ;;  %s1151_s2 = inlined_call_operand.vmem [shape: f32[1,64], index: 2, kind: input, shape index: {}]   ;;  %s1152_s3 = inlined_call_operand.vmem [shape: bf16[128,64], index: 3, kind: output, shape index: {}]  }
   0x1   :  { %s991_s14 = smov 0  }
   0x2 LB: > { %s25_s15 = sadd.s32 1, %s960_s13  ;;  %p795_p0 = scmp.ge.s32.totalorder %s964_s14, 1  ;;  %s964_s14 = sphi %s991_s14, %s13_s14   ;;  %s960_s13 = sphi %s989_s13, %s1154_s13   ;;  %s956_s12 = sphi %s987_s12, %s1153_s12  }
   0x3   : > { %p26_p1 = scmp.ge.s32.totalorder %s25_s15, 9  ;;  %p188_p2 = scmp.lt.s32.totalorder %s964_s14, 10 }
   0x5   : > { %s1156_s15 = smov (%p26_p1, %s25_s15), 0  ;;  %p189_p3 = pnand %p795_p0, %p188_p2 }
   0x6   : > { %p231_p4 = scmp.lt.s32.totalorder (!%p189_p3), %s956_s12, 8  ;;  %p800_p5 = scmp.ne.s32.totalorder (!%p189_p3), %s956_s12, 0 }
   0x7   : > { %192 = sbr.rel (%p189_p3) target bundleno = 271 (0x10f), region = 32 }
   0xc   : > { %s232_s16 = scalar_select %p231_p4, %s956_s12, 8 }
   0xd   : > { %264 = sbr.rel (%p800_p5) target bundleno = 27 (0x1b), region = 36 }
   0xe   : > { %s843_s17 = sshll.u32 %s232_s16, 6  ;;  %s844_s18 = sshll.u32 %s232_s16, 5 }
   0xf   : > { %s1012_s21 = scalar_lea.vmem %s1149_s0, %s843_s17  ;;  %s1017_s24 = scalar_lea.vmem %s1150_s1, %s844_s18 }
  0x12   : > { %vm265_vm0 = vcmask 523264   ;;  %v966_v0 = vmov 0.0  }
  0x13   : > { %266 = vst.msk [vmem:[#allocation2] sm:$0xff] %vm265_vm0, %v966_v0  ;;  %267 = vst.msk [vmem:[#allocation2 + $0x8] sm:$0xff] %vm265_vm0, %v966_v0 }
  0x14   : > { %268 = vst.msk [vmem:[#allocation2 + $0x10] sm:$0xff] %vm265_vm0, %v966_v0  ;;  %269 = vst.msk [vmem:[#allocation2 + $0x18] sm:$0xff] %vm265_vm0, %v966_v0 }
  0x15   : > { %270 = vst.msk [vmem:[#allocation2 + $0x20] sm:$0xff] %vm265_vm0, %v966_v0  ;;  %271 = vst.msk [vmem:[#allocation2 + $0x28] sm:$0xff] %vm265_vm0, %v966_v0 }
  0x16   : > { %272 = vst.msk [vmem:[#allocation2 + $0x30] sm:$0xff] %vm265_vm0, %v966_v0  ;;  %273 = vst.msk [vmem:[#allocation2 + $0x38] sm:$0xff] %vm265_vm0, %v966_v0 }
  0x17   : > { %274 = vst.msk [vmem:[#allocation2 + $0x40] sm:$0xff] %vm265_vm0, %v966_v0  ;;  %275 = vst.msk [vmem:[#allocation2 + $0x48] sm:$0xff] %vm265_vm0, %v966_v0 }
  0x18   : > { %276 = vst.msk [vmem:[#allocation2 + $0x50] sm:$0xff] %vm265_vm0, %v966_v0  ;;  %277 = vst.msk [vmem:[#allocation2 + $0x58] sm:$0xff] %vm265_vm0, %v966_v0 }
  0x19   : > { %278 = vst.msk [vmem:[#allocation2 + $0x60] sm:$0xff] %vm265_vm0, %v966_v0  ;;  %279 = vst.msk [vmem:[#allocation2 + $0x68] sm:$0xff] %vm265_vm0, %v966_v0 }
  0x1a   : > { %280 = vst.msk [vmem:[#allocation2 + $0x70] sm:$0xff] %vm265_vm0, %v966_v0  ;;  %281 = vst.msk [vmem:[#allocation2 + $0x78] sm:$0xff] %vm265_vm0, %v966_v0 }
  0x1b PF: > { %v930_v1 = vld [vmem:[%s1017_s24 + $0x18] sm:$0xff]   ;;  %v931_v2 = vld [vmem:[%s1017_s24 + $0x10] sm:$0xff]   ;;  %v932_v3 = vld [vmem:[%s1017_s24 + $0x8] sm:$0xff]   ;;  %vm386_vm1 = vcmask 523264   ;;  %p821_p6 = scmp.ne.s32.totalorder %s956_s12, 8 }
  0x1c   : > { %873 = vmatprep.subr.bf16.mxu0 %v930_v1  ;;  %897 = vmatprep.subr.bf16.mxu1 %v930_v1  ;;  %v934_v4 = vld [vmem:[%s1012_s21] sm:$0xff]   ;;  %v936_v7 = vld [vmem:[%s1012_s21 + $0x8] sm:$0xff]   ;;  %v938_v9 = vld [vmem:[%s1012_s21 + $0x10] sm:$0xff]  }
  0x1d   : > { %874 = vmatpush3.bf16.msra.mxu0 %v930_v1  ;;  %901 = vmatpush3.bf16.msra.mxu1 %v930_v1  ;;  %v935_v5 = vld [vmem:[%s1012_s21 + $0x20] sm:$0xff]   ;;  %v937_v8 = vld [vmem:[%s1012_s21 + $0x28] sm:$0xff]   ;;  %v939_v10 = vld [vmem:[%s1012_s21 + $0x30] sm:$0xff]  }
  0x1e   : > { %875 = vmatprep.subr.bf16.mxu0 %v931_v2  ;;  %898 = vmatprep.subr.bf16.mxu1 %v931_v2  ;;  %v933_v6 = vld [vmem:[%s1017_s24] sm:$0xff]   ;;  %v940_v11 = vld [vmem:[%s1012_s21 + $0x18] sm:$0xff]   ;;  %v284_v13 = vld [vmem:[#allocation2 + $0x10] sm:$0xff] }
  0x1f   : > { %881 = vmatprep.mubr.msk.bf16.mxu0 %vm386_vm1, %v934_v4  ;;  %889 = vmatprep.mubr.msk.bf16.mxu1 %vm386_vm1, %v935_v5  ;;  %v941_v12 = vld [vmem:[%s1012_s21 + $0x38] sm:$0xff]   ;;  %v292_v14 = vld [vmem:[#allocation2 + $0x50] sm:$0xff]  ;;  %v282_v17 = vld [vmem:[#allocation2] sm:$0xff] }
  0x20   : > { %v290_v18 = vld [vmem:[#allocation2 + $0x40] sm:$0xff]  ;;  %v285_v23 = vld [vmem:[#allocation2 + $0x18] sm:$0xff]  ;;  %v283_v29 = vld [vmem:[#allocation2 + $0x8] sm:$0xff] }
  0x21   : > { %876 = vmatpush3.bf16.msra.mxu0 %v931_v2  ;;  %902 = vmatpush3.bf16.msra.mxu1 %v931_v2  ;;  %v293_v24 = vld [vmem:[#allocation2 + $0x58] sm:$0xff]  ;;  %v291_v30 = vld [vmem:[#allocation2 + $0x48] sm:$0xff]  ;;  %v288_v35 = vld [vmem:[#allocation2 + $0x30] sm:$0xff] }
  0x22   : > { %877 = vmatprep.subr.bf16.mxu0 %v932_v3  ;;  %899 = vmatprep.subr.bf16.mxu1 %v932_v3  ;;  %v296_v36 = vld [vmem:[#allocation2 + $0x70] sm:$0xff]  ;;  %v286_v41 = vld [vmem:[#allocation2 + $0x20] sm:$0xff]  ;;  %v289_v47 = vld [vmem:[#allocation2 + $0x38] sm:$0xff] }
  0x23   : > { %v294_v42 = vld [vmem:[#allocation2 + $0x60] sm:$0xff]  ;;  %v297_v48 = vld [vmem:[#allocation2 + $0x78] sm:$0xff]  ;;  %v287_v53 = vld [vmem:[#allocation2 + $0x28] sm:$0xff] }
  0x24   : > { %v295_v54 = vld [vmem:[#allocation2 + $0x68] sm:$0xff] }
  0x25   : > { %878 = vmatpush3.bf16.msra.mxu0 %v932_v3  ;;  %903 = vmatpush3.bf16.msra.mxu1 %v932_v3 }
  0x26   : > { %879 = vmatprep.subr.bf16.mxu0 %v933_v6  ;;  %900 = vmatprep.subr.bf16.mxu1 %v933_v6 }
  0x29   : > { %880 = vmatpush3.bf16.msra.mxu0 %v933_v6  ;;  %904 = vmatpush3.bf16.msra.mxu1 %v933_v6 }
  0x2c   : > { %882 = vmatmul.mubr.msk.bf16.vlgmr.msra.gmra.mxu0 %vm386_vm1, %v936_v7  ;;  %890 = vmatmul.mubr.msk.bf16.vlgmr.msra.gmra.mxu1 %vm386_vm1, %v937_v8 }
  0x2d   : > { %885 = vmatprep.mubr.msk.bf16.mxu0 %vm386_vm1, %v938_v9  ;;  %893 = vmatprep.mubr.msk.bf16.mxu1 %vm386_vm1, %v939_v10 }
  0x34   : > { %886 = vmatmul.mubr.msk.bf16.gmra.mxu0 %vm386_vm1, %v940_v11  ;;  %894 = vmatmul.mubr.msk.bf16.gmra.mxu1 %vm386_vm1, %v941_v12 }
  0xec   : > { %v883_v15 = vpop.f32.mrf.mxu0  ;;  %v891_v16 = vpop.f32.mrf.mxu1 }
  0xed   : > { %v510_v19 = vadd.f32 %v883_v15, %v284_v13  ;;  %v518_v20 = vadd.f32 %v891_v16, %v292_v14 }
  0xee   : > { %v445_v21 = vpop.f32.mrf.mxu0  ;;  %v477_v22 = vpop.f32.mrf.mxu1 }
  0xef   : > { %526 = vst.msk [vmem:[#allocation2 + $0x10] sm:$0xff] %vm386_vm1, %v510_v19  ;;  %534 = vst.msk [vmem:[#allocation2 + $0x50] sm:$0xff] %vm386_vm1, %v518_v20  ;;  %v508_v25 = vadd.f32 %v445_v21, %v282_v17  ;;  %v516_v26 = vadd.f32 %v477_v22, %v290_v18 }
  0xf0   : > { %v884_v27 = vpop.f32.mrf.mxu0  ;;  %v892_v28 = vpop.f32.mrf.mxu1 }
  0xf1   : > { %524 = vst.msk [vmem:[#allocation2] sm:$0xff] %vm386_vm1, %v508_v25  ;;  %532 = vst.msk [vmem:[#allocation2 + $0x40] sm:$0xff] %vm386_vm1, %v516_v26  ;;  %v511_v31 = vadd.f32 %v884_v27, %v285_v23  ;;  %v519_v32 = vadd.f32 %v892_v28, %v293_v24 }
  0xf2   : > { %v448_v33 = vpop.f32.mrf.mxu0  ;;  %v480_v34 = vpop.f32.mrf.mxu1 }
  0xf3   : > { %527 = vst.msk [vmem:[#allocation2 + $0x18] sm:$0xff] %vm386_vm1, %v511_v31  ;;  %535 = vst.msk [vmem:[#allocation2 + $0x58] sm:$0xff] %vm386_vm1, %v519_v32  ;;  %v509_v37 = vadd.f32 %v448_v33, %v283_v29  ;;  %v517_v38 = vadd.f32 %v480_v34, %v291_v30 }
  0xf4   : > { %v887_v39 = vpop.f32.mrf.mxu0  ;;  %v895_v40 = vpop.f32.mrf.mxu1 }
  0xf5   : > { %525 = vst.msk [vmem:[#allocation2 + $0x8] sm:$0xff] %vm386_vm1, %v509_v37  ;;  %533 = vst.msk [vmem:[#allocation2 + $0x48] sm:$0xff] %vm386_vm1, %v517_v38  ;;  %v514_v43 = vadd.f32 %v887_v39, %v288_v35  ;;  %v522_v44 = vadd.f32 %v895_v40, %v296_v36 }
  0xf6   : > { %v461_v45 = vpop.f32.mrf.mxu0  ;;  %v493_v46 = vpop.f32.mrf.mxu1 }
  0xf7   : > { %530 = vst.msk [vmem:[#allocation2 + $0x30] sm:$0xff] %vm386_vm1, %v514_v43  ;;  %538 = vst.msk [vmem:[#allocation2 + $0x70] sm:$0xff] %vm386_vm1, %v522_v44  ;;  %v512_v49 = vadd.f32 %v461_v45, %v286_v41  ;;  %v520_v50 = vadd.f32 %v493_v46, %v294_v42 }
  0xf8   : > { %v888_v51 = vpop.f32.mrf.mxu0  ;;  %v896_v52 = vpop.f32.mrf.mxu1 }
  0xf9   : > { %528 = vst.msk [vmem:[#allocation2 + $0x20] sm:$0xff] %vm386_vm1, %v512_v49  ;;  %536 = vst.msk [vmem:[#allocation2 + $0x60] sm:$0xff] %vm386_vm1, %v520_v50  ;;  %v515_v55 = vadd.f32 %v888_v51, %v289_v47  ;;  %v523_v56 = vadd.f32 %v896_v52, %v297_v48  ;;  %543 = sbr.rel (%p821_p6) target bundleno = 271 (0x10f), region = 40 }
  0xfa   : > { %v464_v57 = vpop.f32.mrf.mxu0  ;;  %v496_v58 = vpop.f32.mrf.mxu1 }
  0xfb   : > { %531 = vst.msk [vmem:[#allocation2 + $0x38] sm:$0xff] %vm386_vm1, %v515_v55  ;;  %539 = vst.msk [vmem:[#allocation2 + $0x78] sm:$0xff] %vm386_vm1, %v523_v56  ;;  %v513_v59 = vadd.f32 %v464_v57, %v287_v53  ;;  %v521_v60 = vadd.f32 %v496_v58, %v295_v54 }
  0xfd   : > { %529 = vst.msk [vmem:[#allocation2 + $0x28] sm:$0xff] %vm386_vm1, %v513_v59  ;;  %537 = vst.msk [vmem:[#allocation2 + $0x68] sm:$0xff] %vm386_vm1, %v521_v60 }
  0xfe   : > { %v544_v61 = vld [vmem:[#allocation2] sm:$0xff]  ;;  %v545_v63 = vld [vmem:[#allocation2 + $0x8] sm:$0xff]  ;;  %v546_v2 = vld [vmem:[#allocation2 + $0x10] sm:$0xff]  ;;  %vm663_vm2 = vcmask 519168  }
  0xff   : > { %v822_v62 = vld [vmem:[%s1151_s2] ss:$0 sm:$0xff]  ;;  %v547_v3 = vld [vmem:[#allocation2 + $0x18] sm:$0xff]  ;;  %v550_v9 = vld [vmem:[#allocation2 + $0x30] sm:$0xff] }
 0x100   : > { %v567_v0 = vadd.f32 %v822_v62, %v544_v61  ;;  %v568_v1 = vadd.f32 %v822_v62, %v545_v63  ;;  %v548_v4 = vld [vmem:[#allocation2 + $0x20] sm:$0xff]  ;;  %v569_v5 = vadd.f32 %v822_v62, %v546_v2  ;;  %v570_v6 = vadd.f32 %v822_v62, %v547_v3  ;;  %v553_v20 = vld [vmem:[#allocation2 + $0x48] sm:$0xff]  ;;  %v554_v25 = vld [vmem:[#allocation2 + $0x50] sm:$0xff] }
 0x101   : > { %v571_v7 = vadd.f32 %v822_v62, %v548_v4  ;;  %v573_v14 = vadd.f32 %v822_v62, %v550_v9  ;;  %v552_v19 = vld [vmem:[#allocation2 + $0x40] sm:$0xff]  ;;  %v555_v26 = vld [vmem:[#allocation2 + $0x58] sm:$0xff]  ;;  %v558_v33 = vld [vmem:[#allocation2 + $0x70] sm:$0xff]  ;;  %v576_v37 = vadd.f32 %v822_v62, %v553_v20  ;;  %v577_v40 = vadd.f32 %v822_v62, %v554_v25 }
 0x102   : > { %v551_v10 = vld [vmem:[#allocation2 + $0x38] sm:$0xff]  ;;  %v583_v11 = vmax.f32 %v567_v0, 0.0  ;;  %v584_v12 = vmax.f32 %v568_v1, 0.0  ;;  %v585_v15 = vmax.f32 %v569_v5, 0.0  ;;  %v586_v16 = vmax.f32 %v570_v6, 0.0  ;;  %v556_v27 = vld [vmem:[#allocation2 + $0x60] sm:$0xff] }
 0x103   : > { %v587_v17 = vmax.f32 %v571_v7, 0.0  ;;  %v574_v18 = vadd.f32 %v822_v62, %v551_v10  ;;  %v589_v24 = vmax.f32 %v573_v14, 0.0  ;;  %v575_v36 = vadd.f32 %v822_v62, %v552_v19  ;;  %v559_v38 = vld [vmem:[#allocation2 + $0x78] sm:$0xff] }
 0x104   : > { %v549_v8 = vld [vmem:[#allocation2 + $0x28] sm:$0xff]  ;;  %v845_v21 = vpack.c.bf16 %v583_v11, %v583_v11  ;;  %v846_v22 = vpack.c.bf16 %v584_v12, %v584_v12  ;;  %v847_v28 = vpack.c.bf16 %v585_v15, %v585_v15  ;;  %v848_v29 = vpack.c.bf16 %v586_v16, %v586_v16 }
 0x105   : > { %v572_v13 = vadd.f32 %v822_v62, %v549_v8  ;;  %v849_v30 = vpack.c.bf16 %v587_v17, %v587_v17  ;;  %v590_v31 = vmax.f32 %v574_v18, 0.0  ;;  %v557_v32 = vld [vmem:[#allocation2 + $0x68] sm:$0xff]  ;;  %v851_v35 = vpack.c.bf16 %v589_v24, %v589_v24 }
 0x106   : > { %664 = vst.msk [vmem:[%s1152_s3] sm:$0xf] %vm663_vm2, %v845_v21  ;;  %665 = vst.msk [vmem:[%s1152_s3 + $0x4] sm:$0xf] %vm663_vm2, %v846_v22  ;;  %v578_v41 = vadd.f32 %v822_v62, %v555_v26  ;;  %v579_v42 = vadd.f32 %v822_v62, %v556_v27  ;;  %v591_v43 = vmax.f32 %v575_v36, 0.0  ;;  %v592_v44 = vmax.f32 %v576_v37, 0.0 }
 0x107   : > { %v588_v23 = vmax.f32 %v572_v13, 0.0  ;;  %666 = vst.msk [vmem:[%s1152_s3 + $0x8] sm:$0xf] %vm663_vm2, %v847_v28  ;;  %667 = vst.msk [vmem:[%s1152_s3 + $0xc] sm:$0xf] %vm663_vm2, %v848_v29  ;;  %v852_v39 = vpack.c.bf16 %v590_v31, %v590_v31  ;;  %v580_v45 = vadd.f32 %v822_v62, %v557_v32  ;;  %v581_v46 = vadd.f32 %v822_v62, %v558_v33 }
 0x108   : > { %668 = vst.msk [vmem:[%s1152_s3 + $0x10] sm:$0xf] %vm663_vm2, %v849_v30  ;;  %670 = vst.msk [vmem:[%s1152_s3 + $0x18] sm:$0xf] %vm663_vm2, %v851_v35  ;;  %v593_v47 = vmax.f32 %v577_v40, 0.0  ;;  %v594_v48 = vmax.f32 %v578_v41, 0.0  ;;  %v582_v50 = vadd.f32 %v822_v62, %v559_v38  ;;  %v853_v51 = vpack.c.bf16 %v591_v43, %v591_v43 }
 0x109   : > { %v850_v34 = vpack.c.bf16 %v588_v23, %v588_v23  ;;  %671 = vst.msk [vmem:[%s1152_s3 + $0x1c] sm:$0xf] %vm663_vm2, %v852_v39  ;;  %v595_v49 = vmax.f32 %v579_v42, 0.0  ;;  %v854_v52 = vpack.c.bf16 %v592_v44, %v592_v44  ;;  %v596_v53 = vmax.f32 %v580_v45, 0.0 }
 0x10a   : > { %v597_v54 = vmax.f32 %v581_v46, 0.0  ;;  %v855_v55 = vpack.c.bf16 %v593_v47, %v593_v47  ;;  %v856_v56 = vpack.c.bf16 %v594_v48, %v594_v48  ;;  %v598_v58 = vmax.f32 %v582_v50, 0.0  ;;  %672 = vst.msk [vmem:[%s1152_s3 + $0x20] sm:$0xf] %vm663_vm2, %v853_v51 }
 0x10b   : > { %669 = vst.msk [vmem:[%s1152_s3 + $0x14] sm:$0xf] %vm663_vm2, %v850_v34  ;;  %v857_v57 = vpack.c.bf16 %v595_v49, %v595_v49  ;;  %673 = vst.msk [vmem:[%s1152_s3 + $0x24] sm:$0xf] %vm663_vm2, %v854_v52  ;;  %v858_v59 = vpack.c.bf16 %v596_v53, %v596_v53 }
 0x10c   : > { %v859_v60 = vpack.c.bf16 %v597_v54, %v597_v54  ;;  %674 = vst.msk [vmem:[%s1152_s3 + $0x28] sm:$0xf] %vm663_vm2, %v855_v55  ;;  %675 = vst.msk [vmem:[%s1152_s3 + $0x2c] sm:$0xf] %vm663_vm2, %v856_v56  ;;  %v860_v61 = vpack.c.bf16 %v598_v58, %v598_v58 }
 0x10d   : > { %676 = vst.msk [vmem:[%s1152_s3 + $0x30] sm:$0xf] %vm663_vm2, %v857_v57  ;;  %677 = vst.msk [vmem:[%s1152_s3 + $0x34] sm:$0xf] %vm663_vm2, %v858_v59 }
 0x10e   : > { %678 = vst.msk [vmem:[%s1152_s3 + $0x38] sm:$0xf] %vm663_vm2, %v859_v60  ;;  %679 = vst.msk [vmem:[%s1152_s3 + $0x3c] sm:$0xf] %vm663_vm2, %v860_v61 }
 0x10f PF: > { %s13_s14 = sadd.s32 1, %s964_s14   ;;  %s1153_s12 = smov %s960_s13 }
 0x110   : > { %p10_p7 = scmp.ge.s32.totalorder %s13_s14, 11   ;;  %s1154_s13 = smov %s1156_s15 }
 0x112   :  { %12 = sbr.rel (!%p10_p7) target bundleno = 2 (0x2), region = 76 }

// kernel: resnet_forward.18
= control target key start
LH: loop header
LB: loop body
LE: loop exit
PB: predicated region body
PF: predicated region fallthrough
CT: control target
= control target key end

     0   :  { %s1158_s15 = smov 0   ;;  %s1160_s16 = smov 0   ;;  %s1362_s0 = inlined_call_operand.vmem [shape: bf16[9,128,64], index: 0, kind: input, shape index: {}]   ;;  %s1363_s1 = inlined_call_operand.vmem [shape: bf16[9,64,64], index: 1, kind: input, shape index: {}]   ;;  %s1364_s2 = inlined_call_operand.vmem [shape: f32[1,64], index: 2, kind: input, shape index: {}]   ;;  %s1365_s3 = inlined_call_operand.vmem [shape: bf16[128,64], index: 3, kind: input, shape index: {}]   ;;  %s1366_s4 = inlined_call_operand.vmem [shape: bf16[128,64], index: 4, kind: output, shape index: {}]  }
   0x1   :  { %s1162_s17 = smov 0  }
   0x2 LB: > { %s26_s18 = sadd.s32 1, %s1126_s16  ;;  %p922_p0 = scmp.ge.s32.totalorder %s1130_s17, 1  ;;  %s1130_s17 = sphi %s1162_s17, %s14_s17   ;;  %s1126_s16 = sphi %s1160_s16, %s1368_s16   ;;  %s1122_s15 = sphi %s1158_s15, %s1367_s15  }
   0x3   : > { %p27_p1 = scmp.ge.s32.totalorder %s26_s18, 9  ;;  %p229_p2 = scmp.lt.s32.totalorder %s1130_s17, 10 }
   0x5   : > { %s1370_s18 = smov (%p27_p1, %s26_s18), 0  ;;  %p230_p3 = pnand %p922_p0, %p229_p2 }
   0x6   : > { %p282_p4 = scmp.lt.s32.totalorder (!%p230_p3), %s1122_s15, 8  ;;  %p927_p5 = scmp.ne.s32.totalorder (!%p230_p3), %s1122_s15, 0 }
   0x7   : > { %233 = sbr.rel (%p230_p3) target bundleno = 282 (0x11a), region = 36 }
   0xc   : > { %s283_s19 = scalar_select %p282_p4, %s1122_s15, 8 }
   0xd   : > { %324 = sbr.rel (%p927_p5) target bundleno = 27 (0x1b), region = 40 }
   0xe   : > { %s970_s20 = sshll.u32 %s283_s19, 6  ;;  %s971_s21 = sshll.u32 %s283_s19, 5 }
   0xf   : > { %s1183_s24 = scalar_lea.vmem %s1362_s0, %s970_s20  ;;  %s1188_s27 = scalar_lea.vmem %s1363_s1, %s971_s21 }
  0x12   : > { %vm325_vm0 = vcmask 523264   ;;  %v1132_v0 = vmov 0.0  }
  0x13   : > { %326 = vst.msk [vmem:[#allocation2] sm:$0xff] %vm325_vm0, %v1132_v0  ;;  %327 = vst.msk [vmem:[#allocation2 + $0x8] sm:$0xff] %vm325_vm0, %v1132_v0 }
  0x14   : > { %328 = vst.msk [vmem:[#allocation2 + $0x10] sm:$0xff] %vm325_vm0, %v1132_v0  ;;  %329 = vst.msk [vmem:[#allocation2 + $0x18] sm:$0xff] %vm325_vm0, %v1132_v0 }
  0x15   : > { %330 = vst.msk [vmem:[#allocation2 + $0x20] sm:$0xff] %vm325_vm0, %v1132_v0  ;;  %331 = vst.msk [vmem:[#allocation2 + $0x28] sm:$0xff] %vm325_vm0, %v1132_v0 }
  0x16   : > { %332 = vst.msk [vmem:[#allocation2 + $0x30] sm:$0xff] %vm325_vm0, %v1132_v0  ;;  %333 = vst.msk [vmem:[#allocation2 + $0x38] sm:$0xff] %vm325_vm0, %v1132_v0 }
  0x17   : > { %334 = vst.msk [vmem:[#allocation2 + $0x40] sm:$0xff] %vm325_vm0, %v1132_v0  ;;  %335 = vst.msk [vmem:[#allocation2 + $0x48] sm:$0xff] %vm325_vm0, %v1132_v0 }
  0x18   : > { %336 = vst.msk [vmem:[#allocation2 + $0x50] sm:$0xff] %vm325_vm0, %v1132_v0  ;;  %337 = vst.msk [vmem:[#allocation2 + $0x58] sm:$0xff] %vm325_vm0, %v1132_v0 }
  0x19   : > { %338 = vst.msk [vmem:[#allocation2 + $0x60] sm:$0xff] %vm325_vm0, %v1132_v0  ;;  %339 = vst.msk [vmem:[#allocation2 + $0x68] sm:$0xff] %vm325_vm0, %v1132_v0 }
  0x1a   : > { %340 = vst.msk [vmem:[#allocation2 + $0x70] sm:$0xff] %vm325_vm0, %v1132_v0  ;;  %341 = vst.msk [vmem:[#allocation2 + $0x78] sm:$0xff] %vm325_vm0, %v1132_v0 }
  0x1b PF: > { %v1096_v1 = vld [vmem:[%s1188_s27 + $0x18] sm:$0xff]   ;;  %v1097_v2 = vld [vmem:[%s1188_s27 + $0x10] sm:$0xff]   ;;  %v1098_v3 = vld [vmem:[%s1188_s27 + $0x8] sm:$0xff]   ;;  %vm446_vm1 = vcmask 523264   ;;  %p948_p6 = scmp.ne.s32.totalorder %s1122_s15, 8 }
  0x1c   : > { %1039 = vmatprep.subr.bf16.mxu0 %v1096_v1  ;;  %1063 = vmatprep.subr.bf16.mxu1 %v1096_v1  ;;  %v1100_v4 = vld [vmem:[%s1183_s24] sm:$0xff]   ;;  %v1102_v7 = vld [vmem:[%s1183_s24 + $0x8] sm:$0xff]   ;;  %v1104_v9 = vld [vmem:[%s1183_s24 + $0x10] sm:$0xff]  }
  0x1d   : > { %1040 = vmatpush3.bf16.msra.mxu0 %v1096_v1  ;;  %1067 = vmatpush3.bf16.msra.mxu1 %v1096_v1  ;;  %v1101_v5 = vld [vmem:[%s1183_s24 + $0x20] sm:$0xff]   ;;  %v1103_v8 = vld [vmem:[%s1183_s24 + $0x28] sm:$0xff]   ;;  %v1105_v10 = vld [vmem:[%s1183_s24 + $0x30] sm:$0xff]  }
  0x1e   : > { %1041 = vmatprep.subr.bf16.mxu0 %v1097_v2  ;;  %1064 = vmatprep.subr.bf16.mxu1 %v1097_v2  ;;  %v1099_v6 = vld [vmem:[%s1188_s27] sm:$0xff]   ;;  %v1106_v11 = vld [vmem:[%s1183_s24 + $0x18] sm:$0xff]   ;;  %v344_v13 = vld [vmem:[#allocation2 + $0x10] sm:$0xff] }
  0x1f   : > { %1047 = vmatprep.mubr.msk.bf16.mxu0 %vm446_vm1, %v1100_v4  ;;  %1055 = vmatprep.mubr.msk.bf16.mxu1 %vm446_vm1, %v1101_v5  ;;  %v1107_v12 = vld [vmem:[%s1183_s24 + $0x38] sm:$0xff]   ;;  %v352_v14 = vld [vmem:[#allocation2 + $0x50] sm:$0xff]  ;;  %v342_v17 = vld [vmem:[#allocation2] sm:$0xff] }
  0x20   : > { %v350_v18 = vld [vmem:[#allocation2 + $0x40] sm:$0xff]  ;;  %v345_v23 = vld [vmem:[#allocation2 + $0x18] sm:$0xff]  ;;  %v343_v29 = vld [vmem:[#allocation2 + $0x8] sm:$0xff] }
  0x21   : > { %1042 = vmatpush3.bf16.msra.mxu0 %v1097_v2  ;;  %1068 = vmatpush3.bf16.msra.mxu1 %v1097_v2  ;;  %v353_v24 = vld [vmem:[#allocation2 + $0x58] sm:$0xff]  ;;  %v351_v30 = vld [vmem:[#allocation2 + $0x48] sm:$0xff]  ;;  %v348_v35 = vld [vmem:[#allocation2 + $0x30] sm:$0xff] }
  0x22   : > { %1043 = vmatprep.subr.bf16.mxu0 %v1098_v3  ;;  %1065 = vmatprep.subr.bf16.mxu1 %v1098_v3  ;;  %v356_v36 = vld [vmem:[#allocation2 + $0x70] sm:$0xff]  ;;  %v346_v41 = vld [vmem:[#allocation2 + $0x20] sm:$0xff]  ;;  %v349_v47 = vld [vmem:[#allocation2 + $0x38] sm:$0xff] }
  0x23   : > { %v354_v42 = vld [vmem:[#allocation2 + $0x60] sm:$0xff]  ;;  %v357_v48 = vld [vmem:[#allocation2 + $0x78] sm:$0xff]  ;;  %v347_v53 = vld [vmem:[#allocation2 + $0x28] sm:$0xff] }
  0x24   : > { %v355_v54 = vld [vmem:[#allocation2 + $0x68] sm:$0xff] }
  0x25   : > { %1044 = vmatpush3.bf16.msra.mxu0 %v1098_v3  ;;  %1069 = vmatpush3.bf16.msra.mxu1 %v1098_v3 }
  0x26   : > { %1045 = vmatprep.subr.bf16.mxu0 %v1099_v6  ;;  %1066 = vmatprep.subr.bf16.mxu1 %v1099_v6 }
  0x29   : > { %1046 = vmatpush3.bf16.msra.mxu0 %v1099_v6  ;;  %1070 = vmatpush3.bf16.msra.mxu1 %v1099_v6 }
  0x2c   : > { %1048 = vmatmul.mubr.msk.bf16.vlgmr.msra.gmra.mxu0 %vm446_vm1, %v1102_v7  ;;  %1056 = vmatmul.mubr.msk.bf16.vlgmr.msra.gmra.mxu1 %vm446_vm1, %v1103_v8 }
  0x2d   : > { %1051 = vmatprep.mubr.msk.bf16.mxu0 %vm446_vm1, %v1104_v9  ;;  %1059 = vmatprep.mubr.msk.bf16.mxu1 %vm446_vm1, %v1105_v10 }
  0x34   : > { %1052 = vmatmul.mubr.msk.bf16.gmra.mxu0 %vm446_vm1, %v1106_v11  ;;  %1060 = vmatmul.mubr.msk.bf16.gmra.mxu1 %vm446_vm1, %v1107_v12 }
  0xec   : > { %v1049_v15 = vpop.f32.mrf.mxu0  ;;  %v1057_v16 = vpop.f32.mrf.mxu1 }
  0xed   : > { %v570_v19 = vadd.f32 %v1049_v15, %v344_v13  ;;  %v578_v20 = vadd.f32 %v1057_v16, %v352_v14 }
  0xee   : > { %v505_v21 = vpop.f32.mrf.mxu0  ;;  %v537_v22 = vpop.f32.mrf.mxu1 }
  0xef   : > { %586 = vst.msk [vmem:[#allocation2 + $0x10] sm:$0xff] %vm446_vm1, %v570_v19  ;;  %594 = vst.msk [vmem:[#allocation2 + $0x50] sm:$0xff] %vm446_vm1, %v578_v20  ;;  %v568_v25 = vadd.f32 %v505_v21, %v342_v17  ;;  %v576_v26 = vadd.f32 %v537_v22, %v350_v18 }
  0xf0   : > { %v1050_v27 = vpop.f32.mrf.mxu0  ;;  %v1058_v28 = vpop.f32.mrf.mxu1 }
  0xf1   : > { %584 = vst.msk [vmem:[#allocation2] sm:$0xff] %vm446_vm1, %v568_v25  ;;  %592 = vst.msk [vmem:[#allocation2 + $0x40] sm:$0xff] %vm446_vm1, %v576_v26  ;;  %v571_v31 = vadd.f32 %v1050_v27, %v345_v23  ;;  %v579_v32 = vadd.f32 %v1058_v28, %v353_v24 }
  0xf2   : > { %v508_v33 = vpop.f32.mrf.mxu0  ;;  %v540_v34 = vpop.f32.mrf.mxu1 }
  0xf3   : > { %587 = vst.msk [vmem:[#allocation2 + $0x18] sm:$0xff] %vm446_vm1, %v571_v31  ;;  %595 = vst.msk [vmem:[#allocation2 + $0x58] sm:$0xff] %vm446_vm1, %v579_v32  ;;  %v569_v37 = vadd.f32 %v508_v33, %v343_v29  ;;  %v577_v38 = vadd.f32 %v540_v34, %v351_v30 }
  0xf4   : > { %v1053_v39 = vpop.f32.mrf.mxu0  ;;  %v1061_v40 = vpop.f32.mrf.mxu1 }
  0xf5   : > { %585 = vst.msk [vmem:[#allocation2 + $0x8] sm:$0xff] %vm446_vm1, %v569_v37  ;;  %593 = vst.msk [vmem:[#allocation2 + $0x48] sm:$0xff] %vm446_vm1, %v577_v38  ;;  %v574_v43 = vadd.f32 %v1053_v39, %v348_v35  ;;  %v582_v44 = vadd.f32 %v1061_v40, %v356_v36 }
  0xf6   : > { %v521_v45 = vpop.f32.mrf.mxu0  ;;  %v553_v46 = vpop.f32.mrf.mxu1 }
  0xf7   : > { %590 = vst.msk [vmem:[#allocation2 + $0x30] sm:$0xff] %vm446_vm1, %v574_v43  ;;  %598 = vst.msk [vmem:[#allocation2 + $0x70] sm:$0xff] %vm446_vm1, %v582_v44  ;;  %v572_v49 = vadd.f32 %v521_v45, %v346_v41  ;;  %v580_v50 = vadd.f32 %v553_v46, %v354_v42 }
  0xf8   : > { %v1054_v51 = vpop.f32.mrf.mxu0  ;;  %v1062_v52 = vpop.f32.mrf.mxu1 }
  0xf9   : > { %588 = vst.msk [vmem:[#allocation2 + $0x20] sm:$0xff] %vm446_vm1, %v572_v49  ;;  %596 = vst.msk [vmem:[#allocation2 + $0x60] sm:$0xff] %vm446_vm1, %v580_v50  ;;  %v575_v55 = vadd.f32 %v1054_v51, %v349_v47  ;;  %v583_v56 = vadd.f32 %v1062_v52, %v357_v48  ;;  %603 = sbr.rel (%p948_p6) target bundleno = 282 (0x11a), region = 44 }
  0xfa   : > { %v524_v57 = vpop.f32.mrf.mxu0  ;;  %v556_v58 = vpop.f32.mrf.mxu1 }
  0xfb   : > { %591 = vst.msk [vmem:[#allocation2 + $0x38] sm:$0xff] %vm446_vm1, %v575_v55  ;;  %599 = vst.msk [vmem:[#allocation2 + $0x78] sm:$0xff] %vm446_vm1, %v583_v56  ;;  %v573_v59 = vadd.f32 %v524_v57, %v347_v53  ;;  %v581_v60 = vadd.f32 %v556_v58, %v355_v54 }
  0xfd   : > { %589 = vst.msk [vmem:[#allocation2 + $0x28] sm:$0xff] %vm446_vm1, %v573_v59  ;;  %597 = vst.msk [vmem:[#allocation2 + $0x68] sm:$0xff] %vm446_vm1, %v581_v60 }
  0xfe   : > { %v604_v61 = vld [vmem:[#allocation2] sm:$0xff]  ;;  %vm771_vm2 = vcmask 519168   ;;  %v605_v2 = vld [vmem:[#allocation2 + $0x8] sm:$0xff]  ;;  %v606_v4 = vld [vmem:[#allocation2 + $0x10] sm:$0xff] }
  0xff   : > { %v1247_v62 = vld [vmem:[%s1364_s2] ss:$0 sm:$0xff]  ;;  %v1020_v5 = vld [vmem:[%s1365_s3 + $0x8] sm:$0xff]   ;;  %v607_v9 = vld [vmem:[#allocation2 + $0x18] sm:$0xff] }
 0x100   : > { %v989_v63 = vld [vmem:[%s1365_s3] sm:$0xff]   ;;  %v627_v0 = vadd.f32 %v1247_v62, %v604_v61  ;;  %v628_v6 = vadd.f32 %v1247_v62, %v605_v2  ;;  %v629_v7 = vadd.f32 %v1247_v62, %v606_v4  ;;  %v994_v8 = vunpack.c.l.bf16 %v1020_v5  ;;  %v1021_v12 = vld [vmem:[%s1365_s3 + $0x10] sm:$0xff]   ;;  %v1022_v19 = vld [vmem:[%s1365_s3 + $0x18] sm:$0xff]  }
 0x101   : > { %v990_v1 = vunpack.c.l.bf16 %v989_v63  ;;  %v991_v3 = vunpack.c.h.bf16 %v989_v63  ;;  %v995_v10 = vunpack.c.h.bf16 %v1020_v5  ;;  %v608_v11 = vld [vmem:[#allocation2 + $0x20] sm:$0xff]  ;;  %v630_v14 = vadd.f32 %v1247_v62, %v607_v9  ;;  %v610_v18 = vld [vmem:[#allocation2 + $0x30] sm:$0xff]  ;;  %v613_v39 = vld [vmem:[#allocation2 + $0x48] sm:$0xff] }
 0x102   : > { %v631_v15 = vadd.f32 %v1247_v62, %v608_v11  ;;  %v998_v16 = vunpack.c.l.bf16 %v1021_v12  ;;  %v677_v21 = vadd.f32 %v994_v8, %v629_v7  ;;  %v999_v23 = vunpack.c.h.bf16 %v1021_v12  ;;  %v611_v24 = vld [vmem:[#allocation2 + $0x38] sm:$0xff]  ;;  %v612_v33 = vld [vmem:[#allocation2 + $0x40] sm:$0xff]  ;;  %v614_v44 = vld [vmem:[#allocation2 + $0x50] sm:$0xff] }
 0x103   : > { %v675_v13 = vadd.f32 %v990_v1, %v627_v0  ;;  %v676_v20 = vadd.f32 %v991_v3, %v628_v6  ;;  %v678_v26 = vadd.f32 %v995_v10, %v630_v14  ;;  %v633_v28 = vadd.f32 %v1247_v62, %v610_v18  ;;  %v1023_v38 = vld [vmem:[%s1365_s3 + $0x20] sm:$0xff]   ;;  %v1024_v45 = vld [vmem:[%s1365_s3 + $0x28] sm:$0xff]   ;;  %v615_v50 = vld [vmem:[#allocation2 + $0x58] sm:$0xff] }
 0x104   : > { %v609_v17 = vld [vmem:[#allocation2 + $0x28] sm:$0xff]  ;;  %v679_v27 = vadd.f32 %v998_v16, %v631_v15  ;;  %v693_v30 = vmax.f32 %v677_v21, 0.0  ;;  %v1002_v32 = vunpack.c.l.bf16 %v1022_v19  ;;  %v634_v37 = vadd.f32 %v1247_v62, %v611_v24  ;;  %v616_v55 = vld [vmem:[#allocation2 + $0x60] sm:$0xff]  ;;  %v1025_v60 = vld [vmem:[%s1365_s3 + $0x30] sm:$0xff]  }
 0x105   : > { %v632_v22 = vadd.f32 %v1247_v62, %v609_v17  ;;  %v691_v25 = vmax.f32 %v675_v13, 0.0  ;;  %v692_v29 = vmax.f32 %v676_v20, 0.0  ;;  %v694_v35 = vmax.f32 %v678_v26, 0.0  ;;  %v617_v61 = vld [vmem:[#allocation2 + $0x68] sm:$0xff]  ;;  %v618_v7 = vld [vmem:[#allocation2 + $0x70] sm:$0xff]  ;;  %v1026_v12 = vld [vmem:[%s1365_s3 + $0x38] sm:$0xff]  }
 0x106   : > { %v695_v36 = vmax.f32 %v679_v27, 0.0  ;;  %v974_v41 = vpack.c.bf16 %v693_v30, %v693_v30  ;;  %v681_v43 = vadd.f32 %v1002_v32, %v633_v28  ;;  %v1003_v48 = vunpack.c.h.bf16 %v1022_v19  ;;  %v619_v17 = vld [vmem:[#allocation2 + $0x78] sm:$0xff] }
 0x107   : > { %v680_v31 = vadd.f32 %v999_v23, %v632_v22  ;;  %v972_v34 = vpack.c.bf16 %v691_v25, %v691_v25  ;;  %v973_v40 = vpack.c.bf16 %v692_v29, %v692_v29  ;;  %v975_v46 = vpack.c.bf16 %v694_v35, %v694_v35 }
 0x108   : > { %v976_v47 = vpack.c.bf16 %v695_v36, %v695_v36  ;;  %v635_v49 = vadd.f32 %v1247_v62, %v612_v33  ;;  %774 = vst.msk [vmem:[%s1366_s4 + $0x8] sm:$0xf] %vm771_vm2, %v974_v41  ;;  %v697_v52 = vmax.f32 %v681_v43, 0.0  ;;  %v1006_v53 = vunpack.c.l.bf16 %v1023_v38 }
 0x109   : > { %v696_v42 = vmax.f32 %v680_v31, 0.0  ;;  %772 = vst.msk [vmem:[%s1366_s4] sm:$0xf] %vm771_vm2, %v972_v34  ;;  %773 = vst.msk [vmem:[%s1366_s4 + $0x4] sm:$0xf] %vm771_vm2, %v973_v40  ;;  %v636_v54 = vadd.f32 %v1247_v62, %v613_v39  ;;  %v682_v56 = vadd.f32 %v1003_v48, %v634_v37  ;;  %v1007_v57 = vunpack.c.h.bf16 %v1023_v38 }
 0x10a   : > { %775 = vst.msk [vmem:[%s1366_s4 + $0xc] sm:$0xf] %vm771_vm2, %v975_v46  ;;  %776 = vst.msk [vmem:[%s1366_s4 + $0x10] sm:$0xf] %vm771_vm2, %v976_v47  ;;  %v637_v58 = vadd.f32 %v1247_v62, %v614_v44  ;;  %v1010_v59 = vunpack.c.l.bf16 %v1024_v45  ;;  %v978_v63 = vpack.c.bf16 %v697_v52, %v697_v52  ;;  %v683_v0 = vadd.f32 %v1006_v53, %v635_v49 }
 0x10b   : > { %v977_v51 = vpack.c.bf16 %v696_v42, %v696_v42  ;;  %v638_v1 = vadd.f32 %v1247_v62, %v615_v50  ;;  %v1011_v2 = vunpack.c.h.bf16 %v1024_v45  ;;  %v698_v3 = vmax.f32 %v682_v56, 0.0 }
 0x10c   : > { %v684_v4 = vadd.f32 %v1007_v57, %v636_v54  ;;  %v685_v5 = vadd.f32 %v1010_v59, %v637_v58  ;;  %v639_v6 = vadd.f32 %v1247_v62, %v616_v55  ;;  %778 = vst.msk [vmem:[%s1366_s4 + $0x18] sm:$0xf] %vm771_vm2, %v978_v63  ;;  %v699_v8 = vmax.f32 %v683_v0, 0.0 }
 0x10d   : > { %777 = vst.msk [vmem:[%s1366_s4 + $0x14] sm:$0xf] %vm771_vm2, %v977_v51  ;;  %v686_v9 = vadd.f32 %v1011_v2, %v638_v1  ;;  %v1014_v10 = vunpack.c.l.bf16 %v1025_v60  ;;  %v640_v11 = vadd.f32 %v1247_v62, %v617_v61  ;;  %v979_v13 = vpack.c.bf16 %v698_v3, %v698_v3 }
 0x10e   : > { %v700_v14 = vmax.f32 %v684_v4, 0.0  ;;  %v701_v15 = vmax.f32 %v685_v5, 0.0  ;;  %v1015_v16 = vunpack.c.h.bf16 %v1025_v60  ;;  %v980_v18 = vpack.c.bf16 %v699_v8, %v699_v8 }
 0x10f   : > { %v702_v19 = vmax.f32 %v686_v9, 0.0  ;;  %v687_v20 = vadd.f32 %v1014_v10, %v639_v6  ;;  %v641_v21 = vadd.f32 %v1247_v62, %v618_v7  ;;  %779 = vst.msk [vmem:[%s1366_s4 + $0x1c] sm:$0xf] %vm771_vm2, %v979_v13  ;;  %v1018_v25 = vunpack.c.l.bf16 %v1026_v12 }
 0x110   : > { %v981_v22 = vpack.c.bf16 %v700_v14, %v700_v14  ;;  %v982_v23 = vpack.c.bf16 %v701_v15, %v701_v15  ;;  %v688_v24 = vadd.f32 %v1015_v16, %v640_v11  ;;  %780 = vst.msk [vmem:[%s1366_s4 + $0x20] sm:$0xf] %vm771_vm2, %v980_v18  ;;  %v642_v28 = vadd.f32 %v1247_v62, %v619_v17 }
 0x111   : > { %v983_v26 = vpack.c.bf16 %v702_v19, %v702_v19  ;;  %v703_v27 = vmax.f32 %v687_v20, 0.0  ;;  %v1019_v29 = vunpack.c.h.bf16 %v1026_v12  ;;  %v689_v31 = vadd.f32 %v1018_v25, %v641_v21 }
 0x112   : > { %781 = vst.msk [vmem:[%s1366_s4 + $0x24] sm:$0xf] %vm771_vm2, %v981_v22  ;;  %782 = vst.msk [vmem:[%s1366_s4 + $0x28] sm:$0xf] %vm771_vm2, %v982_v23  ;;  %v704_v30 = vmax.f32 %v688_v24, 0.0 }
 0x113   : > { %783 = vst.msk [vmem:[%s1366_s4 + $0x2c] sm:$0xf] %vm771_vm2, %v983_v26  ;;  %v984_v32 = vpack.c.bf16 %v703_v27, %v703_v27  ;;  %v690_v62 = vadd.f32 %v1019_v29, %v642_v28  ;;  %v705_v34 = vmax.f32 %v689_v31, 0.0 }
 0x114   : > { %v985_v33 = vpack.c.bf16 %v704_v30, %v704_v30 }
 0x115   : > { %784 = vst.msk [vmem:[%s1366_s4 + $0x30] sm:$0xf] %vm771_vm2, %v984_v32  ;;  %v706_v35 = vmax.f32 %v690_v62, 0.0  ;;  %v986_v36 = vpack.c.bf16 %v705_v34, %v705_v34 }
 0x116   : > { %785 = vst.msk [vmem:[%s1366_s4 + $0x34] sm:$0xf] %vm771_vm2, %v985_v33 }
 0x117   : > { %v987_v37 = vpack.c.bf16 %v706_v35, %v706_v35  ;;  %786 = vst.msk [vmem:[%s1366_s4 + $0x38] sm:$0xf] %vm771_vm2, %v986_v36 }
 0x119   : > { %787 = vst.msk [vmem:[%s1366_s4 + $0x3c] sm:$0xf] %vm771_vm2, %v987_v37 }
 0x11a PF: > { %s14_s17 = sadd.s32 1, %s1130_s17   ;;  %s1367_s15 = smov %s1126_s16 }
 0x11b   : > { %p11_p7 = scmp.ge.s32.totalorder %s14_s17, 11   ;;  %s1368_s16 = smov %s1370_s18 }
 0x11d   :  { %13 = sbr.rel (!%p11_p7) target bundleno = 2 (0x2), region = 83 }

// kernel: resnet_forward.20
= control target key start
LH: loop header
LB: loop body
LE: loop exit
PB: predicated region body
PF: predicated region fallthrough
CT: control target
= control target key end

     0   :  { %s676_s12 = smov 0   ;;  %s678_s13 = smov 0   ;;  %s724_s0 = inlined_call_operand.vmem [shape: bf16[9,32,64], index: 0, kind: input, shape index: {}]   ;;  %s725_s1 = inlined_call_operand.vmem [shape: bf16[9,64,128], index: 1, kind: input, shape index: {}]   ;;  %s726_s2 = inlined_call_operand.vmem [shape: f32[1,128], index: 2, kind: input, shape index: {}]   ;;  %s727_s3 = inlined_call_operand.vmem [shape: bf16[32,128], index: 3, kind: output, shape index: {}]  }
   0x1   :  { %s680_s14 = smov 0  }
   0x2 LB: > { %s25_s15 = sadd.s32 1, %s649_s13  ;;  %p541_p0 = scmp.ge.s32.totalorder %s653_s14, 1  ;;  %s653_s14 = sphi %s680_s14, %s13_s14   ;;  %s649_s13 = sphi %s678_s13, %s729_s13   ;;  %s645_s12 = sphi %s676_s12, %s728_s12  }
   0x3   : > { %p26_p1 = scmp.ge.s32.totalorder %s25_s15, 9  ;;  %p188_p2 = scmp.lt.s32.totalorder %s653_s14, 10 }
   0x5   : > { %s731_s15 = smov (%p26_p1, %s25_s15), 0  ;;  %p189_p3 = pnand %p541_p0, %p188_p2 }
   0x6   : > { %p231_p4 = scmp.lt.s32.totalorder (!%p189_p3), %s645_s12, 8  ;;  %p546_p5 = scmp.ne.s32.totalorder (!%p189_p3), %s645_s12, 0 }
   0x7   : > { %192 = sbr.rel (%p189_p3) target bundleno = 254 (0xfe), region = 32 }
   0xc   : > { %s232_s16 = scalar_select %p231_p4, %s645_s12, 8 }
   0xd   : > { %264 = sbr.rel (%p546_p5) target bundleno = 21 (0x15), region = 36 }
   0xe   : > { %s565_s17 = sshll.u32 %s232_s16, 4  ;;  %s566_s18 = sshll.u32 %s232_s16, 5 }
   0xf   : > { %s238_s21 = scalar_lea.vmem %s724_s0, %s565_s17  ;;  %s247_s24 = scalar_lea.vmem %s725_s1, %s566_s18 }
  0x12   : > { %v655_v0 = vmov 0.0  }
  0x13   : > { %265 = vst [vmem:[#allocation2 + $0x10] sm:$0xff] %v655_v0  ;;  %266 = vst [vmem:[#allocation2] sm:$0xff] %v655_v0 }
  0x14   : > { %267 = vst [vmem:[#allocation2 + $0x18] sm:$0xff] %v655_v0  ;;  %268 = vst [vmem:[#allocation2 + $0x8] sm:$0xff] %v655_v0 }
  0x15 PF: > { %v625_v1 = vld [vmem:[%s247_s24 + $0x18] sm:$0xff]   ;;  %v626_v2 = vld [vmem:[%s247_s24 + $0x10] sm:$0xff]   ;;  %v627_v3 = vld [vmem:[%s247_s24 + $0x8] sm:$0xff]   ;;  %vm319_vm0 = vcmask 523264   ;;  %p555_p6 = scmp.ne.s32.totalorder %s645_s12, 8 }
  0x16   : > { %588 = vmatprep.subr.bf16.mxu0 %v625_v1  ;;  %v629_v4 = vld [vmem:[%s238_s21] sm:$0xff]   ;;  %v630_v6 = vld [vmem:[%s238_s21 + $0x8] sm:$0xff]  }
  0x17   : > { %589 = vmatpush3.bf16.msra.mxu0 %v625_v1  ;;  %596 = vmatprep.mubr.msk.bf16.mxu0 %vm319_vm0, %v629_v4  ;;  %v628_v5 = vld [vmem:[%s247_s24] sm:$0xff]  }
  0x18   : > { %590 = vmatprep.subr.bf16.mxu0 %v626_v2 }
  0x1a   : > { %v269_v9 = vld [vmem:[#allocation2 + $0x10] sm:$0xff]  ;;  %v270_v15 = vld [vmem:[#allocation2] sm:$0xff] }
  0x1b   : > { %591 = vmatpush3.bf16.msra.mxu0 %v626_v2  ;;  %v271_v7 = vld [vmem:[#allocation2 + $0x18] sm:$0xff]  ;;  %v272_v12 = vld [vmem:[#allocation2 + $0x8] sm:$0xff] }
  0x1c   : > { %592 = vmatprep.subr.bf16.mxu0 %v627_v3 }
  0x1f   : > { %593 = vmatpush3.bf16.msra.mxu0 %v627_v3 }
  0x20   : > { %594 = vmatprep.subr.bf16.mxu0 %v628_v5 }
  0x23   : > { %595 = vmatpush3.bf16.msra.mxu0 %v628_v5 }
  0x26   : > { %597 = vmatmul.mubr.msk.bf16.vlgmr.msra.gmra.mxu0 %vm319_vm0, %v630_v6 }
  0xe6   : > { %v598_v8 = vpop.f32.mrf.mxu0 }
  0xe7   : > { %v377_v10 = vadd.f32 %v598_v8, %v271_v7 }
  0xe8   : > { %v360_v11 = vpop.f32.mrf.mxu0 }
  0xe9   : > { %381 = vst [vmem:[#allocation2 + $0x18] sm:$0xff] %v377_v10  ;;  %v375_v13 = vadd.f32 %v360_v11, %v269_v9 }
  0xea   : > { %v599_v14 = vpop.f32.mrf.mxu0 }
  0xeb   : > { %379 = vst [vmem:[#allocation2 + $0x10] sm:$0xff] %v375_v13  ;;  %v378_v16 = vadd.f32 %v599_v14, %v272_v12  ;;  %386 = sbr.rel (%p555_p6) target bundleno = 254 (0xfe), region = 40 }
  0xec   : > { %v363_v17 = vpop.f32.mrf.mxu0 }
  0xed   : > { %382 = vst [vmem:[#allocation2 + $0x8] sm:$0xff] %v378_v16  ;;  %v376_v18 = vadd.f32 %v363_v17, %v270_v15 }
  0xef   : > { %380 = vst [vmem:[#allocation2] sm:$0xff] %v376_v18 }
  0xf0   : > { %v556_v21 = vld [vmem:[%s726_s2] ss:$0 sm:$0xff]  ;;  %v389_v24 = vld [vmem:[#allocation2 + $0x18] sm:$0xff] }
  0xf1   : > { %v400_v26 = vadd.f32 %v556_v21, %v389_v24 }
  0xf2   : > { %v387_v19 = vld [vmem:[#allocation2 + $0x10] sm:$0xff] }
  0xf3   : > { %v398_v22 = vadd.f32 %v556_v21, %v387_v19  ;;  %v404_v30 = vmax.f32 %v400_v26, 0.0 }
  0xf4   : > { %v390_v25 = vld [vmem:[#allocation2 + $0x8] sm:$0xff] }
  0xf5   : > { %v401_v27 = vadd.f32 %v556_v21, %v390_v25  ;;  %v402_v28 = vmax.f32 %v398_v22, 0.0 }
  0xf6   : > { %v388_v20 = vld [vmem:[#allocation2] sm:$0xff] }
  0xf7   : > { %v399_v23 = vadd.f32 %v556_v21, %v388_v20  ;;  %v405_v31 = vmax.f32 %v401_v27, 0.0 }
  0xf9   : > { %v403_v29 = vmax.f32 %v399_v23, 0.0  ;;  %v579_v33 = vpack.c.bf16 %v405_v31, %v404_v30 }
  0xfb   : > { %v574_v32 = vpack.c.bf16 %v403_v29, %v402_v28  ;;  %581 = vst [vmem:[%s727_s3 + $0x8] sm:$0xff] %v579_v33  }
  0xfd   : > { %575 = vst [vmem:[%s727_s3] sm:$0xff] %v574_v32  }
  0xfe PF: > { %s13_s14 = sadd.s32 1, %s653_s14   ;;  %s728_s12 = smov %s649_s13 }
  0xff   : > { %p10_p7 = scmp.ge.s32.totalorder %s13_s14, 11   ;;  %s729_s13 = smov %s731_s15 }
 0x101   :  { %12 = sbr.rel (!%p10_p7) target bundleno = 2 (0x2), region = 76 }

// kernel: resnet_forward.19
= control target key start
LH: loop header
LB: loop body
LE: loop exit
PB: predicated region body
PF: predicated region fallthrough
CT: control target
= control target key end

     0   :  { %vm73_vm0 = vcmask 523264   ;;  %s278_s1 = inlined_call_operand.vmem [shape: bf16[1,64,128], index: 1, kind: input, shape index: {}]   ;;  %s279_s0 = inlined_call_operand.vmem [shape: bf16[1,32,64], index: 0, kind: input, shape index: {}]   ;;  %s280_s2 = inlined_call_operand.vmem [shape: f32[1,128], index: 2, kind: input, shape index: {}]   ;;  %s281_s3 = inlined_call_operand.vmem [shape: bf16[32,128], index: 3, kind: output, shape index: {}]  }
   0x1   :  { %v225_v0 = vld [vmem:[%s278_s1 + $0x18] sm:$0xff]   ;;  %v226_v1 = vld [vmem:[%s278_s1 + $0x10] sm:$0xff]   ;;  %v227_v2 = vld [vmem:[%s278_s1 + $0x8] sm:$0xff]  }
   0x2   :  { %213 = vmatprep.subr.bf16.mxu0 %v225_v0  ;;  %v229_v3 = vld [vmem:[%s279_s0] sm:$0xff]   ;;  %v230_v5 = vld [vmem:[%s279_s0 + $0x8] sm:$0xff]  }
   0x3   :  { %214 = vmatpush3.bf16.msra.mxu0 %v225_v0  ;;  %221 = vmatprep.mubr.msk.bf16.mxu0 %vm73_vm0, %v229_v3  ;;  %v228_v4 = vld [vmem:[%s278_s1] sm:$0xff]  }
   0x4   :  { %215 = vmatprep.subr.bf16.mxu0 %v226_v1  ;;  %v187_v7 = vld [vmem:[%s280_s2] ss:$0 sm:$0xff] }
   0x7   :  { %216 = vmatpush3.bf16.msra.mxu0 %v226_v1 }
   0x8   :  { %217 = vmatprep.subr.bf16.mxu0 %v227_v2 }
   0xb   :  { %218 = vmatpush3.bf16.msra.mxu0 %v227_v2 }
   0xc   :  { %219 = vmatprep.subr.bf16.mxu0 %v228_v4 }
   0xf   :  { %220 = vmatpush3.bf16.msra.mxu0 %v228_v4 }
  0x12   :  { %222 = vmatmul.mubr.msk.bf16.vlgmr.msra.gmra.mxu0 %vm73_vm0, %v230_v5 }
  0xd2   :  { %v223_v6 = vpop.f32.mrf.mxu0 }
  0xd3   :  { %v153_v10 = vadd.f32 %v223_v6, %v187_v7 }
  0xd4   :  { %v114_v8 = vpop.f32.mrf.mxu0 }
  0xd5   :  { %v151_v13 = vadd.f32 %v187_v7, %v114_v8 }
  0xd6   :  { %v224_v9 = vpop.f32.mrf.mxu0 }
  0xd7   :  { %v154_v11 = vadd.f32 %v224_v9, %v187_v7 }
  0xd8   :  { %v117_v12 = vpop.f32.mrf.mxu0 }
  0xd9   :  { %v204_v14 = vpack.c.bf16 %v154_v11, %v153_v10  ;;  %v152_v15 = vadd.f32 %v187_v7, %v117_v12 }
  0xdb   :  { %206 = vst [vmem:[%s281_s3 + $0x8] sm:$0xff] %v204_v14   ;;  %v199_v16 = vpack.c.bf16 %v152_v15, %v151_v13 }
  0xdd   :  { %200 = vst [vmem:[%s281_s3] sm:$0xff] %v199_v16  }

// kernel: resnet_forward.21
= control target key start
LH: loop header
LB: loop body
LE: loop exit
PB: predicated region body
PF: predicated region fallthrough
CT: control target
= control target key end

     0   :  { %s826_s15 = smov 0   ;;  %s828_s16 = smov 0   ;;  %s894_s0 = inlined_call_operand.vmem [shape: bf16[9,32,128], index: 0, kind: input, shape index: {}]   ;;  %s895_s1 = inlined_call_operand.vmem [shape: bf16[9,128,128], index: 1, kind: input, shape index: {}]   ;;  %s896_s2 = inlined_call_operand.vmem [shape: f32[1,128], index: 2, kind: input, shape index: {}]   ;;  %s897_s3 = inlined_call_operand.vmem [shape: bf16[32,128], index: 3, kind: input, shape index: {}]   ;;  %s898_s4 = inlined_call_operand.vmem [shape: bf16[32,128], index: 4, kind: output, shape index: {}]  }
   0x1   :  { %s830_s17 = smov 0  }
   0x2 LB: > { %s26_s18 = sadd.s32 1, %s794_s16  ;;  %p659_p0 = scmp.ge.s32.totalorder %s798_s17, 1  ;;  %s798_s17 = sphi %s830_s17, %s14_s17   ;;  %s794_s16 = sphi %s828_s16, %s900_s16   ;;  %s790_s15 = sphi %s826_s15, %s899_s15  }
   0x3   : > { %p27_p1 = scmp.ge.s32.totalorder %s26_s18, 9  ;;  %p229_p2 = scmp.lt.s32.totalorder %s798_s17, 10 }
   0x5   : > { %s902_s18 = smov (%p27_p1, %s26_s18), 0  ;;  %p230_p3 = pnand %p659_p0, %p229_p2 }
   0x6   : > { %p282_p4 = scmp.lt.s32.totalorder (!%p230_p3), %s790_s15, 8  ;;  %p664_p5 = scmp.ne.s32.totalorder (!%p230_p3), %s790_s15, 0 }
   0x7   : > { %233 = sbr.rel (%p230_p3) target bundleno = 272 (0x110), region = 36 }
   0xc   : > { %s283_s19 = scalar_select %p282_p4, %s790_s15, 8 }
   0xd   : > { %324 = sbr.rel (%p664_p5) target bundleno = 21 (0x15), region = 40 }
   0xe   : > { %s685_s20 = sshll.u32 %s283_s19, 4  ;;  %s686_s21 = sshll.u32 %s283_s19, 6 }
   0xf   : > { %s851_s24 = scalar_lea.vmem %s894_s0, %s685_s20  ;;  %s856_s27 = scalar_lea.vmem %s895_s1, %s686_s21 }
  0x12   : > { %v800_v0 = vmov 0.0  }
  0x13   : > { %325 = vst [vmem:[#allocation2 + $0x10] sm:$0xff] %v800_v0  ;;  %326 = vst [vmem:[#allocation2] sm:$0xff] %v800_v0 }
  0x14   : > { %327 = vst [vmem:[#allocation2 + $0x18] sm:$0xff] %v800_v0  ;;  %328 = vst [vmem:[#allocation2 + $0x8] sm:$0xff] %v800_v0 }
  0x15 PF: > { %v766_v1 = vld [vmem:[%s856_s27 + $0x38] sm:$0xff]   ;;  %v767_v2 = vld [vmem:[%s856_s27 + $0x30] sm:$0xff]   ;;  %v768_v3 = vld [vmem:[%s856_s27 + $0x28] sm:$0xff]   ;;  %p675_p6 = scmp.ne.s32.totalorder %s790_s15, 8 }
  0x16   : > { %721 = vmatprep.subr.bf16.mxu0 %v766_v1  ;;  %v769_v4 = vld [vmem:[%s856_s27 + $0x20] sm:$0xff]   ;;  %v770_v6 = vld [vmem:[%s856_s27 + $0x18] sm:$0xff]   ;;  %v771_v7 = vld [vmem:[%s856_s27 + $0x10] sm:$0xff]  }
  0x17   : > { %722 = vmatpush3.bf16.msra.mxu0 %v766_v1  ;;  %v774_v5 = vld [vmem:[%s851_s24] sm:$0xff]   ;;  %v772_v8 = vld [vmem:[%s856_s27 + $0x8] sm:$0xff]  }
  0x18   : > { %723 = vmatprep.subr.bf16.mxu0 %v767_v2  ;;  %737 = vmatprep.mubr.bf16.mxu0 %v774_v5  ;;  %v773_v9 = vld [vmem:[%s856_s27] sm:$0xff]   ;;  %v775_v10 = vld [vmem:[%s851_s24 + $0x8] sm:$0xff]  }
  0x1a   : > { %v329_v13 = vld [vmem:[#allocation2 + $0x10] sm:$0xff]  ;;  %v330_v19 = vld [vmem:[#allocation2] sm:$0xff] }
  0x1b   : > { %724 = vmatpush3.bf16.msra.mxu0 %v767_v2  ;;  %v331_v11 = vld [vmem:[#allocation2 + $0x18] sm:$0xff]  ;;  %v332_v16 = vld [vmem:[#allocation2 + $0x8] sm:$0xff] }
  0x1c   : > { %725 = vmatprep.subr.bf16.mxu0 %v768_v3 }
  0x1f   : > { %726 = vmatpush3.bf16.msra.mxu0 %v768_v3 }
  0x20   : > { %727 = vmatprep.subr.bf16.mxu0 %v769_v4 }
  0x23   : > { %728 = vmatpush3.bf16.msra.mxu0 %v769_v4 }
  0x24   : > { %729 = vmatprep.subr.bf16.mxu0 %v770_v6 }
  0x27   : > { %730 = vmatpush3.bf16.msra.mxu0 %v770_v6 }
  0x28   : > { %731 = vmatprep.subr.bf16.mxu0 %v771_v7 }
  0x2b   : > { %732 = vmatpush3.bf16.msra.mxu0 %v771_v7 }
  0x2c   : > { %733 = vmatprep.subr.bf16.mxu0 %v772_v8 }
  0x2f   : > { %734 = vmatpush3.bf16.msra.mxu0 %v772_v8 }
  0x30   : > { %735 = vmatprep.subr.bf16.mxu0 %v773_v9 }
  0x33   : > { %736 = vmatpush3.bf16.msra.mxu0 %v773_v9 }
  0x36   : > { %738 = vmatmul.mubr.bf16.vlgmr.msra.gmra.mxu0 %v775_v10 }
  0xf6   : > { %v739_v12 = vpop.f32.mrf.mxu0 }
  0xf7   : > { %v464_v14 = vadd.f32 %v739_v12, %v331_v11 }
  0xf8   : > { %v447_v15 = vpop.f32.mrf.mxu0 }
  0xf9   : > { %468 = vst [vmem:[#allocation2 + $0x18] sm:$0xff] %v464_v14  ;;  %v462_v17 = vadd.f32 %v447_v15, %v329_v13 }
  0xfa   : > { %v740_v18 = vpop.f32.mrf.mxu0 }
  0xfb   : > { %466 = vst [vmem:[#allocation2 + $0x10] sm:$0xff] %v462_v17  ;;  %v465_v20 = vadd.f32 %v740_v18, %v332_v16  ;;  %473 = sbr.rel (%p675_p6) target bundleno = 272 (0x110), region = 44 }
  0xfc   : > { %v450_v21 = vpop.f32.mrf.mxu0 }
  0xfd   : > { %469 = vst [vmem:[#allocation2 + $0x8] sm:$0xff] %v465_v20  ;;  %v463_v22 = vadd.f32 %v450_v21, %v330_v19 }
  0xff   : > { %467 = vst [vmem:[#allocation2] sm:$0xff] %v463_v22 }
 0x100   : > { %v676_v25 = vld [vmem:[%s896_s2] ss:$0 sm:$0xff]  ;;  %v476_v29 = vld [vmem:[#allocation2 + $0x18] sm:$0xff]  ;;  %v709_v35 = vld [vmem:[%s897_s3 + $0x8] sm:$0xff]  }
 0x101   : > { %v692_v28 = vld [vmem:[%s897_s3] sm:$0xff]   ;;  %v487_v33 = vadd.f32 %v676_v25, %v476_v29  ;;  %v697_v36 = vunpack.c.l.bf16 %v709_v35  ;;  %v698_v37 = vunpack.c.h.bf16 %v709_v35 }
 0x102   : > { %v474_v23 = vld [vmem:[#allocation2 + $0x10] sm:$0xff]  ;;  %v693_v31 = vunpack.c.l.bf16 %v692_v28  ;;  %v694_v32 = vunpack.c.h.bf16 %v692_v28 }
 0x103   : > { %v485_v26 = vadd.f32 %v676_v25, %v474_v23  ;;  %v499_v40 = vadd.f32 %v697_v36, %v487_v33 }
 0x104   : > { %v477_v30 = vld [vmem:[#allocation2 + $0x8] sm:$0xff] }
 0x105   : > { %v488_v34 = vadd.f32 %v676_v25, %v477_v30  ;;  %v497_v38 = vadd.f32 %v693_v31, %v485_v26  ;;  %v503_v44 = vmax.f32 %v499_v40, 0.0 }
 0x106   : > { %v475_v24 = vld [vmem:[#allocation2] sm:$0xff] }
 0x107   : > { %v486_v27 = vadd.f32 %v676_v25, %v475_v24  ;;  %v500_v41 = vadd.f32 %v698_v37, %v488_v34  ;;  %v501_v42 = vmax.f32 %v497_v38, 0.0 }
 0x109   : > { %v498_v39 = vadd.f32 %v694_v32, %v486_v27  ;;  %v504_v45 = vmax.f32 %v500_v41, 0.0 }
 0x10b   : > { %v502_v43 = vmax.f32 %v498_v39, 0.0  ;;  %v707_v47 = vpack.c.bf16 %v504_v45, %v503_v44 }
 0x10d   : > { %v702_v46 = vpack.c.bf16 %v502_v43, %v501_v42  ;;  %710 = vst [vmem:[%s898_s4 + $0x8] sm:$0xff] %v707_v47  }
 0x10f   : > { %703 = vst [vmem:[%s898_s4] sm:$0xff] %v702_v46  }
 0x110 PF: > { %s14_s17 = sadd.s32 1, %s798_s17   ;;  %s899_s15 = smov %s794_s16 }
 0x111   : > { %p11_p7 = scmp.ge.s32.totalorder %s14_s17, 11   ;;  %s900_s16 = smov %s902_s18 }
 0x113   :  { %13 = sbr.rel (!%p11_p7) target bundleno = 2 (0x2), region = 83 }

// kernel: resnet_forward.23
= control target key start
LH: loop header
LB: loop body
LE: loop exit
PB: predicated region body
PF: predicated region fallthrough
CT: control target
= control target key end

     0   :  { %s791_s12 = smov 0   ;;  %s793_s13 = smov 0   ;;  %s923_s0 = inlined_call_operand.vmem [shape: bf16[9,8,128], index: 0, kind: input, shape index: {}]   ;;  %s924_s1 = inlined_call_operand.vmem [shape: bf16[9,128,256], index: 1, kind: input, shape index: {}]   ;;  %s925_s2 = inlined_call_operand.vmem [shape: f32[1,256], index: 2, kind: input, shape index: {}]   ;;  %s926_s3 = inlined_call_operand.vmem [shape: bf16[8,256], index: 3, kind: output, shape index: {}]  }
   0x1   :  { %s795_s14 = smov 0   ;;  %s797_s15 = smov 0  }
   0x2   :  { %s799_s16 = smov 0   ;;  %s801_s17 = smov 0  }
   0x3   :  { %s803_s18 = smov 0  }
   0x4 LB: > { %s25_s19 = sadd.s32 1, %s758_s16  ;;  %s28_s20 = sadd.s32 1, %s762_s17  ;;  %s766_s18 = sphi %s803_s18, %s13_s18   ;;  %s762_s17 = sphi %s801_s17, %s932_s17   ;;  %s758_s16 = sphi %s799_s16, %s931_s16   ;;  %s754_s15 = sphi %s797_s15, %s930_s15   ;;  %s750_s14 = sphi %s795_s14, %s929_s14   ;;  %s746_s13 = sphi %s793_s13, %s928_s13   ;;  %s742_s12 = sphi %s791_s12, %s927_s12  }
   0x5   : > { %p26_p0 = scmp.ge.s32.totalorder %s25_s19, 9  ;;  %p76_p1 = scmp.ne.s32.totalorder %s746_s13, %s742_s12 }
   0x6   : > { %p77_p2 = scmp.eq.s32.totalorder %s766_s18, 0  ;;  %s69_s24 = sadd.s32 1, %s746_s13 }
   0x7   : > { %s934_s19 = smov (%p26_p0, %s25_s19), 0  ;;  %s936_s20 = smov (!%p26_p0, %s28_s20), %s762_s17 }
   0x8   : > { %p78_p3 = por %p77_p2, %p76_p1  ;;  %p30_p4 = scmp.ge.s32.totalorder %s936_s20, 2 }
   0x9   : > { %s64_s21 = ssub.s32 %s758_s16, %s934_s19  ;;  %p595_p6 = scmp.ge.s32.totalorder %s766_s18, 18 }
   0xa   : > { %s938_s20 = smov (%p30_p4, %s936_s20), 0 }
   0xb   : > { %s65_s22 = ssub.s32 %s762_s17, %s938_s20  ;;  %156 = sbr.rel (%p595_p6) target bundleno = 32 (0x20), region = 16 }
   0xc   : > { %s66_s23 = sor.u32 %s65_s22, %s64_s21 }
   0xd   : > { %p67_p5 = scmp.eq.s32.totalorder %s66_s23, 0 }
   0xf   : > { %s842_s25 = scalar_select %p67_p5, %s746_s13, %s69_s24  }
  0x10   : > { %169 = sbr.rel (!%p78_p3) target bundleno = 32 (0x20), region = 24  ;;  %s171_s26 = sand.u32 (%p78_p3), 1, %s746_s13  }
  0x11   : > { %s597_s27 = sshll.u32 (%p78_p3), %s758_s16, 5  ;;  %s596_s28 = sshll.u32 (%p78_p3), %s171_s26, 6 }
  0x12   : > { %s175_s29 = sadd.s32 (%p78_p3), %s762_s17, %s597_s27  ;;  %s173_s7 = scalar_lea.vmem (%p78_p3), [#allocation3], %s596_s28 }
  0x13   : > { %s598_s30 = sshll.u32 (%p78_p3), %s175_s29, 2 }
  0x14   : > { %s851_s6 = scalar_lea.vmem (%p78_p3), %s924_s1, %s598_s30 }
  0x15   : > { %v194_v0 = vld [vmem:[%s851_s6] sm:$0xf]  ;;  %v196_v1 = vld [vmem:[%s851_s6 + $0x8] sm:$0xf]  ;;  %v198_v2 = vld [vmem:[%s851_s6 + $0x10] sm:$0xf] }
  0x16   : > { %195 = vst [vmem:[%s173_s7] sm:$0xf] %v194_v0  ;;  %197 = vst [vmem:[%s173_s7 + $0x4] sm:$0xf] %v196_v1  ;;  %v200_v3 = vld [vmem:[%s851_s6 + $0x18] sm:$0xf] }
  0x17   : > { %199 = vst [vmem:[%s173_s7 + $0x8] sm:$0xf] %v198_v2  ;;  %v202_v4 = vld [vmem:[%s851_s6 + $0x20] sm:$0xf]  ;;  %v204_v5 = vld [vmem:[%s851_s6 + $0x28] sm:$0xf] }
  0x18   : > { %201 = vst [vmem:[%s173_s7 + $0xc] sm:$0xf] %v200_v3  ;;  %203 = vst [vmem:[%s173_s7 + $0x10] sm:$0xf] %v202_v4  ;;  %v206_v6 = vld [vmem:[%s851_s6 + $0x30] sm:$0xf] }
  0x19   : > { %205 = vst [vmem:[%s173_s7 + $0x14] sm:$0xf] %v204_v5  ;;  %v208_v7 = vld [vmem:[%s851_s6 + $0x38] sm:$0xf]  ;;  %v210_v8 = vld [vmem:[%s851_s6 + $0x40] sm:$0xf] }
  0x1a   : > { %207 = vst [vmem:[%s173_s7 + $0x18] sm:$0xf] %v206_v6  ;;  %209 = vst [vmem:[%s173_s7 + $0x1c] sm:$0xf] %v208_v7  ;;  %v212_v9 = vld [vmem:[%s851_s6 + $0x48] sm:$0xf] }
  0x1b   : > { %211 = vst [vmem:[%s173_s7 + $0x20] sm:$0xf] %v210_v8  ;;  %v214_v10 = vld [vmem:[%s851_s6 + $0x50] sm:$0xf]  ;;  %v216_v11 = vld [vmem:[%s851_s6 + $0x58] sm:$0xf] }
  0x1c   : > { %213 = vst [vmem:[%s173_s7 + $0x24] sm:$0xf] %v212_v9  ;;  %215 = vst [vmem:[%s173_s7 + $0x28] sm:$0xf] %v214_v10  ;;  %v218_v12 = vld [vmem:[%s851_s6 + $0x60] sm:$0xf] }
  0x1d   : > { %217 = vst [vmem:[%s173_s7 + $0x2c] sm:$0xf] %v216_v11  ;;  %v220_v13 = vld [vmem:[%s851_s6 + $0x68] sm:$0xf]  ;;  %v222_v14 = vld [vmem:[%s851_s6 + $0x70] sm:$0xf] }
  0x1e   : > { %219 = vst [vmem:[%s173_s7 + $0x30] sm:$0xf] %v218_v12  ;;  %221 = vst [vmem:[%s173_s7 + $0x34] sm:$0xf] %v220_v13  ;;  %v224_v15 = vld [vmem:[%s851_s6 + $0x78] sm:$0xf] }
  0x1f   : > { %223 = vst [vmem:[%s173_s7 + $0x38] sm:$0xf] %v222_v14  ;;  %225 = vst [vmem:[%s173_s7 + $0x3c] sm:$0xf] %v224_v15 }
  0x20 PF: > { %p599_p7 = scmp.ge.s32.totalorder %s766_s18, 1  ;;  %p286_p8 = scmp.lt.s32.totalorder %s766_s18, 19 }
  0x22   : > { %p287_p9 = pnand %p599_p7, %p286_p8 }
  0x23   : > { %s293_s8 = sand.u32 (!%p287_p9), 1, %s742_s12   ;;  %p329_p10 = scmp.lt.s32.totalorder (!%p287_p9), %s750_s14, 8 }
  0x24   : > { %290 = sbr.rel (%p287_p9) target bundleno = 292 (0x124), region = 69  ;;  %s600_s9 = sshll.u32 (!%p287_p9), %s293_s8, 6 }
  0x25   : > { %p336_p11 = scmp.lt.s32.totalorder (!%p287_p9), %s754_s15, 1  ;;  %s295_s4 = scalar_lea.vmem (!%p287_p9), [#allocation3], %s600_s9 }
  0x26   : > { %p603_p12 = scmp.ne.s32.totalorder (!%p287_p9), %s750_s14, 0 }
  0x29   : > { %s330_s10 = scalar_select %p329_p10, %s750_s14, 8 }
  0x2a   : > { %s940_s15 = smov (!%p336_p11, %s754_s15), 1  ;;  %351 = sbr.rel (%p603_p12) target bundleno = 49 (0x31), region = 77 }
  0x2b   : > { %s601_s11 = sshll.u32 %s330_s10, 2  ;;  %s338_s27 = scalar_lea.vmem %s925_s2, %s940_s15 }
  0x2c   : > { %s881_s23 = scalar_lea.vmem %s923_s0, %s601_s11  ;;  %s602_s28 = sshll.u32 %s940_s15, 2 }
  0x2d   : > { %s891_s30 = scalar_lea.vmem %s926_s3, %s602_s28 }
  0x2f   : > { %v768_v16 = vmov 0.0  }
  0x30   : > { %352 = vst [vmem:[#allocation2] sm:$0xff] %v768_v16 }
  0x31 PF: > { %v704_v17 = vld [vmem:[%s295_s4 + $0x38] sm:$0xff]   ;;  %v769_v18 = vmov 0.0   ;;  %v705_v19 = vld [vmem:[%s295_s4 + $0x30] sm:$0xff]   ;;  %vm770_vm0 = vmmov 0   ;;  %v706_v20 = vld [vmem:[%s295_s4 + $0x28] sm:$0xff]   ;;  %p612_p13 = scmp.ne.s32.totalorder %s750_s14, 8 }
  0x32   : > { %625 = vmatprep.subr.bf16.mxu0 %v769_v18  ;;  %641 = vmatprep.mubr.msk.bf16.mxu0 %vm770_vm0, %v769_v18  ;;  %v707_v21 = vld [vmem:[%s295_s4 + $0x20] sm:$0xff]   ;;  %v708_v22 = vld [vmem:[%s295_s4 + $0x18] sm:$0xff]   ;;  %v709_v23 = vld [vmem:[%s295_s4 + $0x10] sm:$0xff]  }
  0x33   : > { %626 = vmatpush3.bf16.msra.mxu0 %v704_v17  ;;  %v710_v24 = vld [vmem:[%s295_s4 + $0x8] sm:$0xff]   ;;  %v711_v25 = vld [vmem:[%s295_s4] sm:$0xff]   ;;  %v354_v26 = vld [vmem:[%s881_s23] sm:$0xf] }
  0x34   : > { %627 = vmatprep.subr.bf16.mxu0 %v769_v18 }
  0x37   : > { %628 = vmatpush3.bf16.msra.mxu0 %v705_v19  ;;  %v353_v27 = vld [vmem:[#allocation2] sm:$0xff] }
  0x38   : > { %629 = vmatprep.subr.bf16.mxu0 %v769_v18 }
  0x3b   : > { %630 = vmatpush3.bf16.msra.mxu0 %v706_v20 }
  0x3c   : > { %631 = vmatprep.subr.bf16.mxu0 %v769_v18 }
  0x3f   : > { %632 = vmatpush3.bf16.msra.mxu0 %v707_v21 }
  0x40   : > { %633 = vmatprep.subr.bf16.mxu0 %v769_v18 }
  0x43   : > { %634 = vmatpush3.bf16.msra.mxu0 %v708_v22 }
  0x44   : > { %635 = vmatprep.subr.bf16.mxu0 %v769_v18 }
  0x47   : > { %636 = vmatpush3.bf16.msra.mxu0 %v709_v23 }
  0x48   : > { %637 = vmatprep.subr.bf16.mxu0 %v769_v18 }
  0x4b   : > { %638 = vmatpush3.bf16.msra.mxu0 %v710_v24 }
  0x4c   : > { %639 = vmatprep.subr.bf16.mxu0 %v769_v18 }
  0x4f   : > { %640 = vmatpush3.bf16.msra.mxu0 %v711_v25 }
  0x52   : > { %642 = vmatmul.mubr.bf16.vlgmr.msra.gmra.mxu0 %v354_v26 }
 0x112   : > { %v453_v28 = vpop.f32.mrf.mxu0 }
 0x113   : > { %v459_v29 = vadd.f32 %v453_v28, %v353_v27 }
 0x114   : > { %v643_v30 = vpop.f32.mrf.mxu0  ;;  %464 = sbr.rel (%p612_p13) target bundleno = 292 (0x124), region = 81 }
 0x115   : > { %460 = vst [vmem:[#allocation2] sm:$0xff] %v459_v29 }
 0x116   : > { %v456_v31 = vpop.f32.mrf.mxu0 }
 0x118   : > { %v644_v32 = vpop.f32.mrf.mxu0 }
 0x119   : > { %v613_v34 = vld [vmem:[%s338_s27] ss:$0 sm:$0xff] }
 0x11c   : > { %v465_v33 = vld [vmem:[#allocation2] sm:$0xff] }
 0x11d   : > { %v473_v35 = vadd.f32 %v613_v34, %v465_v33 }
 0x11f   : > { %v474_v36 = vmax.f32 %v473_v35, 0.0 }
 0x121   : > { %v475_v37 = vpack.c.bf16 %v474_v36, %v474_v36 }
 0x123   : > { %476 = vst [vmem:[%s891_s30] sm:$0xf] %v475_v37 }
 0x124 PF: > { %s13_s18 = sadd.s32 1, %s766_s18   ;;  %s927_s12 = smov %s746_s13 }
 0x125   : > { %p10_p0 = scmp.ge.s32.totalorder %s13_s18, 20   ;;  %s928_s13 = smov %s842_s25 }
 0x126   : > { %s929_s14 = smov %s758_s16  ;;  %s930_s15 = smov %s762_s17 }
 0x127   : > { %s931_s16 = smov %s934_s19  ;;  %s932_s17 = smov %s938_s20 }
 0x128   :  { %12 = sbr.rel (!%p10_p0) target bundleno = 4 (0x4), region = 122 }

// kernel: resnet_forward.24
= control target key start
LH: loop header
LB: loop body
LE: loop exit
PB: predicated region body
PF: predicated region fallthrough
CT: control target
= control target key end

     0   :  { %s1034_s15 = smov 0   ;;  %s1036_s16 = smov 0   ;;  %s1240_s0 = inlined_call_operand.vmem [shape: bf16[9,8,256], index: 0, kind: input, shape index: {}]   ;;  %s1241_s1 = inlined_call_operand.vmem [shape: bf16[9,256,256], index: 1, kind: input, shape index: {}]   ;;  %s1242_s2 = inlined_call_operand.vmem [shape: f32[1,256], index: 2, kind: input, shape index: {}]   ;;  %s1243_s3 = inlined_call_operand.vmem [shape: bf16[8,256], index: 3, kind: input, shape index: {}]   ;;  %s1244_s4 = inlined_call_operand.vmem [shape: bf16[8,256], index: 4, kind: output, shape index: {}]  }
   0x1   :  { %s1038_s17 = smov 0   ;;  %s1040_s18 = smov 0  }
   0x2   :  { %s1042_s19 = smov 0   ;;  %s1044_s20 = smov 0  }
   0x3   :  { %s1046_s21 = smov 0  }
   0x4 LB: > { %s26_s22 = sadd.s32 1, %s998_s19  ;;  %s29_s23 = sadd.s32 1, %s1002_s20  ;;  %s1006_s21 = sphi %s1046_s21, %s14_s21   ;;  %s1002_s20 = sphi %s1044_s20, %s1250_s20   ;;  %s998_s19 = sphi %s1042_s19, %s1249_s19   ;;  %s994_s18 = sphi %s1040_s18, %s1248_s18   ;;  %s990_s17 = sphi %s1038_s17, %s1247_s17   ;;  %s986_s16 = sphi %s1036_s16, %s1246_s16   ;;  %s982_s15 = sphi %s1034_s15, %s1245_s15  }
   0x5   : > { %p27_p0 = scmp.ge.s32.totalorder %s26_s22, 9  ;;  %p77_p1 = scmp.ne.s32.totalorder %s986_s16, %s982_s15 }
   0x6   : > { %p78_p2 = scmp.eq.s32.totalorder %s1006_s21, 0  ;;  %s70_s27 = sadd.s32 1, %s986_s16 }
   0x7   : > { %s1252_s22 = smov (%p27_p0, %s26_s22), 0  ;;  %s1254_s23 = smov (!%p27_p0, %s29_s23), %s1002_s20 }
   0x8   : > { %p79_p3 = por %p78_p2, %p77_p1  ;;  %p31_p4 = scmp.ge.s32.totalorder %s1254_s23, 2 }
   0x9   : > { %s65_s24 = ssub.s32 %s998_s19, %s1252_s22  ;;  %p821_p6 = scmp.ge.s32.totalorder %s1006_s21, 18 }
   0xa   : > { %s1256_s23 = smov (%p31_p4, %s1254_s23), 0 }
   0xb   : > { %s66_s25 = ssub.s32 %s1002_s20, %s1256_s23  ;;  %185 = sbr.rel (%p821_p6) target bundleno = 43 (0x2b), region = 16 }
   0xc   : > { %s67_s26 = sor.u32 %s66_s25, %s65_s24 }
   0xd   : > { %p68_p5 = scmp.eq.s32.totalorder %s67_s26, 0 }
   0xf   : > { %s1085_s28 = scalar_select %p68_p5, %s986_s16, %s70_s27  }
  0x10   : > { %200 = sbr.rel (!%p79_p3) target bundleno = 43 (0x2b), region = 24  ;;  %s202_s29 = sand.u32 (%p79_p3), 1, %s986_s16  }
  0x11   : > { %s823_s30 = sshll.u32 (%p79_p3), %s998_s19, 6  ;;  %s822_s5 = sshll.u32 (%p79_p3), %s202_s29, 7 }
  0x12   : > { %s206_s6 = sadd.s32 (%p79_p3), %s1002_s20, %s823_s30  ;;  %s1099_s11 = scalar_lea.vmem (%p79_p3), [#allocation3], %s822_s5 }
  0x13   : > { %s824_s7 = sshll.u32 (%p79_p3), %s206_s6, 2 }
  0x14   : > { %s1094_s10 = scalar_lea.vmem (%p79_p3), %s1241_s1, %s824_s7 }
  0x15   : > { %v225_v0 = vld [vmem:[%s1094_s10] sm:$0xf]  ;;  %v227_v1 = vld [vmem:[%s1094_s10 + $0x8] sm:$0xf]  ;;  %v229_v2 = vld [vmem:[%s1094_s10 + $0x10] sm:$0xf] }
  0x16   : > { %226 = vst [vmem:[%s1099_s11] sm:$0xf] %v225_v0  ;;  %228 = vst [vmem:[%s1099_s11 + $0x4] sm:$0xf] %v227_v1  ;;  %v231_v3 = vld [vmem:[%s1094_s10 + $0x18] sm:$0xf] }
  0x17   : > { %230 = vst [vmem:[%s1099_s11 + $0x8] sm:$0xf] %v229_v2  ;;  %v233_v4 = vld [vmem:[%s1094_s10 + $0x20] sm:$0xf]  ;;  %v235_v5 = vld [vmem:[%s1094_s10 + $0x28] sm:$0xf] }
  0x18   : > { %232 = vst [vmem:[%s1099_s11 + $0xc] sm:$0xf] %v231_v3  ;;  %234 = vst [vmem:[%s1099_s11 + $0x10] sm:$0xf] %v233_v4  ;;  %v237_v6 = vld [vmem:[%s1094_s10 + $0x30] sm:$0xf] }
  0x19   : > { %236 = vst [vmem:[%s1099_s11 + $0x14] sm:$0xf] %v235_v5  ;;  %v239_v7 = vld [vmem:[%s1094_s10 + $0x38] sm:$0xf]  ;;  %v241_v8 = vld [vmem:[%s1094_s10 + $0x40] sm:$0xf] }
  0x1a   : > { %238 = vst [vmem:[%s1099_s11 + $0x18] sm:$0xf] %v237_v6  ;;  %240 = vst [vmem:[%s1099_s11 + $0x1c] sm:$0xf] %v239_v7  ;;  %v243_v9 = vld [vmem:[%s1094_s10 + $0x48] sm:$0xf] }
  0x1b   : > { %242 = vst [vmem:[%s1099_s11 + $0x20] sm:$0xf] %v241_v8  ;;  %v245_v10 = vld [vmem:[%s1094_s10 + $0x50] sm:$0xf]  ;;  %v247_v11 = vld [vmem:[%s1094_s10 + $0x58] sm:$0xf] }
  0x1c   : > { %244 = vst [vmem:[%s1099_s11 + $0x24] sm:$0xf] %v243_v9  ;;  %246 = vst [vmem:[%s1099_s11 + $0x28] sm:$0xf] %v245_v10  ;;  %v249_v12 = vld [vmem:[%s1094_s10 + $0x60] sm:$0xf] }
  0x1d   : > { %248 = vst [vmem:[%s1099_s11 + $0x2c] sm:$0xf] %v247_v11  ;;  %v251_v13 = vld [vmem:[%s1094_s10 + $0x68] sm:$0xf]  ;;  %v253_v14 = vld [vmem:[%s1094_s10 + $0x70] sm:$0xf] }
  0x1e   : > { %250 = vst [vmem:[%s1099_s11 + $0x30] sm:$0xf] %v249_v12  ;;  %252 = vst [vmem:[%s1099_s11 + $0x34] sm:$0xf] %v251_v13  ;;  %v255_v15 = vld [vmem:[%s1094_s10 + $0x78] sm:$0xf] }
  0x1f   : > { %254 = vst [vmem:[%s1099_s11 + $0x38] sm:$0xf] %v253_v14  ;;  %v257_v16 = vld [vmem:[%s1094_s10 + $0x80] sm:$0xf]  ;;  %v259_v17 = vld [vmem:[%s1094_s10 + $0x88] sm:$0xf] }
  0x20   : > { %256 = vst [vmem:[%s1099_s11 + $0x3c] sm:$0xf] %v255_v15  ;;  %258 = vst [vmem:[%s1099_s11 + $0x40] sm:$0xf] %v257_v16  ;;  %v261_v18 = vld [vmem:[%s1094_s10 + $0x90] sm:$0xf] }
  0x21   : > { %260 = vst [vmem:[%s1099_s11 + $0x44] sm:$0xf] %v259_v17  ;;  %v263_v19 = vld [vmem:[%s1094_s10 + $0x98] sm:$0xf]  ;;  %v265_v20 = vld [vmem:[%s1094_s10 + $0xa0] sm:$0xf] }
  0x22   : > { %262 = vst [vmem:[%s1099_s11 + $0x48] sm:$0xf] %v261_v18  ;;  %264 = vst [vmem:[%s1099_s11 + $0x4c] sm:$0xf] %v263_v19  ;;  %v267_v21 = vld [vmem:[%s1094_s10 + $0xa8] sm:$0xf] }
  0x23   : > { %266 = vst [vmem:[%s1099_s11 + $0x50] sm:$0xf] %v265_v20  ;;  %v269_v22 = vld [vmem:[%s1094_s10 + $0xb0] sm:$0xf]  ;;  %v271_v23 = vld [vmem:[%s1094_s10 + $0xb8] sm:$0xf] }
  0x24   : > { %268 = vst [vmem:[%s1099_s11 + $0x54] sm:$0xf] %v267_v21  ;;  %270 = vst [vmem:[%s1099_s11 + $0x58] sm:$0xf] %v269_v22  ;;  %v273_v24 = vld [vmem:[%s1094_s10 + $0xc0] sm:$0xf] }
  0x25   : > { %272 = vst [vmem:[%s1099_s11 + $0x5c] sm:$0xf] %v271_v23  ;;  %v275_v25 = vld [vmem:[%s1094_s10 + $0xc8] sm:$0xf]  ;;  %v277_v26 = vld [vmem:[%s1094_s10 + $0xd0] sm:$0xf] }
  0x26   : > { %274 = vst [vmem:[%s1099_s11 + $0x60] sm:$0xf] %v273_v24  ;;  %276 = vst [vmem:[%s1099_s11 + $0x64] sm:$0xf] %v275_v25  ;;  %v279_v27 = vld [vmem:[%s1094_s10 + $0xd8] sm:$0xf] }
  0x27   : > { %278 = vst [vmem:[%s1099_s11 + $0x68] sm:$0xf] %v277_v26  ;;  %v281_v28 = vld [vmem:[%s1094_s10 + $0xe0] sm:$0xf]  ;;  %v283_v29 = vld [vmem:[%s1094_s10 + $0xe8] sm:$0xf] }
  0x28   : > { %280 = vst [vmem:[%s1099_s11 + $0x6c] sm:$0xf] %v279_v27  ;;  %282 = vst [vmem:[%s1099_s11 + $0x70] sm:$0xf] %v281_v28  ;;  %v285_v30 = vld [vmem:[%s1094_s10 + $0xf0] sm:$0xf] }
  0x29   : > { %284 = vst [vmem:[%s1099_s11 + $0x74] sm:$0xf] %v283_v29  ;;  %v287_v31 = vld [vmem:[%s1094_s10 + $0xf8] sm:$0xf]  ;;  %286 = vst [vmem:[%s1099_s11 + $0x78] sm:$0xf] %v285_v30 }
  0x2a   : > { %288 = vst [vmem:[%s1099_s11 + $0x7c] sm:$0xf] %v287_v31 }
  0x2b PF: > { %p825_p7 = scmp.ge.s32.totalorder %s1006_s21, 1  ;;  %p392_p8 = scmp.lt.s32.totalorder %s1006_s21, 19 }
  0x2d   : > { %p393_p9 = pnand %p825_p7, %p392_p8 }
  0x2e   : > { %s399_s12 = sand.u32 (!%p393_p9), 1, %s982_s15   ;;  %p447_p10 = scmp.lt.s32.totalorder (!%p393_p9), %s990_s17, 8 }
  0x2f   : > { %396 = sbr.rel (%p393_p9) target bundleno = 309 (0x135), region = 73  ;;  %s826_s13 = sshll.u32 (!%p393_p9), %s399_s12, 7 }
  0x30   : > { %p456_p11 = scmp.lt.s32.totalorder (!%p393_p9), %s994_s18, 1  ;;  %s1191_s12 = scalar_lea.vmem (!%p393_p9), [#allocation3], %s826_s13 }
  0x31   : > { %p831_p12 = scmp.ne.s32.totalorder (!%p393_p9), %s990_s17, 0 }
  0x34   : > { %s448_s14 = scalar_select %p447_p10, %s990_s17, 8 }
  0x35   : > { %s1258_s18 = smov (!%p456_p11, %s994_s18), 1  ;;  %479 = sbr.rel (%p831_p12) target bundleno = 60 (0x3c), region = 81 }
  0x36   : > { %s854_s24 = sshll.u32 %s448_s14, 3  ;;  %s458_s5 = scalar_lea.vmem %s1242_s2, %s1258_s18 }
  0x37   : > { %s1174_s27 = scalar_lea.vmem %s1240_s0, %s854_s24  ;;  %s829_s6 = sshll.u32 %s1258_s18, 2 }
  0x38   : > { %s1184_s8 = scalar_lea.vmem %s1243_s3, %s829_s6  ;;  %s1189_s11 = scalar_lea.vmem %s1244_s4, %s829_s6 }
  0x3a   : > { %v1008_v32 = vmov 0.0  }
  0x3b   : > { %480 = vst [vmem:[#allocation2] sm:$0xff] %v1008_v32 }
  0x3c PF: > { %v934_v33 = vld [vmem:[%s1191_s12 + $0x78] sm:$0xff]   ;;  %v936_v35 = vld [vmem:[%s1191_s12 + $0x70] sm:$0xff]   ;;  %v938_v37 = vld [vmem:[%s1191_s12 + $0x68] sm:$0xff]   ;;  %p850_p13 = scmp.ne.s32.totalorder %s990_s17, 8 }
  0x3d   : > { %v935_v34 = vld [vmem:[%s1191_s12 + $0x38] sm:$0xff]   ;;  %855 = vmatprep.subr.bf16.mxu0 %v934_v33  ;;  %v937_v36 = vld [vmem:[%s1191_s12 + $0x30] sm:$0xff]   ;;  %v939_v38 = vld [vmem:[%s1191_s12 + $0x28] sm:$0xff]  }
  0x3e   : > { %856 = vmatpush3.bf16.msra.mxu0 %v935_v34  ;;  %v940_v39 = vld [vmem:[%s1191_s12 + $0x60] sm:$0xff]   ;;  %v942_v41 = vld [vmem:[%s1191_s12 + $0x58] sm:$0xff]   ;;  %v944_v43 = vld [vmem:[%s1191_s12 + $0x50] sm:$0xff]  }
  0x3f   : > { %857 = vmatprep.subr.bf16.mxu0 %v936_v35  ;;  %v941_v40 = vld [vmem:[%s1191_s12 + $0x20] sm:$0xff]   ;;  %v943_v42 = vld [vmem:[%s1191_s12 + $0x18] sm:$0xff]   ;;  %v945_v46 = vld [vmem:[%s1191_s12 + $0x10] sm:$0xff]  }
  0x40   : > { %v482_v44 = vld [vmem:[%s1174_s27] sm:$0xff]  ;;  %v946_v47 = vld [vmem:[%s1191_s12 + $0x48] sm:$0xff]   ;;  %v948_v49 = vld [vmem:[%s1191_s12 + $0x40] sm:$0xff]  }
  0x41   : > { %v833_v45 = vcombine.high %v482_v44, %v482_v44  ;;  %v947_v48 = vld [vmem:[%s1191_s12 + $0x8] sm:$0xff]   ;;  %v949_v50 = vld [vmem:[%s1191_s12] sm:$0xff]   ;;  %v832_v51 = vcombine.low %v482_v44, %v482_v44 }
  0x42   : > { %858 = vmatpush3.bf16.msra.mxu0 %v937_v36  ;;  %v481_v53 = vld [vmem:[#allocation2] sm:$0xff] }
  0x43   : > { %859 = vmatprep.subr.bf16.mxu0 %v938_v37  ;;  %650 = vmatprep.mubr.bf16.mxu0 %v833_v45 }
  0x46   : > { %860 = vmatpush3.bf16.msra.mxu0 %v939_v38 }
  0x47   : > { %861 = vmatprep.subr.bf16.mxu0 %v940_v39 }
  0x4a   : > { %862 = vmatpush3.bf16.msra.mxu0 %v941_v40 }
  0x4b   : > { %863 = vmatprep.subr.bf16.mxu0 %v942_v41 }
  0x4e   : > { %864 = vmatpush3.bf16.msra.mxu0 %v943_v42 }
  0x4f   : > { %865 = vmatprep.subr.bf16.mxu0 %v944_v43 }
  0x52   : > { %866 = vmatpush3.bf16.msra.mxu0 %v945_v46 }
  0x53   : > { %867 = vmatprep.subr.bf16.mxu0 %v946_v47 }
  0x56   : > { %868 = vmatpush3.bf16.msra.mxu0 %v947_v48 }
  0x57   : > { %869 = vmatprep.subr.bf16.mxu0 %v948_v49 }
  0x5a   : > { %870 = vmatpush3.bf16.msra.mxu0 %v949_v50 }
  0x5d   : > { %651 = vmatmul.mubr.bf16.vlgmr.msra.gmra.mxu0 %v832_v51 }
 0x11d   : > { %v871_v52 = vpop.f32.mrf.mxu0 }
 0x11f   : > { %v872_v54 = vpop.f32.mrf.mxu0 }
 0x120   : > { %v873_v55 = vadd.f32 %v872_v54, %v871_v52  ;;  %663 = sbr.rel (%p850_p13) target bundleno = 309 (0x135), region = 85 }
 0x121   : > { %v874_v56 = vpop.f32.mrf.mxu0 }
 0x122   : > { %v658_v57 = vadd.f32 %v873_v55, %v481_v53 }
 0x123   : > { %v875_v58 = vpop.f32.mrf.mxu0 }
 0x124   : > { %659 = vst [vmem:[#allocation2] sm:$0xff] %v658_v57 }
 0x125   : > { %v851_v60 = vld [vmem:[%s458_s5] ss:$0 sm:$0xff] }
 0x126   : > { %v673_v61 = vld [vmem:[%s1184_s8] sm:$0xf] }
 0x127   : > { %v674_v63 = vunpack.c.l.bf16 %v673_v61 }
 0x12b   : > { %v664_v59 = vld [vmem:[#allocation2] sm:$0xff] }
 0x12c   : > { %v672_v62 = vadd.f32 %v851_v60, %v664_v59 }
 0x12e   : > { %v675_v0 = vadd.f32 %v674_v63, %v672_v62 }
 0x130   : > { %v676_v1 = vmax.f32 %v675_v0, 0.0 }
 0x132   : > { %v677_v2 = vpack.c.bf16 %v676_v1, %v676_v1 }
 0x134   : > { %678 = vst [vmem:[%s1189_s11] sm:$0xf] %v677_v2 }
 0x135 PF: > { %s14_s21 = sadd.s32 1, %s1006_s21   ;;  %s1245_s15 = smov %s986_s16 }
 0x136   : > { %p11_p0 = scmp.ge.s32.totalorder %s14_s21, 20   ;;  %s1246_s16 = smov %s1085_s28 }
 0x137   : > { %s1247_s17 = smov %s998_s19  ;;  %s1248_s18 = smov %s1002_s20 }
 0x138   : > { %s1249_s19 = smov %s1252_s22  ;;  %s1250_s20 = smov %s1256_s23 }
 0x139   :  { %13 = sbr.rel (!%p11_p0) target bundleno = 4 (0x4), region = 129 }

// kernel: resnet_forward.22
= control target key start
LH: loop header
LB: loop body
LE: loop exit
PB: predicated region body
PF: predicated region fallthrough
CT: control target
= control target key end

     0   :  { %s753_s12 = smov 0   ;;  %s755_s13 = smov 0   ;;  %s843_s0 = inlined_call_operand.vmem [shape: bf16[1,8,128], index: 0, kind: input, shape index: {}]   ;;  %s844_s1 = inlined_call_operand.vmem [shape: bf16[1,128,256], index: 1, kind: input, shape index: {}]   ;;  %s845_s2 = inlined_call_operand.vmem [shape: f32[1,256], index: 2, kind: input, shape index: {}]   ;;  %s846_s3 = inlined_call_operand.vmem [shape: bf16[8,256], index: 3, kind: output, shape index: {}]  }
   0x1   :  { %s757_s14 = smov 0   ;;  %s759_s15 = smov 0  }
   0x2   :  { %s761_s16 = smov 0  }
   0x3 LB: > { %s28_s17 = sadd.s32 1, %s725_s15  ;;  %p76_p1 = scmp.ne.s32.totalorder %s717_s13, %s713_s12  ;;  %s729_s16 = sphi %s761_s16, %s13_s16   ;;  %s725_s15 = sphi %s759_s15, %s850_s15   ;;  %s721_s14 = sphi %s757_s14, %s849_s14   ;;  %s717_s13 = sphi %s755_s13, %s848_s13   ;;  %s713_s12 = sphi %s753_s12, %s847_s12  }
   0x4   : > { %p30_p0 = scmp.ge.s32.totalorder %s28_s17, 2  ;;  %p77_p2 = scmp.eq.s32.totalorder %s729_s16, 0 }
   0x5   : > { %s69_s19 = sadd.s32 1, %s717_s13  ;;  %p595_p5 = scmp.ge.s32.totalorder %s729_s16, 2 }
   0x6   : > { %s852_s17 = smov (%p30_p0, %s28_s17), 0  ;;  %p78_p3 = por %p77_p2, %p76_p1 }
   0x7   : > { %s65_s18 = ssub.s32 %s725_s15, %s852_s17  ;;  %166 = sbr.rel (%p595_p5) target bundleno = 26 (0x1a), region = 20 }
   0x8   : > { %p67_p4 = scmp.eq.s32.totalorder %s65_s18, 0 }
   0xa   : > { %s788_s20 = scalar_select %p67_p4, %s717_s13, %s69_s19  }
   0xc   : > { %169 = sbr.rel (!%p78_p3) target bundleno = 26 (0x1a), region = 24  ;;  %s171_s21 = sand.u32 (%p78_p3), 1, %s717_s13  }
   0xd   : > { %s597_s22 = sshll.u32 (%p78_p3), %s725_s15, 2  ;;  %s596_s23 = sshll.u32 (%p78_p3), %s171_s21, 6 }
   0xe   : > { %s796_s26 = scalar_lea.vmem (%p78_p3), %s844_s1, %s597_s22  ;;  %s173_s27 = scalar_lea.vmem (%p78_p3), [#allocation3], %s596_s23 }
   0xf   : > { %v194_v0 = vld [vmem:[%s796_s26] sm:$0xf] (%p78_p3)  ;;  %v196_v1 = vld [vmem:[%s796_s26 + $0x8] sm:$0xf] (%p78_p3)  ;;  %v198_v2 = vld [vmem:[%s796_s26 + $0x10] sm:$0xf] (%p78_p3) }
  0x10   : > { %195 = vst [vmem:[%s173_s27] sm:$0xf] (%p78_p3), %v194_v0  ;;  %197 = vst [vmem:[%s173_s27 + $0x4] sm:$0xf] (%p78_p3), %v196_v1  ;;  %v200_v3 = vld [vmem:[%s796_s26 + $0x18] sm:$0xf] (%p78_p3) }
  0x11   : > { %v202_v4 = vld [vmem:[%s796_s26 + $0x20] sm:$0xf]  ;;  %199 = vst [vmem:[%s173_s27 + $0x8] sm:$0xf] %v198_v2  ;;  %201 = vst [vmem:[%s173_s27 + $0xc] sm:$0xf] %v200_v3 }
  0x12   : > { %203 = vst [vmem:[%s173_s27 + $0x10] sm:$0xf] %v202_v4  ;;  %v204_v5 = vld [vmem:[%s796_s26 + $0x28] sm:$0xf]  ;;  %v206_v6 = vld [vmem:[%s796_s26 + $0x30] sm:$0xf] }
  0x13   : > { %v208_v7 = vld [vmem:[%s796_s26 + $0x38] sm:$0xf]  ;;  %205 = vst [vmem:[%s173_s27 + $0x14] sm:$0xf] %v204_v5  ;;  %207 = vst [vmem:[%s173_s27 + $0x18] sm:$0xf] %v206_v6 }
  0x14   : > { %209 = vst [vmem:[%s173_s27 + $0x1c] sm:$0xf] %v208_v7  ;;  %v210_v8 = vld [vmem:[%s796_s26 + $0x40] sm:$0xf]  ;;  %v212_v9 = vld [vmem:[%s796_s26 + $0x48] sm:$0xf] }
  0x15   : > { %v214_v10 = vld [vmem:[%s796_s26 + $0x50] sm:$0xf]  ;;  %211 = vst [vmem:[%s173_s27 + $0x20] sm:$0xf] %v210_v8  ;;  %213 = vst [vmem:[%s173_s27 + $0x24] sm:$0xf] %v212_v9 }
  0x16   : > { %215 = vst [vmem:[%s173_s27 + $0x28] sm:$0xf] %v214_v10  ;;  %v216_v11 = vld [vmem:[%s796_s26 + $0x58] sm:$0xf]  ;;  %v218_v12 = vld [vmem:[%s796_s26 + $0x60] sm:$0xf] }
  0x17   : > { %v220_v13 = vld [vmem:[%s796_s26 + $0x68] sm:$0xf]  ;;  %217 = vst [vmem:[%s173_s27 + $0x2c] sm:$0xf] %v216_v11  ;;  %219 = vst [vmem:[%s173_s27 + $0x30] sm:$0xf] %v218_v12 }
  0x18   : > { %221 = vst [vmem:[%s173_s27 + $0x34] sm:$0xf] %v220_v13  ;;  %v222_v14 = vld [vmem:[%s796_s26 + $0x70] sm:$0xf]  ;;  %v224_v15 = vld [vmem:[%s796_s26 + $0x78] sm:$0xf] }
  0x19   : > { %223 = vst [vmem:[%s173_s27 + $0x38] sm:$0xf] %v222_v14  ;;  %225 = vst [vmem:[%s173_s27 + $0x3c] sm:$0xf] %v224_v15 }
  0x1a PF: > { %p598_p6 = scmp.ge.s32.totalorder %s729_s16, 1  ;;  %p286_p7 = scmp.lt.s32.totalorder %s729_s16, 3 }
  0x1c   : > { %p287_p8 = pnand %p598_p6, %p286_p7 }
  0x1d   : > { %s293_s28 = sand.u32 (!%p287_p8), 1, %s713_s12   ;;  %p336_p9 = scmp.lt.s32.totalorder (!%p287_p8), %s721_s14, 1 }
  0x1e   : > { %290 = sbr.rel (%p287_p8) target bundleno = 267 (0x10b), region = 69  ;;  %s599_s29 = sshll.u32 (!%p287_p8), %s293_s28, 6 }
  0x1f   : > { %s295_s30 = scalar_lea.vmem (!%p287_p8), [#allocation3], %s599_s29 }
  0x23   : > { %v731_v16 = vmov 0.0   ;;  %vm732_vm0 = vmmov 0   ;;  %v683_v17 = vld [vmem:[%s295_s30 + $0x38] sm:$0xff]   ;;  %v684_v18 = vld [vmem:[%s295_s30 + $0x30] sm:$0xff]   ;;  %v685_v19 = vld [vmem:[%s295_s30 + $0x28] sm:$0xff]   ;;  %s854_s14 = smov (!%p336_p9, %s721_s14), 1 }
  0x24   : > { %621 = vmatprep.subr.bf16.mxu0 %v731_v16  ;;  %637 = vmatprep.mubr.msk.bf16.mxu0 %vm732_vm0, %v731_v16  ;;  %v686_v20 = vld [vmem:[%s295_s30 + $0x20] sm:$0xff]   ;;  %v687_v21 = vld [vmem:[%s295_s30 + $0x18] sm:$0xff]   ;;  %v688_v22 = vld [vmem:[%s295_s30 + $0x10] sm:$0xff]   ;;  %s338_s8 = scalar_lea.vmem %s845_s2, %s854_s14  ;;  %s600_s9 = sshll.u32 %s854_s14, 2 }
  0x25   : > { %622 = vmatpush3.bf16.msra.mxu0 %v683_v17  ;;  %v689_v23 = vld [vmem:[%s295_s30 + $0x8] sm:$0xff]   ;;  %v690_v24 = vld [vmem:[%s295_s30] sm:$0xff]   ;;  %s346_s12 = scalar_lea.vmem %s846_s3, %s600_s9 }
  0x26   : > { %623 = vmatprep.subr.bf16.mxu0 %v731_v16  ;;  %v354_v25 = vld [vmem:[%s843_s0] sm:$0xf] }
  0x27   : > { %v609_v26 = vld [vmem:[%s338_s8] ss:$0 sm:$0xff] }
  0x29   : > { %624 = vmatpush3.bf16.msra.mxu0 %v684_v18 }
  0x2a   : > { %625 = vmatprep.subr.bf16.mxu0 %v731_v16 }
  0x2d   : > { %626 = vmatpush3.bf16.msra.mxu0 %v685_v19 }
  0x2e   : > { %627 = vmatprep.subr.bf16.mxu0 %v731_v16 }
  0x31   : > { %628 = vmatpush3.bf16.msra.mxu0 %v686_v20 }
  0x32   : > { %629 = vmatprep.subr.bf16.mxu0 %v731_v16 }
  0x35   : > { %630 = vmatpush3.bf16.msra.mxu0 %v687_v21 }
  0x36   : > { %631 = vmatprep.subr.bf16.mxu0 %v731_v16 }
  0x39   : > { %632 = vmatpush3.bf16.msra.mxu0 %v688_v22 }
  0x3a   : > { %633 = vmatprep.subr.bf16.mxu0 %v731_v16 }
  0x3d   : > { %634 = vmatpush3.bf16.msra.mxu0 %v689_v23 }
  0x3e   : > { %635 = vmatprep.subr.bf16.mxu0 %v731_v16 }
  0x41   : > { %636 = vmatpush3.bf16.msra.mxu0 %v690_v24 }
  0x44   : > { %638 = vmatmul.mubr.bf16.vlgmr.msra.gmra.mxu0 %v354_v25 }
 0x104   : > { %v453_v27 = vpop.f32.mrf.mxu0 }
 0x105   : > { %v472_v28 = vadd.f32 %v609_v26, %v453_v27 }
 0x106   : > { %v639_v29 = vpop.f32.mrf.mxu0 }
 0x107   : > { %v473_v30 = vpack.c.bf16 %v472_v28, %v472_v28 }
 0x108   : > { %v456_v31 = vpop.f32.mrf.mxu0 }
 0x109   : > { %474 = vst [vmem:[%s346_s12] sm:$0xf] %v473_v30 }
 0x10a   : > { %v640_v32 = vpop.f32.mrf.mxu0 }
 0x10b PF: > { %s13_s16 = sadd.s32 1, %s729_s16   ;;  %s847_s12 = smov %s717_s13 }
 0x10c   : > { %p10_p10 = scmp.ge.s32.totalorder %s13_s16, 4   ;;  %s848_s13 = smov %s788_s20 }
 0x10d   : > { %s849_s14 = smov %s725_s15  ;;  %s850_s15 = smov %s852_s17 }
 0x10e   :  { %12 = sbr.rel (!%p10_p10) target bundleno = 3 (0x3), region = 122 }

// kernel: resnet_forward.28
= control target key start
LH: loop header
LB: loop body
LE: loop exit
PB: predicated region body
PF: predicated region fallthrough
CT: control target
= control target key end

     0   :  { %s1006_s15 = smov 0   ;;  %s1008_s16 = smov 0   ;;  %s1240_s0 = inlined_call_operand.vmem [shape: bf16[9,2,512], index: 0, kind: input, shape index: {}, may-alias: {0,4}]   ;;  %s1241_s1 = inlined_call_operand.vmem [shape: bf16[9,2,256], index: 1, kind: input, shape index: {}]   ;;  %s1242_s2 = inlined_call_operand.vmem [shape: bf16[9,256,512], index: 2, kind: input, shape index: {}]   ;;  %s1243_s3 = inlined_call_operand.vmem [shape: f32[1,512], index: 3, kind: input, shape index: {}]   ;;  %s1244_s4 = inlined_call_operand.vmem [shape: bf16[9,2,512], index: 4, kind: output, shape index: {}, may-alias: {0,4}]  }
   0x1   :  { %s1010_s17 = smov 0   ;;  %s1012_s18 = smov 0  }
   0x2   :  { %s1014_s0 = smov 0   ;;  %s1016_s19 = smov 0  }
   0x3   :  { %s1018_s20 = smov 0   ;;  %s1020_s21 = smov 0  }
   0x4   :  { %s1022_s22 = smov 0  }
   0x5 LB: > { %s27_s23 = sadd.s32 1, %s969_s20  ;;  %s30_s24 = sadd.s32 1, %s973_s21  ;;  %s977_s22 = sphi %s1022_s22, %s15_s22   ;;  %s973_s21 = sphi %s1020_s21, %s1254_s21   ;;  %s969_s20 = sphi %s1018_s20, %s1253_s20   ;;  %s965_s19 = sphi %s1016_s19, %s1252_s19   ;;  %s961_s0 = sphi %s1014_s0, %s1251_s0   ;;  %s957_s18 = sphi %s1012_s18, %s1250_s18   ;;  %s953_s17 = sphi %s1010_s17, %s1249_s17   ;;  %s949_s16 = sphi %s1008_s16, %s1248_s16   ;;  %s945_s15 = sphi %s1006_s15, %s1247_s15  }
   0x6   : > { %p28_p0 = scmp.ge.s32.totalorder %s27_s23, 9  ;;  %p78_p1 = scmp.ne.s32.totalorder %s957_s18, %s953_s17 }
   0x7   : > { %s762_s25 = sadd.s32 4294967295, %s977_s22   ;;  %p79_p2 = scmp.eq.s32.totalorder %s977_s22, 0 }
   0x8   : > { %s1256_s23 = smov (%p28_p0, %s27_s23), 0  ;;  %s1258_s24 = smov (!%p28_p0, %s30_s24), %s973_s21 }
   0x9   : > { %p32_p3 = scmp.ge.s32.totalorder %s1258_s24, 4  ;;  %s66_s26 = ssub.s32 %s969_s20, %s1256_s23 }
   0xa   : > { %p1062_p4 = por %p79_p2, %p78_p1  ;;  %p135_p5 = scmp.ne.s32.totalorder %s949_s16, %s945_s15 }
   0xb   : > { %s1260_s24 = smov (%p32_p3, %s1258_s24), 0  ;;  %s71_s28 = sadd.s32 1, %s957_s18 }
   0xc   : > { %p136_p6 = scmp.eq.s32.totalorder %s762_s25, 35  ;;  %s67_s29 = ssub.s32 %s973_s21, %s1260_s24 }
   0xd   : > { %s125_s30 = sadd.s32 1, %s949_s16  ;;  %s68_s5 = sor.u32 %s67_s29, %s66_s26 }
   0xe   : > { %p123_p7 = scmp.eq.s32.totalorder %s67_s29, 0  ;;  %p69_p8 = scmp.eq.s32.totalorder %s68_s5, 0 }
   0xf   : > { %p1074_p9 = por %p136_p6, %p135_p5  ;;  %p765_p10 = scmp.ge.s32.totalorder %s977_s22, 36 }
  0x10   : > { %s1079_s7 = scalar_select %p123_p7, %s949_s16, %s125_s30  }
  0x11   : > { %s1082_s8 = scalar_select %p69_p8, %s957_s18, %s71_s28  }
  0x12   : > { %158 = sbr.rel (%p765_p10) target bundleno = 50 (0x32), region = 16 }
  0x17   : > { %172 = sbr.rel (!%p1062_p4) target bundleno = 50 (0x32), region = 24  ;;  %s174_s9 = sand.u32 (%p1062_p4), 1, %s957_s18  }
  0x18   : > { %s767_s10 = sshll.u32 (%p1062_p4), %s969_s20, 7  ;;  %s766_s11 = sshll.u32 (%p1062_p4), %s174_s9, 7 }
  0x19   : > { %s178_s12 = sadd.s32 (%p1062_p4), %s973_s21, %s767_s10  ;;  %s1098_s27 = scalar_lea.vmem (%p1062_p4), [#allocation3], %s766_s11 }
  0x1a   : > { %s768_s13 = sshll.u32 (%p1062_p4), %s178_s12, 2 }
  0x1b   : > { %s1093_s26 = scalar_lea.vmem (%p1062_p4), %s1242_s2, %s768_s13 }
  0x1c   : > { %v197_v0 = vld [vmem:[%s1093_s26] sm:$0xf]  ;;  %v199_v1 = vld [vmem:[%s1093_s26 + $0x10] sm:$0xf] }
  0x1d   : > { %v201_v2 = vld [vmem:[%s1093_s26 + $0x20] sm:$0xf]  ;;  %198 = vst [vmem:[%s1098_s27] sm:$0xf] %v197_v0  ;;  %200 = vst [vmem:[%s1098_s27 + $0x4] sm:$0xf] %v199_v1 }
  0x1e   : > { %202 = vst [vmem:[%s1098_s27 + $0x8] sm:$0xf] %v201_v2  ;;  %v203_v3 = vld [vmem:[%s1093_s26 + $0x30] sm:$0xf]  ;;  %v205_v4 = vld [vmem:[%s1093_s26 + $0x40] sm:$0xf] }
  0x1f   : > { %v207_v5 = vld [vmem:[%s1093_s26 + $0x50] sm:$0xf]  ;;  %204 = vst [vmem:[%s1098_s27 + $0xc] sm:$0xf] %v203_v3  ;;  %206 = vst [vmem:[%s1098_s27 + $0x10] sm:$0xf] %v205_v4 }
  0x20   : > { %208 = vst [vmem:[%s1098_s27 + $0x14] sm:$0xf] %v207_v5  ;;  %v209_v6 = vld [vmem:[%s1093_s26 + $0x60] sm:$0xf]  ;;  %v211_v7 = vld [vmem:[%s1093_s26 + $0x70] sm:$0xf] }
  0x21   : > { %v213_v8 = vld [vmem:[%s1093_s26 + $0x80] sm:$0xf]  ;;  %210 = vst [vmem:[%s1098_s27 + $0x18] sm:$0xf] %v209_v6  ;;  %212 = vst [vmem:[%s1098_s27 + $0x1c] sm:$0xf] %v211_v7 }
  0x22   : > { %214 = vst [vmem:[%s1098_s27 + $0x20] sm:$0xf] %v213_v8  ;;  %v215_v9 = vld [vmem:[%s1093_s26 + $0x90] sm:$0xf]  ;;  %v217_v10 = vld [vmem:[%s1093_s26 + $0xa0] sm:$0xf] }
  0x23   : > { %v219_v11 = vld [vmem:[%s1093_s26 + $0xb0] sm:$0xf]  ;;  %216 = vst [vmem:[%s1098_s27 + $0x24] sm:$0xf] %v215_v9  ;;  %218 = vst [vmem:[%s1098_s27 + $0x28] sm:$0xf] %v217_v10 }
  0x24   : > { %220 = vst [vmem:[%s1098_s27 + $0x2c] sm:$0xf] %v219_v11  ;;  %v221_v12 = vld [vmem:[%s1093_s26 + $0xc0] sm:$0xf]  ;;  %v223_v13 = vld [vmem:[%s1093_s26 + $0xd0] sm:$0xf] }
  0x25   : > { %v225_v14 = vld [vmem:[%s1093_s26 + $0xe0] sm:$0xf]  ;;  %222 = vst [vmem:[%s1098_s27 + $0x30] sm:$0xf] %v221_v12  ;;  %224 = vst [vmem:[%s1098_s27 + $0x34] sm:$0xf] %v223_v13 }
  0x26   : > { %226 = vst [vmem:[%s1098_s27 + $0x38] sm:$0xf] %v225_v14  ;;  %v227_v15 = vld [vmem:[%s1093_s26 + $0xf0] sm:$0xf]  ;;  %v229_v16 = vld [vmem:[%s1093_s26 + $0x100] sm:$0xf] }
  0x27   : > { %v231_v17 = vld [vmem:[%s1093_s26 + $0x110] sm:$0xf]  ;;  %228 = vst [vmem:[%s1098_s27 + $0x3c] sm:$0xf] %v227_v15  ;;  %230 = vst [vmem:[%s1098_s27 + $0x40] sm:$0xf] %v229_v16 }
  0x28   : > { %232 = vst [vmem:[%s1098_s27 + $0x44] sm:$0xf] %v231_v17  ;;  %v233_v18 = vld [vmem:[%s1093_s26 + $0x120] sm:$0xf]  ;;  %v235_v19 = vld [vmem:[%s1093_s26 + $0x130] sm:$0xf] }
  0x29   : > { %v237_v20 = vld [vmem:[%s1093_s26 + $0x140] sm:$0xf]  ;;  %234 = vst [vmem:[%s1098_s27 + $0x48] sm:$0xf] %v233_v18  ;;  %236 = vst [vmem:[%s1098_s27 + $0x4c] sm:$0xf] %v235_v19 }
  0x2a   : > { %238 = vst [vmem:[%s1098_s27 + $0x50] sm:$0xf] %v237_v20  ;;  %v239_v21 = vld [vmem:[%s1093_s26 + $0x150] sm:$0xf]  ;;  %v241_v22 = vld [vmem:[%s1093_s26 + $0x160] sm:$0xf] }
  0x2b   : > { %v243_v23 = vld [vmem:[%s1093_s26 + $0x170] sm:$0xf]  ;;  %240 = vst [vmem:[%s1098_s27 + $0x54] sm:$0xf] %v239_v21  ;;  %242 = vst [vmem:[%s1098_s27 + $0x58] sm:$0xf] %v241_v22 }
  0x2c   : > { %244 = vst [vmem:[%s1098_s27 + $0x5c] sm:$0xf] %v243_v23  ;;  %v245_v24 = vld [vmem:[%s1093_s26 + $0x180] sm:$0xf]  ;;  %v247_v25 = vld [vmem:[%s1093_s26 + $0x190] sm:$0xf] }
  0x2d   : > { %v249_v26 = vld [vmem:[%s1093_s26 + $0x1a0] sm:$0xf]  ;;  %246 = vst [vmem:[%s1098_s27 + $0x60] sm:$0xf] %v245_v24  ;;  %248 = vst [vmem:[%s1098_s27 + $0x64] sm:$0xf] %v247_v25 }
  0x2e   : > { %250 = vst [vmem:[%s1098_s27 + $0x68] sm:$0xf] %v249_v26  ;;  %v251_v27 = vld [vmem:[%s1093_s26 + $0x1b0] sm:$0xf]  ;;  %v253_v28 = vld [vmem:[%s1093_s26 + $0x1c0] sm:$0xf] }
  0x2f   : > { %v255_v29 = vld [vmem:[%s1093_s26 + $0x1d0] sm:$0xf]  ;;  %252 = vst [vmem:[%s1098_s27 + $0x6c] sm:$0xf] %v251_v27  ;;  %254 = vst [vmem:[%s1098_s27 + $0x70] sm:$0xf] %v253_v28 }
  0x30   : > { %256 = vst [vmem:[%s1098_s27 + $0x74] sm:$0xf] %v255_v29  ;;  %v257_v30 = vld [vmem:[%s1093_s26 + $0x1e0] sm:$0xf]  ;;  %v259_v31 = vld [vmem:[%s1093_s26 + $0x1f0] sm:$0xf] }
  0x31   : > { %258 = vst [vmem:[%s1098_s27 + $0x78] sm:$0xf] %v257_v30  ;;  %260 = vst [vmem:[%s1098_s27 + $0x7c] sm:$0xf] %v259_v31 }
  0x32 PF: > { %p769_p11 = scmp.ge.s32.totalorder %s977_s22, 1  ;;  %p353_p12 = scmp.lt.s32.totalorder %s977_s22, 37 }
  0x34   : > { %p354_p13 = pnand %p769_p11, %p353_p12 }
  0x35   : > { %s360_s28 = sand.u32 (!%p354_p13), 1, %s953_s17   ;;  %s390_s29 = sand.u32 (!%p354_p13), 1, %s945_s15  }
  0x36   : > { %357 = sbr.rel (%p354_p13) target bundleno = 323 (0x143), region = 69  ;;  %s770_s30 = sshll.u32 (!%p354_p13), %s360_s28, 7 }
  0x37   : > { %p392_p0 = scmp.lt.s32.totalorder (!%p354_p13), %s961_s0, 8  ;;  %p400_p1 = scmp.lt.s32.totalorder (!%p354_p13), %s965_s19, 3 }
  0x38   : > { %s1178_s27 = scalar_lea.vmem (!%p354_p13), [#allocation3], %s770_s30  ;;  %s1180_s17 = scalar_lea.vmem (!%p354_p13), [#allocation4], %s390_s29 }
  0x39   : > { %p772_p2 = scmp.ne.s32.totalorder (!%p354_p13), %s961_s0, 0 }
  0x3b   : > { %s393_s5 = scalar_select %p392_p0, %s961_s0, 8 }
  0x3c   : > { %s1169_s9 = scalar_select %p400_p1, %s965_s19, 3 }
  0x3d   : > { %s771_s10 = sshll.u32 %s393_s5, 1  ;;  %407 = sbr.rel (%p772_p2) target bundleno = 68 (0x44), region = 77 }
  0x3e   : > { %s399_s13 = scalar_lea.vmem %s1241_s1, %s771_s10  ;;  %s402_s26 = scalar_lea.vmem %s1243_s3, %s1169_s9 }
  0x42   : > { %v979_v32 = vmov 0.0  }
  0x43   : > { %408 = vst [vmem:[#allocation2] sm:$0x3] %v979_v32 }
  0x44 PF: > { %v891_v33 = vld [vmem:[%s1178_s27 + $0x78] sm:$0xff]   ;;  %v893_v35 = vld [vmem:[%s1178_s27 + $0x70] sm:$0xff]   ;;  %v895_v37 = vld [vmem:[%s1178_s27 + $0x68] sm:$0xff]   ;;  %v455_v42 = vlaneseq  ;;  %v980_v46 = vmov 1966171168   ;;  %p790_p3 = scmp.ne.s32.totalorder %s961_s0, 8 }
  0x45   : > { %v892_v34 = vld [vmem:[%s1178_s27 + $0x38] sm:$0xff]   ;;  %795 = vmatprep.subr.bf16.mxu0 %v891_v33  ;;  %v894_v36 = vld [vmem:[%s1178_s27 + $0x30] sm:$0xff]   ;;  %v896_v38 = vld [vmem:[%s1178_s27 + $0x28] sm:$0xff]   ;;  %v453_v47 = vunpack.c.l.s4 %v980_v46 }
  0x46   : > { %796 = vmatpush3.bf16.msra.mxu0 %v892_v34  ;;  %v897_v39 = vld [vmem:[%s1178_s27 + $0x60] sm:$0xff]   ;;  %v899_v41 = vld [vmem:[%s1178_s27 + $0x58] sm:$0xff]   ;;  %v901_v44 = vld [vmem:[%s1178_s27 + $0x50] sm:$0xff]   ;;  %v456_v48 = vshrl.u32 %v455_v42, 7 }
  0x47   : > { %797 = vmatprep.subr.bf16.mxu0 %v893_v35  ;;  %v898_v40 = vld [vmem:[%s1178_s27 + $0x20] sm:$0xff]   ;;  %v900_v43 = vld [vmem:[%s1178_s27 + $0x18] sm:$0xff]   ;;  %v902_v49 = vld [vmem:[%s1178_s27 + $0x10] sm:$0xff]   ;;  %v454_v51 = vunpack.c.0.s8 %v453_v47 }
  0x48   : > { %v773_v45 = vld.sshfl [vmem:[%s399_s13] sm:$0x11 pattern:$0x75316420]  ;;  %v903_v52 = vld [vmem:[%s1178_s27 + $0x48] sm:$0xff]   ;;  %v905_v56 = vld [vmem:[%s1178_s27 + $0x40] sm:$0xff]  }
  0x49   : > { %v451_v50 = vcombine.high %v773_v45, %v773_v45  ;;  %v457_v53 = vsub.s32 %v454_v51, %v456_v48  ;;  %v904_v54 = vld [vmem:[%s1178_s27 + $0x8] sm:$0xff]   ;;  %v906_v57 = vld [vmem:[%s1178_s27] sm:$0xff]  }
  0x4a   : > { %798 = vmatpush3.bf16.msra.mxu0 %v894_v36  ;;  %v409_v60 = vld [vmem:[#allocation2] sm:$0x3] }
  0x4b   : > { %799 = vmatprep.subr.bf16.mxu0 %v895_v37  ;;  %v465_v55 = vrot.slane %v451_v50, %v457_v53  ;;  %v458_v58 = vrot.slane %v773_v45, %v457_v53 }
  0x4d   : > { %596 = vmatprep.mubr.bf16.mxu0 %v465_v55 }
  0x4e   : > { %800 = vmatpush3.bf16.msra.mxu0 %v896_v38 }
  0x4f   : > { %801 = vmatprep.subr.bf16.mxu0 %v897_v39 }
  0x52   : > { %802 = vmatpush3.bf16.msra.mxu0 %v898_v40 }
  0x53   : > { %803 = vmatprep.subr.bf16.mxu0 %v899_v41 }
  0x56   : > { %804 = vmatpush3.bf16.msra.mxu0 %v900_v43 }
  0x57   : > { %805 = vmatprep.subr.bf16.mxu0 %v901_v44 }
  0x5a   : > { %806 = vmatpush3.bf16.msra.mxu0 %v902_v49 }
  0x5b   : > { %807 = vmatprep.subr.bf16.mxu0 %v903_v52 }
  0x5e   : > { %808 = vmatpush3.bf16.msra.mxu0 %v904_v54 }
  0x5f   : > { %809 = vmatprep.subr.bf16.mxu0 %v905_v56 }
  0x62   : > { %810 = vmatpush3.bf16.msra.mxu0 %v906_v57 }
  0x65   : > { %597 = vmatmul.mubr.bf16.vlgmr.msra.gmra.mxu0 %v458_v58 }
 0x125   : > { %v811_v59 = vpop.f32.mrf.mxu0 }
 0x127   : > { %v812_v61 = vpop.f32.mrf.mxu0 }
 0x128   : > { %v813_v62 = vadd.f32 %v812_v61, %v811_v59  ;;  %609 = sbr.rel (%p790_p3) target bundleno = 315 (0x13b), region = 81 }
 0x129   : > { %v814_v63 = vpop.f32.mrf.mxu0 }
 0x12a   : > { %v604_v0 = vadd.f32 %v813_v62, %v409_v60 }
 0x12b   : > { %v815_v1 = vpop.f32.mrf.mxu0 }
 0x12c   : > { %605 = vst [vmem:[#allocation2] sm:$0x3] %v604_v0 }
 0x12d   : > { %v791_v3 = vld [vmem:[%s402_s26] ss:$0 sm:$0xff] }
 0x133   : > { %v610_v2 = vld [vmem:[#allocation2] sm:$0x3] }
 0x134   : > { %v618_v4 = vadd.f32 %v791_v3, %v610_v2 }
 0x136   : > { %v619_v5 = vmax.f32 %v618_v4, 0.0 }
 0x138   : > { %v620_v6 = vpack.c.bf16 %v619_v5, %v619_v5 }
 0x13a   : > { %621 = vst [vmem:[%s1180_s17] sm:$0x1] %v620_v6 }
 0x13b PF: > { %627 = sbr.rel (!%p1074_p9) target bundleno = 323 (0x143), region = 85  ;;  %s704_s30 = scalar_lea.vmem (%p1074_p9), %s1244_s4, %s965_s19 }
 0x141   : > { %v647_v7 = vld [vmem:[%s1180_s17] sm:$0x1] }
 0x142   : > { %792 = vst [vmem:[%s704_s30 + $0x10] sm:$0x1] %v647_v7 }
 0x143 PF: > { %s15_s22 = sadd.s32 1, %s977_s22   ;;  %s1247_s15 = smov %s949_s16 }
 0x144   : > { %p12_p4 = scmp.ge.s32.totalorder %s15_s22, 38   ;;  %s1248_s16 = smov %s1079_s7 }
 0x145   : > { %s1249_s17 = smov %s957_s18  ;;  %s1250_s18 = smov %s1082_s8 }
 0x146   : > { %s1251_s0 = smov %s969_s20  ;;  %s1252_s19 = smov %s973_s21 }
 0x147   : > { %s1253_s20 = smov %s1256_s23  ;;  %s1254_s21 = smov %s1260_s24 }
 0x148   :  { %14 = sbr.rel (!%p12_p4) target bundleno = 5 (0x5), region = 157 }

// kernel: resnet_forward.25
= control target key start
LH: loop header
LB: loop body
LE: loop exit
PB: predicated region body
PF: predicated region fallthrough
CT: control target
= control target key end

     0   :  { %s913_s12 = smov 0   ;;  %s915_s13 = smov 0   ;;  %s1071_s0 = inlined_call_operand.vmem [shape: bf16[1,2,256], index: 0, kind: input, shape index: {}]   ;;  %s1072_s1 = inlined_call_operand.vmem [shape: bf16[1,256,512], index: 1, kind: input, shape index: {}]   ;;  %s1073_s2 = inlined_call_operand.vmem [shape: f32[1,512], index: 2, kind: input, shape index: {}]   ;;  %s1074_s3 = inlined_call_operand.vmem [shape: bf16[2,512], index: 3, kind: output, shape index: {}]  }
   0x1   :  { %s917_s14 = smov 0   ;;  %s919_s15 = smov 0  }
   0x2   :  { %s921_s16 = smov 0  }
   0x3 LB: > { %s28_s17 = sadd.s32 1, %s885_s15  ;;  %p76_p1 = scmp.ne.s32.totalorder %s877_s13, %s873_s12  ;;  %s889_s16 = sphi %s921_s16, %s13_s16   ;;  %s885_s15 = sphi %s919_s15, %s1078_s15   ;;  %s881_s14 = sphi %s917_s14, %s1077_s14   ;;  %s877_s13 = sphi %s915_s13, %s1076_s13   ;;  %s873_s12 = sphi %s913_s12, %s1075_s12  }
   0x4   : > { %p30_p0 = scmp.ge.s32.totalorder %s28_s17, 4  ;;  %p77_p2 = scmp.eq.s32.totalorder %s889_s16, 0 }
   0x5   : > { %s69_s19 = sadd.s32 1, %s877_s13  ;;  %p746_p5 = scmp.ge.s32.totalorder %s889_s16, 4 }
   0x6   : > { %s1080_s17 = smov (%p30_p0, %s28_s17), 0  ;;  %p78_p3 = por %p77_p2, %p76_p1 }
   0x7   : > { %s65_s18 = ssub.s32 %s885_s15, %s1080_s17  ;;  %167 = sbr.rel (%p746_p5) target bundleno = 37 (0x25), region = 20 }
   0x8   : > { %p67_p4 = scmp.eq.s32.totalorder %s65_s18, 0 }
   0xa   : > { %s948_s20 = scalar_select %p67_p4, %s877_s13, %s69_s19  }
   0xc   : > { %170 = sbr.rel (!%p78_p3) target bundleno = 37 (0x25), region = 24  ;;  %s172_s21 = sand.u32 (%p78_p3), 1, %s877_s13  }
   0xd   : > { %s748_s22 = sshll.u32 (%p78_p3), %s885_s15, 2  ;;  %s747_s23 = sshll.u32 (%p78_p3), %s172_s21, 7 }
   0xe   : > { %s956_s26 = scalar_lea.vmem (%p78_p3), %s1072_s1, %s748_s22  ;;  %s960_s27 = scalar_lea.vmem (%p78_p3), [#allocation3], %s747_s23 }
   0xf   : > { %v195_v0 = vld [vmem:[%s956_s26] sm:$0xf] (%p78_p3)  ;;  %v197_v1 = vld [vmem:[%s956_s26 + $0x10] sm:$0xf] (%p78_p3) }
  0x10   : > { %196 = vst [vmem:[%s960_s27] sm:$0xf] (%p78_p3), %v195_v0  ;;  %198 = vst [vmem:[%s960_s27 + $0x4] sm:$0xf] (%p78_p3), %v197_v1  ;;  %v199_v2 = vld [vmem:[%s956_s26 + $0x20] sm:$0xf] (%p78_p3) }
  0x11   : > { %v201_v3 = vld [vmem:[%s956_s26 + $0x30] sm:$0xf]  ;;  %v203_v4 = vld [vmem:[%s956_s26 + $0x40] sm:$0xf]  ;;  %200 = vst [vmem:[%s960_s27 + $0x8] sm:$0xf] %v199_v2 }
  0x12   : > { %202 = vst [vmem:[%s960_s27 + $0xc] sm:$0xf] %v201_v3  ;;  %204 = vst [vmem:[%s960_s27 + $0x10] sm:$0xf] %v203_v4  ;;  %v205_v5 = vld [vmem:[%s956_s26 + $0x50] sm:$0xf] }
  0x13   : > { %v207_v6 = vld [vmem:[%s956_s26 + $0x60] sm:$0xf]  ;;  %v209_v7 = vld [vmem:[%s956_s26 + $0x70] sm:$0xf]  ;;  %206 = vst [vmem:[%s960_s27 + $0x14] sm:$0xf] %v205_v5 }
  0x14   : > { %208 = vst [vmem:[%s960_s27 + $0x18] sm:$0xf] %v207_v6  ;;  %210 = vst [vmem:[%s960_s27 + $0x1c] sm:$0xf] %v209_v7  ;;  %v211_v8 = vld [vmem:[%s956_s26 + $0x80] sm:$0xf] }
  0x15   : > { %v213_v9 = vld [vmem:[%s956_s26 + $0x90] sm:$0xf]  ;;  %v215_v10 = vld [vmem:[%s956_s26 + $0xa0] sm:$0xf]  ;;  %212 = vst [vmem:[%s960_s27 + $0x20] sm:$0xf] %v211_v8 }
  0x16   : > { %214 = vst [vmem:[%s960_s27 + $0x24] sm:$0xf] %v213_v9  ;;  %216 = vst [vmem:[%s960_s27 + $0x28] sm:$0xf] %v215_v10  ;;  %v217_v11 = vld [vmem:[%s956_s26 + $0xb0] sm:$0xf] }
  0x17   : > { %v219_v12 = vld [vmem:[%s956_s26 + $0xc0] sm:$0xf]  ;;  %v221_v13 = vld [vmem:[%s956_s26 + $0xd0] sm:$0xf]  ;;  %218 = vst [vmem:[%s960_s27 + $0x2c] sm:$0xf] %v217_v11 }
  0x18   : > { %220 = vst [vmem:[%s960_s27 + $0x30] sm:$0xf] %v219_v12  ;;  %222 = vst [vmem:[%s960_s27 + $0x34] sm:$0xf] %v221_v13  ;;  %v223_v14 = vld [vmem:[%s956_s26 + $0xe0] sm:$0xf] }
  0x19   : > { %v225_v15 = vld [vmem:[%s956_s26 + $0xf0] sm:$0xf]  ;;  %v227_v16 = vld [vmem:[%s956_s26 + $0x100] sm:$0xf]  ;;  %224 = vst [vmem:[%s960_s27 + $0x38] sm:$0xf] %v223_v14 }
  0x1a   : > { %226 = vst [vmem:[%s960_s27 + $0x3c] sm:$0xf] %v225_v15  ;;  %228 = vst [vmem:[%s960_s27 + $0x40] sm:$0xf] %v227_v16  ;;  %v229_v17 = vld [vmem:[%s956_s26 + $0x110] sm:$0xf] }
  0x1b   : > { %v231_v18 = vld [vmem:[%s956_s26 + $0x120] sm:$0xf]  ;;  %v233_v19 = vld [vmem:[%s956_s26 + $0x130] sm:$0xf]  ;;  %230 = vst [vmem:[%s960_s27 + $0x44] sm:$0xf] %v229_v17 }
  0x1c   : > { %232 = vst [vmem:[%s960_s27 + $0x48] sm:$0xf] %v231_v18  ;;  %234 = vst [vmem:[%s960_s27 + $0x4c] sm:$0xf] %v233_v19  ;;  %v235_v20 = vld [vmem:[%s956_s26 + $0x140] sm:$0xf] }
  0x1d   : > { %v237_v21 = vld [vmem:[%s956_s26 + $0x150] sm:$0xf]  ;;  %v239_v22 = vld [vmem:[%s956_s26 + $0x160] sm:$0xf]  ;;  %236 = vst [vmem:[%s960_s27 + $0x50] sm:$0xf] %v235_v20 }
  0x1e   : > { %238 = vst [vmem:[%s960_s27 + $0x54] sm:$0xf] %v237_v21  ;;  %240 = vst [vmem:[%s960_s27 + $0x58] sm:$0xf] %v239_v22  ;;  %v241_v23 = vld [vmem:[%s956_s26 + $0x170] sm:$0xf] }
  0x1f   : > { %v243_v24 = vld [vmem:[%s956_s26 + $0x180] sm:$0xf]  ;;  %v245_v25 = vld [vmem:[%s956_s26 + $0x190] sm:$0xf]  ;;  %242 = vst [vmem:[%s960_s27 + $0x5c] sm:$0xf] %v241_v23 }
  0x20   : > { %244 = vst [vmem:[%s960_s27 + $0x60] sm:$0xf] %v243_v24  ;;  %246 = vst [vmem:[%s960_s27 + $0x64] sm:$0xf] %v245_v25  ;;  %v247_v26 = vld [vmem:[%s956_s26 + $0x1a0] sm:$0xf] }
  0x21   : > { %v249_v27 = vld [vmem:[%s956_s26 + $0x1b0] sm:$0xf]  ;;  %v251_v28 = vld [vmem:[%s956_s26 + $0x1c0] sm:$0xf]  ;;  %248 = vst [vmem:[%s960_s27 + $0x68] sm:$0xf] %v247_v26 }
  0x22   : > { %250 = vst [vmem:[%s960_s27 + $0x6c] sm:$0xf] %v249_v27  ;;  %252 = vst [vmem:[%s960_s27 + $0x70] sm:$0xf] %v251_v28  ;;  %v253_v29 = vld [vmem:[%s956_s26 + $0x1d0] sm:$0xf] }
  0x23   : > { %v255_v30 = vld [vmem:[%s956_s26 + $0x1e0] sm:$0xf]  ;;  %v257_v31 = vld [vmem:[%s956_s26 + $0x1f0] sm:$0xf]  ;;  %254 = vst [vmem:[%s960_s27 + $0x74] sm:$0xf] %v253_v29 }
  0x24   : > { %256 = vst [vmem:[%s960_s27 + $0x78] sm:$0xf] %v255_v30  ;;  %258 = vst [vmem:[%s960_s27 + $0x7c] sm:$0xf] %v257_v31 }
  0x25 PF: > { %p749_p6 = scmp.ge.s32.totalorder %s889_s16, 1  ;;  %p351_p7 = scmp.lt.s32.totalorder %s889_s16, 5 }
  0x27   : > { %p352_p8 = pnand %p749_p6, %p351_p7 }
  0x28   : > { %s358_s28 = sand.u32 (!%p352_p8), 1, %s873_s12   ;;  %p402_p9 = scmp.lt.s32.totalorder (!%p352_p8), %s881_s14, 3 }
  0x29   : > { %355 = sbr.rel (%p352_p8) target bundleno = 292 (0x124), region = 69  ;;  %s750_s4 = sshll.u32 (!%p352_p8), %s358_s28, 7 }
  0x2a   : > { %s1030_s5 = scalar_lea.vmem (!%p352_p8), [#allocation3], %s750_s4 }
  0x2e   : > { %v751_v32 = vld.sshfl [vmem:[%s1071_s0] sm:$0x11 pattern:$0x75316420]  ;;  %v464_v33 = vlaneseq  ;;  %v891_v34 = vmov 1966171168  }
  0x2f   : > { %v462_v35 = vunpack.c.l.s4 %v891_v34  ;;  %v835_v37 = vld [vmem:[%s1030_s5 + $0x78] sm:$0xff]   ;;  %v460_v39 = vcombine.high %v751_v32, %v751_v32  ;;  %v837_v41 = vld [vmem:[%s1030_s5 + $0x70] sm:$0xff]   ;;  %v839_v44 = vld [vmem:[%s1030_s5 + $0x68] sm:$0xff]   ;;  %v892_v58 = vmov 0.0   ;;  %s1082_s14 = smov (!%p402_p9, %s881_s14), 3 }
  0x30   : > { %v465_v36 = vshrl.u32 %v464_v33, 7  ;;  %v836_v38 = vld [vmem:[%s1030_s5 + $0x38] sm:$0xff]   ;;  %771 = vmatprep.subr.bf16.mxu0 %v835_v37  ;;  %v838_v42 = vld [vmem:[%s1030_s5 + $0x30] sm:$0xff]   ;;  %v840_v46 = vld [vmem:[%s1030_s5 + $0x28] sm:$0xff]   ;;  %417 = vst [vmem:[#allocation2] sm:$0x3] %v892_v58  ;;  %s404_s8 = scalar_lea.vmem %s1073_s2, %s1082_s14  ;;  %s411_s11 = scalar_lea.vmem %s1074_s3, %s1082_s14 }
  0x31   : > { %v463_v40 = vunpack.c.0.s8 %v462_v35  ;;  %772 = vmatpush3.bf16.msra.mxu0 %v836_v38  ;;  %v841_v47 = vld [vmem:[%s1030_s5 + $0x60] sm:$0xff]   ;;  %v843_v49 = vld [vmem:[%s1030_s5 + $0x58] sm:$0xff]   ;;  %v845_v51 = vld [vmem:[%s1030_s5 + $0x50] sm:$0xff]  }
  0x32   : > { %773 = vmatprep.subr.bf16.mxu0 %v837_v41  ;;  %v842_v48 = vld [vmem:[%s1030_s5 + $0x20] sm:$0xff]   ;;  %v844_v50 = vld [vmem:[%s1030_s5 + $0x18] sm:$0xff]   ;;  %v846_v52 = vld [vmem:[%s1030_s5 + $0x10] sm:$0xff]  }
  0x33   : > { %v466_v43 = vsub.s32 %v463_v40, %v465_v36  ;;  %v847_v53 = vld [vmem:[%s1030_s5 + $0x48] sm:$0xff]   ;;  %v849_v55 = vld [vmem:[%s1030_s5 + $0x40] sm:$0xff]   ;;  %v768_v2 = vld [vmem:[%s404_s8] ss:$0 sm:$0xff] }
  0x34   : > { %v848_v54 = vld [vmem:[%s1030_s5 + $0x8] sm:$0xff]   ;;  %v850_v56 = vld [vmem:[%s1030_s5] sm:$0xff]  }
  0x35   : > { %v474_v45 = vrot.slane %v460_v39, %v466_v43  ;;  %774 = vmatpush3.bf16.msra.mxu0 %v838_v42  ;;  %v467_v57 = vrot.slane %v751_v32, %v466_v43 }
  0x36   : > { %775 = vmatprep.subr.bf16.mxu0 %v839_v44 }
  0x37   : > { %605 = vmatprep.mubr.bf16.mxu0 %v474_v45  ;;  %v418_v60 = vld [vmem:[#allocation2] sm:$0x3] }
  0x39   : > { %776 = vmatpush3.bf16.msra.mxu0 %v840_v46 }
  0x3a   : > { %777 = vmatprep.subr.bf16.mxu0 %v841_v47 }
  0x3d   : > { %778 = vmatpush3.bf16.msra.mxu0 %v842_v48 }
  0x3e   : > { %779 = vmatprep.subr.bf16.mxu0 %v843_v49 }
  0x41   : > { %780 = vmatpush3.bf16.msra.mxu0 %v844_v50 }
  0x42   : > { %781 = vmatprep.subr.bf16.mxu0 %v845_v51 }
  0x45   : > { %782 = vmatpush3.bf16.msra.mxu0 %v846_v52 }
  0x46   : > { %783 = vmatprep.subr.bf16.mxu0 %v847_v53 }
  0x49   : > { %784 = vmatpush3.bf16.msra.mxu0 %v848_v54 }
  0x4a   : > { %785 = vmatprep.subr.bf16.mxu0 %v849_v55 }
  0x4d   : > { %786 = vmatpush3.bf16.msra.mxu0 %v850_v56 }
  0x50   : > { %606 = vmatmul.mubr.bf16.vlgmr.msra.gmra.mxu0 %v467_v57 }
 0x110   : > { %v787_v59 = vpop.f32.mrf.mxu0 }
 0x112   : > { %v788_v61 = vpop.f32.mrf.mxu0 }
 0x113   : > { %v789_v62 = vadd.f32 %v788_v61, %v787_v59 }
 0x114   : > { %v790_v63 = vpop.f32.mrf.mxu0 }
 0x115   : > { %v613_v0 = vadd.f32 %v789_v62, %v418_v60 }
 0x116   : > { %v791_v1 = vpop.f32.mrf.mxu0 }
 0x117   : > { %614 = vst [vmem:[#allocation2] sm:$0x3] %v613_v0 }
 0x11e   : > { %v618_v3 = vld [vmem:[#allocation2] sm:$0x3] }
 0x11f   : > { %v626_v4 = vadd.f32 %v768_v2, %v618_v3 }
 0x121   : > { %v627_v5 = vpack.c.bf16 %v626_v4, %v626_v4 }
 0x123   : > { %628 = vst [vmem:[%s411_s11] sm:$0x1] %v627_v5 }
 0x124 PF: > { %s13_s16 = sadd.s32 1, %s889_s16   ;;  %s1075_s12 = smov %s877_s13 }
 0x125   : > { %p10_p10 = scmp.ge.s32.totalorder %s13_s16, 6   ;;  %s1076_s13 = smov %s948_s20 }
 0x126   : > { %s1077_s14 = smov %s885_s15  ;;  %s1078_s15 = smov %s1080_s17 }
 0x127   :  { %12 = sbr.rel (!%p10_p10) target bundleno = 3 (0x3), region = 122 }

// kernel: resnet_forward.26
= control target key start
LH: loop header
LB: loop body
LE: loop exit
PB: predicated region body
PF: predicated region fallthrough
CT: control target
= control target key end

     0   :  { %s1381_s15 = smov 0   ;;  %s1383_s16 = smov 0   ;;  %s1672_s0 = inlined_call_operand.vmem [shape: bf16[9,2,512], index: 0, kind: input, shape index: {}]   ;;  %s1673_s1 = inlined_call_operand.vmem [shape: bf16[9,512,512], index: 1, kind: input, shape index: {}]   ;;  %s1674_s2 = inlined_call_operand.vmem [shape: f32[1,512], index: 2, kind: input, shape index: {}]   ;;  %s1675_s3 = inlined_call_operand.vmem [shape: bf16[2,512], index: 3, kind: input, shape index: {}]   ;;  %s1676_s4 = inlined_call_operand.vmem [shape: bf16[2,512], index: 4, kind: output, shape index: {}]  }
   0x1   :  { %s1385_s17 = smov 0   ;;  %s1387_s18 = smov 0  }
   0x2   :  { %s1389_s19 = smov 0   ;;  %s1391_s20 = smov 0  }
   0x3   :  { %s1393_s21 = smov 0  }
   0x4 LB: > { %s26_s22 = sadd.s32 1, %s1344_s19  ;;  %s29_s23 = sadd.s32 1, %s1348_s20  ;;  %s1352_s21 = sphi %s1393_s21, %s14_s21   ;;  %s1348_s20 = sphi %s1391_s20, %s1682_s20   ;;  %s1344_s19 = sphi %s1389_s19, %s1681_s19   ;;  %s1340_s18 = sphi %s1387_s18, %s1680_s18   ;;  %s1336_s17 = sphi %s1385_s17, %s1679_s17   ;;  %s1332_s16 = sphi %s1383_s16, %s1678_s16   ;;  %s1328_s15 = sphi %s1381_s15, %s1677_s15  }
   0x5   : > { %p27_p0 = scmp.ge.s32.totalorder %s26_s22, 9  ;;  %p77_p1 = scmp.ne.s32.totalorder %s1332_s16, %s1328_s15 }
   0x6   : > { %p78_p2 = scmp.eq.s32.totalorder %s1352_s21, 0  ;;  %s70_s27 = sadd.s32 1, %s1332_s16 }
   0x7   : > { %s1684_s22 = smov (%p27_p0, %s26_s22), 0  ;;  %s1686_s23 = smov (!%p27_p0, %s29_s23), %s1348_s20 }
   0x8   : > { %p79_p3 = por %p78_p2, %p77_p1  ;;  %p31_p4 = scmp.ge.s32.totalorder %s1686_s23, 4 }
   0x9   : > { %s65_s24 = ssub.s32 %s1344_s19, %s1684_s22  ;;  %p1119_p6 = scmp.ge.s32.totalorder %s1352_s21, 36 }
   0xa   : > { %s1688_s23 = smov (%p31_p4, %s1686_s23), 0 }
   0xb   : > { %s66_s25 = ssub.s32 %s1348_s20, %s1688_s23  ;;  %185 = sbr.rel (%p1119_p6) target bundleno = 65 (0x41), region = 16 }
   0xc   : > { %s67_s26 = sor.u32 %s66_s25, %s65_s24 }
   0xd   : > { %p68_p5 = scmp.eq.s32.totalorder %s67_s26, 0 }
   0xf   : > { %s1432_s28 = scalar_select %p68_p5, %s1332_s16, %s70_s27  }
  0x10   : > { %199 = sbr.rel (!%p79_p3) target bundleno = 65 (0x41), region = 24  ;;  %s201_s29 = sand.u32 (%p79_p3), 1, %s1332_s16  }
  0x11   : > { %s1121_s30 = sshll.u32 (%p79_p3), %s1344_s19, 8  ;;  %s1120_s5 = sshll.u32 (%p79_p3), %s201_s29, 8 }
  0x12   : > { %s205_s6 = sadd.s32 (%p79_p3), %s1348_s20, %s1121_s30  ;;  %s1446_s11 = scalar_lea.vmem (%p79_p3), [#allocation3], %s1120_s5 }
  0x13   : > { %s1122_s7 = sshll.u32 (%p79_p3), %s205_s6, 2 }
  0x14   : > { %s1441_s10 = scalar_lea.vmem (%p79_p3), %s1673_s1, %s1122_s7 }
  0x15   : > { %v224_v0 = vld [vmem:[%s1441_s10] sm:$0xf]  ;;  %v226_v1 = vld [vmem:[%s1441_s10 + $0x10] sm:$0xf] }
  0x16   : > { %v228_v2 = vld [vmem:[%s1441_s10 + $0x20] sm:$0xf]  ;;  %225 = vst [vmem:[%s1446_s11] sm:$0xf] %v224_v0  ;;  %227 = vst [vmem:[%s1446_s11 + $0x4] sm:$0xf] %v226_v1 }
  0x17   : > { %229 = vst [vmem:[%s1446_s11 + $0x8] sm:$0xf] %v228_v2  ;;  %v230_v3 = vld [vmem:[%s1441_s10 + $0x30] sm:$0xf]  ;;  %v232_v4 = vld [vmem:[%s1441_s10 + $0x40] sm:$0xf] }
  0x18   : > { %v234_v5 = vld [vmem:[%s1441_s10 + $0x50] sm:$0xf]  ;;  %231 = vst [vmem:[%s1446_s11 + $0xc] sm:$0xf] %v230_v3  ;;  %233 = vst [vmem:[%s1446_s11 + $0x10] sm:$0xf] %v232_v4 }
  0x19   : > { %235 = vst [vmem:[%s1446_s11 + $0x14] sm:$0xf] %v234_v5  ;;  %v236_v6 = vld [vmem:[%s1441_s10 + $0x60] sm:$0xf]  ;;  %v238_v7 = vld [vmem:[%s1441_s10 + $0x70] sm:$0xf] }
  0x1a   : > { %v240_v8 = vld [vmem:[%s1441_s10 + $0x80] sm:$0xf]  ;;  %237 = vst [vmem:[%s1446_s11 + $0x18] sm:$0xf] %v236_v6  ;;  %239 = vst [vmem:[%s1446_s11 + $0x1c] sm:$0xf] %v238_v7 }
  0x1b   : > { %241 = vst [vmem:[%s1446_s11 + $0x20] sm:$0xf] %v240_v8  ;;  %v242_v9 = vld [vmem:[%s1441_s10 + $0x90] sm:$0xf]  ;;  %v244_v10 = vld [vmem:[%s1441_s10 + $0xa0] sm:$0xf] }
  0x1c   : > { %v246_v11 = vld [vmem:[%s1441_s10 + $0xb0] sm:$0xf]  ;;  %243 = vst [vmem:[%s1446_s11 + $0x24] sm:$0xf] %v242_v9  ;;  %245 = vst [vmem:[%s1446_s11 + $0x28] sm:$0xf] %v244_v10 }
  0x1d   : > { %247 = vst [vmem:[%s1446_s11 + $0x2c] sm:$0xf] %v246_v11  ;;  %v248_v12 = vld [vmem:[%s1441_s10 + $0xc0] sm:$0xf]  ;;  %v250_v13 = vld [vmem:[%s1441_s10 + $0xd0] sm:$0xf] }
  0x1e   : > { %v252_v14 = vld [vmem:[%s1441_s10 + $0xe0] sm:$0xf]  ;;  %249 = vst [vmem:[%s1446_s11 + $0x30] sm:$0xf] %v248_v12  ;;  %251 = vst [vmem:[%s1446_s11 + $0x34] sm:$0xf] %v250_v13 }
  0x1f   : > { %253 = vst [vmem:[%s1446_s11 + $0x38] sm:$0xf] %v252_v14  ;;  %v254_v15 = vld [vmem:[%s1441_s10 + $0xf0] sm:$0xf]  ;;  %v256_v16 = vld [vmem:[%s1441_s10 + $0x100] sm:$0xf] }
  0x20   : > { %v258_v17 = vld [vmem:[%s1441_s10 + $0x110] sm:$0xf]  ;;  %255 = vst [vmem:[%s1446_s11 + $0x3c] sm:$0xf] %v254_v15  ;;  %257 = vst [vmem:[%s1446_s11 + $0x40] sm:$0xf] %v256_v16 }
  0x21   : > { %259 = vst [vmem:[%s1446_s11 + $0x44] sm:$0xf] %v258_v17  ;;  %v260_v18 = vld [vmem:[%s1441_s10 + $0x120] sm:$0xf]  ;;  %v262_v19 = vld [vmem:[%s1441_s10 + $0x130] sm:$0xf] }
  0x22   : > { %v264_v20 = vld [vmem:[%s1441_s10 + $0x140] sm:$0xf]  ;;  %261 = vst [vmem:[%s1446_s11 + $0x48] sm:$0xf] %v260_v18  ;;  %263 = vst [vmem:[%s1446_s11 + $0x4c] sm:$0xf] %v262_v19 }
  0x23   : > { %265 = vst [vmem:[%s1446_s11 + $0x50] sm:$0xf] %v264_v20  ;;  %v266_v21 = vld [vmem:[%s1441_s10 + $0x150] sm:$0xf]  ;;  %v268_v22 = vld [vmem:[%s1441_s10 + $0x160] sm:$0xf] }
  0x24   : > { %v270_v23 = vld [vmem:[%s1441_s10 + $0x170] sm:$0xf]  ;;  %267 = vst [vmem:[%s1446_s11 + $0x54] sm:$0xf] %v266_v21  ;;  %269 = vst [vmem:[%s1446_s11 + $0x58] sm:$0xf] %v268_v22 }
  0x25   : > { %271 = vst [vmem:[%s1446_s11 + $0x5c] sm:$0xf] %v270_v23  ;;  %v272_v24 = vld [vmem:[%s1441_s10 + $0x180] sm:$0xf]  ;;  %v274_v25 = vld [vmem:[%s1441_s10 + $0x190] sm:$0xf] }
  0x26   : > { %v276_v26 = vld [vmem:[%s1441_s10 + $0x1a0] sm:$0xf]  ;;  %273 = vst [vmem:[%s1446_s11 + $0x60] sm:$0xf] %v272_v24  ;;  %275 = vst [vmem:[%s1446_s11 + $0x64] sm:$0xf] %v274_v25 }
  0x27   : > { %277 = vst [vmem:[%s1446_s11 + $0x68] sm:$0xf] %v276_v26  ;;  %v278_v27 = vld [vmem:[%s1441_s10 + $0x1b0] sm:$0xf]  ;;  %v280_v28 = vld [vmem:[%s1441_s10 + $0x1c0] sm:$0xf] }
  0x28   : > { %v282_v29 = vld [vmem:[%s1441_s10 + $0x1d0] sm:$0xf]  ;;  %279 = vst [vmem:[%s1446_s11 + $0x6c] sm:$0xf] %v278_v27  ;;  %281 = vst [vmem:[%s1446_s11 + $0x70] sm:$0xf] %v280_v28 }
  0x29   : > { %283 = vst [vmem:[%s1446_s11 + $0x74] sm:$0xf] %v282_v29  ;;  %v284_v30 = vld [vmem:[%s1441_s10 + $0x1e0] sm:$0xf]  ;;  %v286_v31 = vld [vmem:[%s1441_s10 + $0x1f0] sm:$0xf] }
  0x2a   : > { %v288_v32 = vld [vmem:[%s1441_s10 + $0x200] sm:$0xf]  ;;  %285 = vst [vmem:[%s1446_s11 + $0x78] sm:$0xf] %v284_v30  ;;  %287 = vst [vmem:[%s1446_s11 + $0x7c] sm:$0xf] %v286_v31 }
  0x2b   : > { %289 = vst [vmem:[%s1446_s11 + $0x80] sm:$0xf] %v288_v32  ;;  %v290_v33 = vld [vmem:[%s1441_s10 + $0x210] sm:$0xf]  ;;  %v292_v34 = vld [vmem:[%s1441_s10 + $0x220] sm:$0xf] }
  0x2c   : > { %v294_v35 = vld [vmem:[%s1441_s10 + $0x230] sm:$0xf]  ;;  %291 = vst [vmem:[%s1446_s11 + $0x84] sm:$0xf] %v290_v33  ;;  %293 = vst [vmem:[%s1446_s11 + $0x88] sm:$0xf] %v292_v34 }
  0x2d   : > { %295 = vst [vmem:[%s1446_s11 + $0x8c] sm:$0xf] %v294_v35  ;;  %v296_v36 = vld [vmem:[%s1441_s10 + $0x240] sm:$0xf]  ;;  %v298_v37 = vld [vmem:[%s1441_s10 + $0x250] sm:$0xf] }
  0x2e   : > { %v300_v38 = vld [vmem:[%s1441_s10 + $0x260] sm:$0xf]  ;;  %297 = vst [vmem:[%s1446_s11 + $0x90] sm:$0xf] %v296_v36  ;;  %299 = vst [vmem:[%s1446_s11 + $0x94] sm:$0xf] %v298_v37 }
  0x2f   : > { %301 = vst [vmem:[%s1446_s11 + $0x98] sm:$0xf] %v300_v38  ;;  %v302_v39 = vld [vmem:[%s1441_s10 + $0x270] sm:$0xf]  ;;  %v304_v40 = vld [vmem:[%s1441_s10 + $0x280] sm:$0xf] }
  0x30   : > { %v306_v41 = vld [vmem:[%s1441_s10 + $0x290] sm:$0xf]  ;;  %303 = vst [vmem:[%s1446_s11 + $0x9c] sm:$0xf] %v302_v39  ;;  %305 = vst [vmem:[%s1446_s11 + $0xa0] sm:$0xf] %v304_v40 }
  0x31   : > { %307 = vst [vmem:[%s1446_s11 + $0xa4] sm:$0xf] %v306_v41  ;;  %v308_v42 = vld [vmem:[%s1441_s10 + $0x2a0] sm:$0xf]  ;;  %v310_v43 = vld [vmem:[%s1441_s10 + $0x2b0] sm:$0xf] }
  0x32   : > { %v312_v44 = vld [vmem:[%s1441_s10 + $0x2c0] sm:$0xf]  ;;  %309 = vst [vmem:[%s1446_s11 + $0xa8] sm:$0xf] %v308_v42  ;;  %311 = vst [vmem:[%s1446_s11 + $0xac] sm:$0xf] %v310_v43 }
  0x33   : > { %313 = vst [vmem:[%s1446_s11 + $0xb0] sm:$0xf] %v312_v44  ;;  %v314_v45 = vld [vmem:[%s1441_s10 + $0x2d0] sm:$0xf]  ;;  %v316_v46 = vld [vmem:[%s1441_s10 + $0x2e0] sm:$0xf] }
  0x34   : > { %v318_v47 = vld [vmem:[%s1441_s10 + $0x2f0] sm:$0xf]  ;;  %315 = vst [vmem:[%s1446_s11 + $0xb4] sm:$0xf] %v314_v45  ;;  %317 = vst [vmem:[%s1446_s11 + $0xb8] sm:$0xf] %v316_v46 }
  0x35   : > { %319 = vst [vmem:[%s1446_s11 + $0xbc] sm:$0xf] %v318_v47  ;;  %v320_v48 = vld [vmem:[%s1441_s10 + $0x300] sm:$0xf]  ;;  %v322_v49 = vld [vmem:[%s1441_s10 + $0x310] sm:$0xf] }
  0x36   : > { %v324_v50 = vld [vmem:[%s1441_s10 + $0x320] sm:$0xf]  ;;  %321 = vst [vmem:[%s1446_s11 + $0xc0] sm:$0xf] %v320_v48  ;;  %323 = vst [vmem:[%s1446_s11 + $0xc4] sm:$0xf] %v322_v49 }
  0x37   : > { %325 = vst [vmem:[%s1446_s11 + $0xc8] sm:$0xf] %v324_v50  ;;  %v326_v51 = vld [vmem:[%s1441_s10 + $0x330] sm:$0xf]  ;;  %v328_v52 = vld [vmem:[%s1441_s10 + $0x340] sm:$0xf] }
  0x38   : > { %v330_v53 = vld [vmem:[%s1441_s10 + $0x350] sm:$0xf]  ;;  %327 = vst [vmem:[%s1446_s11 + $0xcc] sm:$0xf] %v326_v51  ;;  %329 = vst [vmem:[%s1446_s11 + $0xd0] sm:$0xf] %v328_v52 }
  0x39   : > { %331 = vst [vmem:[%s1446_s11 + $0xd4] sm:$0xf] %v330_v53  ;;  %v332_v54 = vld [vmem:[%s1441_s10 + $0x360] sm:$0xf]  ;;  %v334_v55 = vld [vmem:[%s1441_s10 + $0x370] sm:$0xf] }
  0x3a   : > { %v336_v56 = vld [vmem:[%s1441_s10 + $0x380] sm:$0xf]  ;;  %333 = vst [vmem:[%s1446_s11 + $0xd8] sm:$0xf] %v332_v54  ;;  %335 = vst [vmem:[%s1446_s11 + $0xdc] sm:$0xf] %v334_v55 }
  0x3b   : > { %337 = vst [vmem:[%s1446_s11 + $0xe0] sm:$0xf] %v336_v56  ;;  %v338_v57 = vld [vmem:[%s1441_s10 + $0x390] sm:$0xf]  ;;  %v340_v58 = vld [vmem:[%s1441_s10 + $0x3a0] sm:$0xf] }
  0x3c   : > { %v342_v59 = vld [vmem:[%s1441_s10 + $0x3b0] sm:$0xf]  ;;  %339 = vst [vmem:[%s1446_s11 + $0xe4] sm:$0xf] %v338_v57  ;;  %341 = vst [vmem:[%s1446_s11 + $0xe8] sm:$0xf] %v340_v58 }
  0x3d   : > { %343 = vst [vmem:[%s1446_s11 + $0xec] sm:$0xf] %v342_v59  ;;  %v344_v60 = vld [vmem:[%s1441_s10 + $0x3c0] sm:$0xf]  ;;  %v346_v61 = vld [vmem:[%s1441_s10 + $0x3d0] sm:$0xf] }
  0x3e   : > { %v348_v62 = vld [vmem:[%s1441_s10 + $0x3e0] sm:$0xf]  ;;  %345 = vst [vmem:[%s1446_s11 + $0xf0] sm:$0xf] %v344_v60  ;;  %347 = vst [vmem:[%s1446_s11 + $0xf4] sm:$0xf] %v346_v61 }
  0x3f   : > { %349 = vst [vmem:[%s1446_s11 + $0xf8] sm:$0xf] %v348_v62  ;;  %v350_v63 = vld [vmem:[%s1441_s10 + $0x3f0] sm:$0xf] }
  0x40   : > { %351 = vst [vmem:[%s1446_s11 + $0xfc] sm:$0xf] %v350_v63 }
  0x41 PF: > { %p1123_p7 = scmp.ge.s32.totalorder %s1352_s21, 1  ;;  %p518_p8 = scmp.lt.s32.totalorder %s1352_s21, 37 }
  0x43   : > { %p519_p9 = pnand %p1123_p7, %p518_p8 }
  0x44   : > { %s525_s12 = sand.u32 (!%p519_p9), 1, %s1328_s15   ;;  %p570_p10 = scmp.lt.s32.totalorder (!%p519_p9), %s1336_s17, 8 }
  0x45   : > { %522 = sbr.rel (%p519_p9) target bundleno = 335 (0x14f), region = 73  ;;  %s1124_s13 = sshll.u32 (!%p519_p9), %s525_s12, 8 }
  0x46   : > { %p578_p11 = scmp.lt.s32.totalorder (!%p519_p9), %s1340_s18, 3  ;;  %s1599_s11 = scalar_lea.vmem (!%p519_p9), [#allocation3], %s1124_s13 }
  0x47   : > { %p1126_p12 = scmp.ne.s32.totalorder (!%p519_p9), %s1336_s17, 0 }
  0x4a   : > { %s571_s14 = scalar_select %p570_p10, %s1336_s17, 8 }
  0x4b   : > { %s1690_s18 = smov (!%p578_p11, %s1340_s18), 3  ;;  %599 = sbr.rel (%p1126_p12) target bundleno = 82 (0x52), region = 81 }
  0x4c   : > { %s1125_s24 = sshll.u32 %s571_s14, 2  ;;  %s580_s5 = scalar_lea.vmem %s1674_s2, %s1690_s18 }
  0x4d   : > { %s1585_s27 = scalar_lea.vmem %s1672_s0, %s1125_s24  ;;  %s587_s7 = scalar_lea.vmem %s1675_s3, %s1690_s18 }
  0x4e   : > { %s594_s10 = scalar_lea.vmem %s1676_s4, %s1690_s18 }
  0x50   : > { %v1354_v0 = vmov 0.0  }
  0x51   : > { %600 = vst [vmem:[#allocation2] sm:$0x3] %v1354_v0 }
  0x52 PF: > { %v1266_v1 = vld [vmem:[%s1599_s11 + $0x78] sm:$0xff]   ;;  %v1270_v5 = vld [vmem:[%s1599_s11 + $0x70] sm:$0xff]   ;;  %v1274_v9 = vld [vmem:[%s1599_s11 + $0x68] sm:$0xff]   ;;  %v679_v31 = vlaneseq  ;;  %v1355_v35 = vmov 1966171168   ;;  %p1160_p13 = scmp.ne.s32.totalorder %s1336_s17, 8 }
  0x53   : > { %v1267_v2 = vld [vmem:[%s1599_s11 + $0xf8] sm:$0xff]   ;;  %1164 = vmatprep.subr.bf16.mxu0 %v1266_v1  ;;  %v1271_v6 = vld [vmem:[%s1599_s11 + $0xf0] sm:$0xff]   ;;  %v1275_v10 = vld [vmem:[%s1599_s11 + $0xe8] sm:$0xff]   ;;  %v677_v36 = vunpack.c.l.s4 %v1355_v35 }
  0x54   : > { %v1268_v3 = vld [vmem:[%s1599_s11 + $0x38] sm:$0xff]   ;;  %1186 = vmatprep.subr.bf16.mxu1 %v1267_v2  ;;  %v1272_v7 = vld [vmem:[%s1599_s11 + $0x30] sm:$0xff]   ;;  %v1276_v11 = vld [vmem:[%s1599_s11 + $0x28] sm:$0xff]   ;;  %v680_v37 = vshrl.u32 %v679_v31, 7 }
  0x55   : > { %v1269_v4 = vld [vmem:[%s1599_s11 + $0xb8] sm:$0xff]   ;;  %1165 = vmatpush3.bf16.msra.mxu0 %v1268_v3  ;;  %v1273_v8 = vld [vmem:[%s1599_s11 + $0xb0] sm:$0xff]   ;;  %v1277_v12 = vld [vmem:[%s1599_s11 + $0xa8] sm:$0xff]   ;;  %v678_v39 = vunpack.c.0.s8 %v677_v36 }
  0x56   : > { %1187 = vmatpush3.bf16.msra.mxu1 %v1269_v4  ;;  %1166 = vmatprep.subr.bf16.mxu0 %v1270_v5  ;;  %v1278_v13 = vld [vmem:[%s1599_s11 + $0x60] sm:$0xff]   ;;  %v1282_v17 = vld [vmem:[%s1599_s11 + $0x58] sm:$0xff]   ;;  %v1286_v21 = vld [vmem:[%s1599_s11 + $0x50] sm:$0xff]  }
  0x57   : > { %1188 = vmatprep.subr.bf16.mxu1 %v1271_v6  ;;  %v1279_v14 = vld [vmem:[%s1599_s11 + $0xe0] sm:$0xff]   ;;  %v1283_v18 = vld [vmem:[%s1599_s11 + $0xd8] sm:$0xff]   ;;  %v1287_v22 = vld [vmem:[%s1599_s11 + $0xd0] sm:$0xff]   ;;  %v681_v40 = vsub.s32 %v678_v39, %v680_v37 }
  0x58   : > { %v1280_v15 = vld [vmem:[%s1599_s11 + $0x20] sm:$0xff]   ;;  %v1284_v19 = vld [vmem:[%s1599_s11 + $0x18] sm:$0xff]   ;;  %v1288_v23 = vld [vmem:[%s1599_s11 + $0x10] sm:$0xff]  }
  0x59   : > { %1167 = vmatpush3.bf16.msra.mxu0 %v1272_v7  ;;  %v1281_v16 = vld [vmem:[%s1599_s11 + $0xa0] sm:$0xff]   ;;  %v1285_v20 = vld [vmem:[%s1599_s11 + $0x98] sm:$0xff]   ;;  %v1289_v24 = vld [vmem:[%s1599_s11 + $0x90] sm:$0xff]  }
  0x5a   : > { %1189 = vmatpush3.bf16.msra.mxu1 %v1273_v8  ;;  %1168 = vmatprep.subr.bf16.mxu0 %v1274_v9  ;;  %v1290_v25 = vld [vmem:[%s1599_s11 + $0x48] sm:$0xff]   ;;  %v1294_v29 = vld [vmem:[%s1599_s11 + $0x40] sm:$0xff]   ;;  %v601_v52 = vld [vmem:[#allocation2] sm:$0x3] }
  0x5b   : > { %1190 = vmatprep.subr.bf16.mxu1 %v1275_v10  ;;  %v1291_v26 = vld [vmem:[%s1599_s11 + $0xc8] sm:$0xff]   ;;  %v1295_v30 = vld [vmem:[%s1599_s11 + $0xc0] sm:$0xff]  }
  0x5c   : > { %v1292_v27 = vld [vmem:[%s1599_s11 + $0x8] sm:$0xff]   ;;  %v1296_v32 = vld [vmem:[%s1599_s11] sm:$0xff]  }
  0x5d   : > { %1169 = vmatpush3.bf16.msra.mxu0 %v1276_v11  ;;  %v1293_v28 = vld [vmem:[%s1599_s11 + $0x88] sm:$0xff]   ;;  %v1297_v33 = vld [vmem:[%s1599_s11 + $0x80] sm:$0xff]  }
  0x5e   : > { %1191 = vmatpush3.bf16.msra.mxu1 %v1277_v12  ;;  %1170 = vmatprep.subr.bf16.mxu0 %v1278_v13  ;;  %v1127_v34 = vld.sshfl [vmem:[%s1585_s27] sm:$0x33 pattern:$0x75316420] }
  0x5f   : > { %1192 = vmatprep.subr.bf16.mxu1 %v1279_v14  ;;  %v675_v38 = vcombine.high %v1127_v34, %v1127_v34  ;;  %v682_v42 = vrot.slane %v1127_v34, %v681_v40 }
  0x61   : > { %1171 = vmatpush3.bf16.msra.mxu0 %v1280_v15  ;;  %v689_v41 = vrot.slane %v675_v38, %v681_v40  ;;  %v690_v44 = vcombine.high %v682_v42, %v682_v42 }
  0x62   : > { %1193 = vmatpush3.bf16.msra.mxu1 %v1281_v16  ;;  %1172 = vmatprep.subr.bf16.mxu0 %v1282_v17 }
  0x63   : > { %1194 = vmatprep.subr.bf16.mxu1 %v1283_v18  ;;  %920 = vmatprep.mubr.bf16.mxu0 %v689_v41  ;;  %v691_v43 = vcombine.high %v689_v41, %v689_v41 }
  0x65   : > { %1173 = vmatpush3.bf16.msra.mxu0 %v1284_v19  ;;  %960 = vmatprep.mubr.bf16.mxu1 %v691_v43 }
  0x66   : > { %1195 = vmatpush3.bf16.msra.mxu1 %v1285_v20  ;;  %1174 = vmatprep.subr.bf16.mxu0 %v1286_v21 }
  0x67   : > { %1196 = vmatprep.subr.bf16.mxu1 %v1287_v22 }
  0x69   : > { %1175 = vmatpush3.bf16.msra.mxu0 %v1288_v23 }
  0x6a   : > { %1197 = vmatpush3.bf16.msra.mxu1 %v1289_v24  ;;  %1176 = vmatprep.subr.bf16.mxu0 %v1290_v25 }
  0x6b   : > { %1198 = vmatprep.subr.bf16.mxu1 %v1291_v26 }
  0x6d   : > { %1177 = vmatpush3.bf16.msra.mxu0 %v1292_v27 }
  0x6e   : > { %1199 = vmatpush3.bf16.msra.mxu1 %v1293_v28  ;;  %1178 = vmatprep.subr.bf16.mxu0 %v1294_v29 }
  0x6f   : > { %1200 = vmatprep.subr.bf16.mxu1 %v1295_v30 }
  0x71   : > { %1179 = vmatpush3.bf16.msra.mxu0 %v1296_v32 }
  0x72   : > { %1201 = vmatpush3.bf16.msra.mxu1 %v1297_v33 }
  0x74   : > { %921 = vmatmul.mubr.bf16.vlgmr.msra.gmra.mxu0 %v682_v42 }
  0x75   : > { %961 = vmatmul.mubr.bf16.vlgmr.msra.gmra.mxu1 %v690_v44 }
 0x134   : > { %v1180_v45 = vpop.f32.mrf.mxu0 }
 0x135   : > { %v1202_v46 = vpop.f32.mrf.mxu1 }
 0x136   : > { %v1181_v47 = vpop.f32.mrf.mxu0 }
 0x137   : > { %v1182_v48 = vadd.f32 %v1181_v47, %v1180_v45  ;;  %v1203_v49 = vpop.f32.mrf.mxu1 }
 0x138   : > { %v1183_v50 = vpop.f32.mrf.mxu0  ;;  %v1204_v51 = vadd.f32 %v1203_v49, %v1202_v46 }
 0x139   : > { %v1205_v53 = vpop.f32.mrf.mxu1 }
 0x13a   : > { %v1184_v54 = vpop.f32.mrf.mxu0  ;;  %v963_v55 = vadd.f32 %v1204_v51, %v1182_v48  ;;  %973 = sbr.rel (%p1160_p13) target bundleno = 335 (0x14f), region = 85 }
 0x13b   : > { %v1206_v56 = vpop.f32.mrf.mxu1 }
 0x13c   : > { %v968_v57 = vadd.f32 %v963_v55, %v601_v52 }
 0x13e   : > { %969 = vst [vmem:[#allocation2] sm:$0x3] %v968_v57 }
 0x13f   : > { %v1161_v59 = vld [vmem:[%s580_s5] ss:$0 sm:$0xff] }
 0x140   : > { %v983_v60 = vld [vmem:[%s587_s7] sm:$0x1] }
 0x141   : > { %v984_v62 = vunpack.c.l.bf16 %v983_v60 }
 0x145   : > { %v974_v58 = vld [vmem:[#allocation2] sm:$0x3] }
 0x146   : > { %v982_v61 = vadd.f32 %v1161_v59, %v974_v58 }
 0x148   : > { %v985_v63 = vadd.f32 %v984_v62, %v982_v61 }
 0x14a   : > { %v986_v0 = vmax.f32 %v985_v63, 0.0 }
 0x14c   : > { %v987_v1 = vpack.c.bf16 %v986_v0, %v986_v0 }
 0x14e   : > { %988 = vst [vmem:[%s594_s10] sm:$0x1] %v987_v1 }
 0x14f PF: > { %s14_s21 = sadd.s32 1, %s1352_s21   ;;  %s1677_s15 = smov %s1332_s16 }
 0x150   : > { %p11_p0 = scmp.ge.s32.totalorder %s14_s21, 38   ;;  %s1678_s16 = smov %s1432_s28 }
 0x151   : > { %s1679_s17 = smov %s1344_s19  ;;  %s1680_s18 = smov %s1348_s20 }
 0x152   : > { %s1681_s19 = smov %s1684_s22  ;;  %s1682_s20 = smov %s1688_s23 }
 0x153   :  { %13 = sbr.rel (!%p11_p0) target bundleno = 4 (0x4), region = 129 }

// kernel: resnet_forward.27
= control target key start
LH: loop header
LB: loop body
LE: loop exit
PB: predicated region body
PF: predicated region fallthrough
CT: control target
= control target key end

     0   :  { %v94_v32 = vlaneseq  ;;  %s614_s0 = inlined_call_operand.vmem [shape: bf16[2,1,512], index: 0, kind: input, shape index: {}]   ;;  %s615_s1 = inlined_call_operand.vmem [shape: f32[512,128], index: 1, kind: input, shape index: {}]   ;;  %s616_s2 = inlined_call_operand.vmem [shape: f32[1,128], index: 2, kind: input, shape index: {}]   ;;  %s617_s3 = inlined_call_operand.hbm [shape: f32[2,128], index: 3, kind: output, shape index: {}]  }
   0x1   :  { %v52_v0 = vld [vmem:[%s615_s1 + $0xf8] sm:$0xff]  ;;  %v51_v4 = vld [vmem:[%s615_s1 + $0xf0] sm:$0xff]  ;;  %v50_v8 = vld [vmem:[%s615_s1 + $0xe8] sm:$0xff] }
   0x2   :  { %v84_v1 = vld [vmem:[%s615_s1 + $0x1f8] sm:$0xff]  ;;  %295 = vmatprep.subr.mxu0 %v52_v0  ;;  %v83_v5 = vld [vmem:[%s615_s1 + $0x1f0] sm:$0xff]  ;;  %v82_v9 = vld [vmem:[%s615_s1 + $0x1e8] sm:$0xff]  ;;  %v95_v41 = vshrl.u32 %v94_v32, 7 }
   0x3   :  { %v36_v2 = vld [vmem:[%s615_s1 + $0x78] sm:$0xff]  ;;  %330 = vmatprep.subr.mxu1 %v84_v1  ;;  %v35_v6 = vld [vmem:[%s615_s1 + $0x70] sm:$0xff]  ;;  %v34_v10 = vld [vmem:[%s615_s1 + $0x68] sm:$0xff] }
   0x4   :  { %v68_v3 = vld [vmem:[%s615_s1 + $0x178] sm:$0xff]  ;;  %296 = vmatpush3.msra.mxu0 %v36_v2  ;;  %v67_v7 = vld [vmem:[%s615_s1 + $0x170] sm:$0xff]  ;;  %v66_v11 = vld [vmem:[%s615_s1 + $0x168] sm:$0xff]  ;;  %v100_v51 = vsub.s32 2, %v95_v41 }
   0x5   :  { %331 = vmatpush3.msra.mxu1 %v68_v3  ;;  %297 = vmatprep.subr.mxu0 %v51_v4  ;;  %v49_v12 = vld [vmem:[%s615_s1 + $0xe0] sm:$0xff]  ;;  %v48_v16 = vld [vmem:[%s615_s1 + $0xd8] sm:$0xff]  ;;  %v47_v20 = vld [vmem:[%s615_s1 + $0xd0] sm:$0xff] }
   0x6   :  { %332 = vmatprep.subr.mxu1 %v83_v5  ;;  %298 = vmatpush3.msra.mxu0 %v35_v6  ;;  %v81_v13 = vld [vmem:[%s615_s1 + $0x1e0] sm:$0xff]  ;;  %v80_v17 = vld [vmem:[%s615_s1 + $0x1d8] sm:$0xff]  ;;  %v79_v21 = vld [vmem:[%s615_s1 + $0x1d0] sm:$0xff] }
   0x7   :  { %333 = vmatpush3.msra.mxu1 %v67_v7  ;;  %299 = vmatprep.subr.mxu0 %v50_v8  ;;  %v33_v14 = vld [vmem:[%s615_s1 + $0x60] sm:$0xff]  ;;  %v32_v18 = vld [vmem:[%s615_s1 + $0x58] sm:$0xff]  ;;  %v31_v22 = vld [vmem:[%s615_s1 + $0x50] sm:$0xff] }
   0x8   :  { %334 = vmatprep.subr.mxu1 %v82_v9  ;;  %v65_v15 = vld [vmem:[%s615_s1 + $0x160] sm:$0xff]  ;;  %300 = vmatpush3.msra.mxu0 %v34_v10  ;;  %v64_v19 = vld [vmem:[%s615_s1 + $0x158] sm:$0xff]  ;;  %v63_v23 = vld [vmem:[%s615_s1 + $0x150] sm:$0xff] }
   0x9   :  { %335 = vmatpush3.msra.mxu1 %v66_v11  ;;  %301 = vmatprep.subr.mxu0 %v49_v12  ;;  %v46_v24 = vld [vmem:[%s615_s1 + $0xc8] sm:$0xff]  ;;  %v45_v28 = vld [vmem:[%s615_s1 + $0xc0] sm:$0xff]  ;;  %v44_v33 = vld [vmem:[%s615_s1 + $0xb8] sm:$0xff] }
   0xa   :  { %336 = vmatprep.subr.mxu1 %v81_v13  ;;  %302 = vmatpush3.msra.mxu0 %v33_v14  ;;  %v78_v25 = vld [vmem:[%s615_s1 + $0x1c8] sm:$0xff]  ;;  %v77_v29 = vld [vmem:[%s615_s1 + $0x1c0] sm:$0xff]  ;;  %v76_v34 = vld [vmem:[%s615_s1 + $0x1b8] sm:$0xff] }
   0xb   :  { %337 = vmatpush3.msra.mxu1 %v65_v15  ;;  %303 = vmatprep.subr.mxu0 %v48_v16  ;;  %v30_v26 = vld [vmem:[%s615_s1 + $0x48] sm:$0xff]  ;;  %v29_v30 = vld [vmem:[%s615_s1 + $0x40] sm:$0xff]  ;;  %v28_v35 = vld [vmem:[%s615_s1 + $0x38] sm:$0xff] }
   0xc   :  { %338 = vmatprep.subr.mxu1 %v80_v17  ;;  %304 = vmatpush3.msra.mxu0 %v32_v18  ;;  %v62_v27 = vld [vmem:[%s615_s1 + $0x148] sm:$0xff]  ;;  %v61_v31 = vld [vmem:[%s615_s1 + $0x140] sm:$0xff]  ;;  %v60_v36 = vld [vmem:[%s615_s1 + $0x138] sm:$0xff] }
   0xd   :  { %339 = vmatpush3.msra.mxu1 %v64_v19  ;;  %305 = vmatprep.subr.mxu0 %v47_v20  ;;  %v43_v37 = vld [vmem:[%s615_s1 + $0xb0] sm:$0xff]  ;;  %v42_v42 = vld [vmem:[%s615_s1 + $0xa8] sm:$0xff]  ;;  %v41_v46 = vld [vmem:[%s615_s1 + $0xa0] sm:$0xff] }
   0xe   :  { %340 = vmatprep.subr.mxu1 %v79_v21  ;;  %306 = vmatpush3.msra.mxu0 %v31_v22  ;;  %v75_v38 = vld [vmem:[%s615_s1 + $0x1b0] sm:$0xff]  ;;  %v74_v43 = vld [vmem:[%s615_s1 + $0x1a8] sm:$0xff]  ;;  %v73_v47 = vld [vmem:[%s615_s1 + $0x1a0] sm:$0xff] }
   0xf   :  { %341 = vmatpush3.msra.mxu1 %v63_v23  ;;  %307 = vmatprep.subr.mxu0 %v46_v24  ;;  %v27_v39 = vld [vmem:[%s615_s1 + $0x30] sm:$0xff]  ;;  %v26_v44 = vld [vmem:[%s615_s1 + $0x28] sm:$0xff]  ;;  %v25_v48 = vld [vmem:[%s615_s1 + $0x20] sm:$0xff] }
  0x10   :  { %342 = vmatprep.subr.mxu1 %v78_v25  ;;  %308 = vmatpush3.msra.mxu0 %v30_v26  ;;  %v59_v40 = vld [vmem:[%s615_s1 + $0x130] sm:$0xff]  ;;  %v58_v45 = vld [vmem:[%s615_s1 + $0x128] sm:$0xff]  ;;  %v57_v49 = vld [vmem:[%s615_s1 + $0x120] sm:$0xff] }
  0x11   :  { %343 = vmatpush3.msra.mxu1 %v62_v27  ;;  %309 = vmatprep.subr.mxu0 %v45_v28  ;;  %v292_v50 = vld [vmem:[%s614_s0] sm:$0xff]  }
  0x12   :  { %344 = vmatprep.subr.mxu1 %v77_v29  ;;  %310 = vmatpush3.msra.mxu0 %v29_v30 }
  0x13   :  { %345 = vmatpush3.msra.mxu1 %v61_v31  ;;  %311 = vmatprep.subr.mxu0 %v44_v33 }
  0x14   :  { %346 = vmatprep.subr.mxu1 %v76_v34  ;;  %312 = vmatpush3.msra.mxu0 %v28_v35 }
  0x15   :  { %347 = vmatpush3.msra.mxu1 %v60_v36  ;;  %313 = vmatprep.subr.mxu0 %v43_v37 }
  0x16   :  { %348 = vmatprep.subr.mxu1 %v75_v38  ;;  %314 = vmatpush3.msra.mxu0 %v27_v39 }
  0x17   :  { %349 = vmatpush3.msra.mxu1 %v59_v40  ;;  %315 = vmatprep.subr.mxu0 %v42_v42 }
  0x18   :  { %350 = vmatprep.subr.mxu1 %v74_v43 }
  0x19   :  { %8 = vsyncpa [#allocation3], 0  ;;  %316 = vmatpush3.msra.mxu0 %v26_v44  ;;  %351 = vmatpush3.msra.mxu1 %v58_v45  ;;  %v40_v52 = vld [vmem:[%s615_s1 + $0x98] sm:$0xff]  ;;  %v293_v54 = vunpack.c.l.bf16 %v292_v50  ;;  %v294_v55 = vunpack.c.h.bf16 %v292_v50  ;;  %v108_v56 = vsub.s32 6, %v95_v41  ;;  %v96_v57 = vsub.s32 0, %v95_v41  ;;  %v39_v61 = vld [vmem:[%s615_s1 + $0x90] sm:$0xff] }
  0x1a   :  { %v72_v53 = vld [vmem:[%s615_s1 + $0x198] sm:$0xff]  ;;  %317 = vmatprep.subr.mxu0 %v41_v46  ;;  %352 = vmatprep.subr.mxu1 %v73_v47  ;;  %v104_v60 = vsub.s32 4, %v95_v41  ;;  %v71_v62 = vld [vmem:[%s615_s1 + $0x190] sm:$0xff]  ;;  %v38_v3 = vld [vmem:[%s615_s1 + $0x88] sm:$0xff]  ;;  %vm126_vm0 = vcmask 1041409  }
  0x1b   :  { %v24_v58 = vld [vmem:[%s615_s1 + $0x18] sm:$0xff]  ;;  %318 = vmatpush3.msra.mxu0 %v25_v48  ;;  %353 = vmatpush3.msra.mxu1 %v57_v49  ;;  %v23_v63 = vld [vmem:[%s615_s1 + $0x10] sm:$0xff]  ;;  %v101_v1 = vrot.slane %v293_v54, %v100_v51  ;;  %v117_v2 = vrot.slane %v294_v55, %v100_v51  ;;  %v70_v4 = vld [vmem:[%s615_s1 + $0x188] sm:$0xff]  ;;  %v109_v5 = vrot.slane %v293_v54, %v108_v56 }
  0x1c   :  { %v56_v59 = vld [vmem:[%s615_s1 + $0x118] sm:$0xff]  ;;  %319 = vmatprep.subr.mxu0 %v40_v52  ;;  %354 = vmatprep.subr.mxu1 %v72_v53  ;;  %v55_v0 = vld [vmem:[%s615_s1 + $0x110] sm:$0xff]  ;;  %v125_v6 = vrot.slane %v294_v55, %v108_v56  ;;  %v97_v7 = vrot.slane %v293_v54, %v96_v57  ;;  %v22_v8 = vld [vmem:[%s615_s1 + $0x8] sm:$0xff]  ;;  %v113_v10 = vrot.slane %v294_v55, %v96_v57 }
  0x1d   :  { %320 = vmatpush3.msra.mxu0 %v24_v58  ;;  %355 = vmatpush3.msra.mxu1 %v56_v59  ;;  %v54_v9 = vld [vmem:[%s615_s1 + $0x108] sm:$0xff]  ;;  %v105_v11 = vrot.slane %v293_v54, %v104_v60  ;;  %v121_v12 = vrot.slane %v294_v55, %v104_v60  ;;  %v37_v13 = vld [vmem:[%s615_s1 + $0x80] sm:$0xff]  ;;  %v128_v16 = vsel %vm126_vm0, %v117_v2, %v101_v1 }
  0x1e   :  { %321 = vmatprep.subr.mxu0 %v39_v61  ;;  %356 = vmatprep.subr.mxu1 %v71_v62  ;;  %v69_v14 = vld [vmem:[%s615_s1 + $0x180] sm:$0xff]  ;;  %v130_v18 = vsel %vm126_vm0, %v125_v6, %v109_v5  ;;  %v127_v19 = vsel %vm126_vm0, %v113_v10, %v97_v7 }
  0x1f   :  { %322 = vmatpush3.msra.mxu0 %v23_v63  ;;  %357 = vmatpush3.msra.mxu1 %v55_v0  ;;  %v21_v15 = vld [vmem:[%s615_s1] sm:$0xff]  ;;  %v129_v20 = vsel %vm126_vm0, %v121_v12, %v105_v11 }
  0x20   :  { %323 = vmatprep.subr.mxu0 %v38_v3  ;;  %358 = vmatprep.subr.mxu1 %v70_v4  ;;  %v53_v17 = vld [vmem:[%s615_s1 + $0x100] sm:$0xff]  ;;  %s388_s1 = smov [#allocation2]  }
  0x21   :  { %324 = vmatpush3.msra.mxu0 %v22_v8  ;;  %359 = vmatpush3.msra.mxu1 %v54_v9  ;;  %v290_v23 = vld [vmem:[%s616_s2] ss:$0 sm:$0xff]  ;;  %s282_s7 = sshll.u32 %s388_s1, 4  ;;  %s283_s7 = int_to_ptr.vmem [resolvable:$true] %s282_s7 }
  0x22   :  { %325 = vmatprep.subr.mxu0 %v37_v13  ;;  %360 = vmatprep.subr.mxu1 %v69_v14  ;;  %s366_s8 = scalar_lea.vmem %s283_s7, 32  ;;  %p371_p1 = scmp.lt.s32.totalorder %s283_s7, %s283_s7 }
  0x23   :  { %326 = vmatpush3.msra.mxu0 %v21_v15  ;;  %199 = vmatprep.mubr.f32.mxu0 %v128_v16  ;;  %p367_p0 = scmp.ne.s32.totalorder %s283_s7, %s366_s8  ;;  %p372_p2 = scmp.lt.s32.totalorder %s366_s8, %s366_s8 }
  0x24   :  { %361 = vmatpush3.msra.mxu1 %v53_v17  ;;  %269 = vmatprep.mubr.f32.mxu1 %v130_v18 }
  0x25   :  { %200 = vmatmul.mubr.f32.vlgmr.msra.gmra.mxu0 %v127_v19  ;;  %270 = vmatmul.mubr.f32.vlgmr.msra.gmra.mxu1 %v129_v20  ;;  %p373_p3 = por %p372_p2, %p371_p1 }
  0x27   :  { %p374_p4 = pnand %p373_p3, %p367_p0 }
  0xe5   :  { %v327_v21 = vpop.f32.mrf.mxu0  ;;  %v362_v22 = vpop.f32.mrf.mxu1 }
  0xe7   :  { %v328_v24 = vpop.f32.mrf.mxu0  ;;  %v363_v25 = vpop.f32.mrf.mxu1 }
  0xe8   :  { %v329_v26 = vadd.f32 %v328_v24, %v327_v21  ;;  %v364_v28 = vadd.f32 %v363_v25, %v362_v22 }
  0xea   :  { %v202_v27 = vadd.f32 %v329_v26, %v290_v23 }
  0xec   :  { %v272_v29 = vadd.f32 %v364_v28, %v202_v27 }
  0xee   :  { %275 = vst [vmem:[#allocation2] sm:$0x3] %v272_v29 }
  0xef   :  { %377 = shalt.err (!%p374_p4)
}
  0xf0   :  { %285 = dma.vmem_to_hbm [thread:$0]  %s283_s7, 32, %s617_s3, [#allocation3]  }
  0xf1   :  { %386 = dma.done.wait [#allocation3], 32  }
  0xf2   :  { %387 = vsyncadd [#allocation3], 4294967264 }
  0xf3   :  { %289 = vsyncpa [#allocation3], 1 }

</bundles_post_ra>
